<compile_context>
chip_gen: v5e
topology: v5e:2x2
jax: 0.10.0
libtpu: 0.0.40
codegen_flags: <defaults>
</compile_context>

<pallas_src>
import functools

import jax
import jax.numpy as jnp
from jax.experimental import pallas as pl
from jax.experimental.pallas import tpu as pltpu


def _round_up(x, m):
    return (x + m - 1) // m * m


# Tile-size ceilings.  Deliberately independent of the physical MXU size
# (no 128 cap on v5e): tiles are sized for pipeline/DMA amortisation and stay
# a few MiB per step, far below v7x's 64 MiB VMEM.
TM_MAX = 256
TK_CANDIDATES = (512, 256, 128)
TN_CANDIDATES = (1024, 512, 256, 128)
_VMEM_LIMIT = 32 * 1024 * 1024   # safe on v5e/v6e (128 MiB) and v7x (64 MiB)


# ---------------------------------------------------------------------------
# Pallas kernels
# ---------------------------------------------------------------------------
def _tree_sum(parts):
    """Pairwise (log-depth) sum of a list of equal-shaped arrays."""
    while len(parts) > 1:
        nxt = [parts[i] + parts[i + 1] for i in range(0, len(parts) - 1, 2)]
        if len(parts) % 2:
            nxt.append(parts[-1])
        parts = nxt
    return parts[0]


def _gemm_kernel(a_ref, b_ref, *rest, activation, with_stats, single_k):
    if single_k:
        refs, acc_ref = rest, None
    else:
        refs, acc_ref = rest[:-1], rest[-1]
    if with_stats:
        o_ref, sum_ref, sq_ref = refs
    else:
        (o_ref,) = refs

    def epilogue(acc):
        out = jax.nn.sigmoid(acc) if activation == "sigmoid" else acc
        o_ref[0] = out.astype(o_ref.dtype)
        if with_stats:
            # Per-column partial sums / sums-of-squares kept sublane-dense as
            # (8, tn); log-depth pairwise reduce instead of a serial add chain
            # so the epilogue stays off the critical path.
            parts = [acc[r * 8:(r + 1) * 8, :]
                     for r in range(acc.shape[0] // 8)]
            sum_ref[0] = _tree_sum(parts)
            sq_ref[0] = _tree_sum([p * p for p in parts])

    if single_k:
        # One K step: feed the epilogue straight from the MXU result; no
        # accumulator zero-init / read-modify-write / reload.
        epilogue(jnp.dot(a_ref[0], b_ref[0],
                         preferred_element_type=jnp.float32))
    else:
        @pl.when(pl.program_id(3) == 0)
        def _():
            acc_ref[...] = jnp.zeros_like(acc_ref)

        acc_ref[...] += jnp.dot(a_ref[0], b_ref[0],
                                preferred_element_type=jnp.float32)

        @pl.when(pl.program_id(3) == pl.num_programs(3) - 1)
        def _():
            epilogue(acc_ref[...])


def gemm(a, b_padded, activation="none", with_stats=False,
         out_dtype=jnp.bfloat16):
    """Batched tiled GEMM: (P, M, K) @ (P, Kp, Np) -> (P, Mp, Np).

    `b_padded` is already zero-padded to multiples of 128 and cast to bf16
    (done once in init_params).  `a` is expected in bf16 (cast here only if
    needed) and is padded only when its shape is not already tile-aligned.
    With `with_stats` the kernel also emits per-column partial sums and
    sums-of-squares (f32, for BatchNorm), which the wrapper reduces to (Np,)
    vectors.
    """
    P, M, K = a.shape
    Pb, Kp, Np = b_padded.shape
    assert P == Pb and Kp >= K and Kp % 128 == 0 and Np % 128 == 0

    tm = min(TM_MAX, _round_up(M, 8))
    tk = max(t for t in TK_CANDIDATES if Kp % t == 0)
    tn = max(t for t in TN_CANDIDATES if Np % t == 0)
    Mp = _round_up(M, tm)
    nk = Kp // tk
    single_k = (nk == 1)

    if a.dtype != jnp.bfloat16:
        a = a.astype(jnp.bfloat16)
    if Mp != M or Kp != K:      # skip the pad copy when already aligned
        a = jnp.pad(a, ((0, 0), (0, Mp - M), (0, Kp - K)))

    if single_k:
        grid = (P, Mp // tm, Np // tn)
        a_spec = pl.BlockSpec((1, tm, tk), lambda p, i, j: (p, i, 0))
        b_spec = pl.BlockSpec((1, tk, tn), lambda p, i, j: (p, 0, j))
        o_map = lambda p, i, j: (p, i, j)
        scratch = []
        dims = ("parallel", "parallel", "parallel")
    else:
        grid = (P, Mp // tm, Np // tn, nk)
        a_spec = pl.BlockSpec((1, tm, tk), lambda p, i, j, k: (p, i, k))
        b_spec = pl.BlockSpec((1, tk, tn), lambda p, i, j, k: (p, k, j))
        o_map = lambda p, i, j, k: (p, i, j)
        scratch = [pltpu.VMEM((tm, tn), jnp.float32)]
        dims = ("parallel", "parallel", "parallel", "arbitrary")

    o_shape = jax.ShapeDtypeStruct((P, Mp, Np), out_dtype)
    o_spec = pl.BlockSpec((1, tm, tn), o_map)
    if with_stats:
        s_shape = jax.ShapeDtypeStruct((P, (Mp // tm) * 8, Np), jnp.float32)
        s_spec = pl.BlockSpec((1, 8, tn), o_map)
        out_shape = (o_shape, s_shape, s_shape)
        out_specs = (o_spec, s_spec, s_spec)
    else:
        out_shape, out_specs = o_shape, o_spec

    res = pl.pallas_call(
        functools.partial(_gemm_kernel, activation=activation,
                          with_stats=with_stats, single_k=single_k),
        out_shape=out_shape,
        grid_spec=pltpu.PrefetchScalarGridSpec(
            num_scalar_prefetch=0,
            grid=grid,
            in_specs=[a_spec, b_spec],
            out_specs=out_specs,
            scratch_shapes=scratch),
        compiler_params=pltpu.CompilerParams(
            dimension_semantics=dims,
            vmem_limit_bytes=_VMEM_LIMIT),
    )(a, b_padded)

    if with_stats:
        out, s, sq = res
        return out, jnp.sum(s, axis=(0, 1)), jnp.sum(sq, axis=(0, 1))
    return res


def _bn_relu_kernel(x_ref, scale_ref, shift_ref, o_ref):
    x = x_ref[...].astype(jnp.float32)
    # (1, Cp) scale/shift broadcast against (rt, Cp); hoisted once per tile.
    y = jnp.maximum(x * scale_ref[...] + shift_ref[...], 0.0)
    o_ref[...] = y.astype(o_ref.dtype)


def _row_tile(rows, cols, bytes_per_elem=2, max_bytes=4 * 1024 * 1024):
    for rt in (2048, 1024, 512, 256, 128, 64, 32, 16, 8):
        if rows % rt == 0 and rt * cols * bytes_per_elem <= max_bytes:
            return rt
    return 8


def bn_relu(x2d, scale, shift):
    """y = relu(x * scale + shift); x2d (R, Cp) bf16, already (8,128)-padded.
    Output is bf16 so the downstream im2col / GEMM reads half the bytes."""
    R, Cp = x2d.shape
    assert R % 8 == 0 and Cp % 128 == 0
    rt = _row_tile(R, Cp)     # large row tiles for this HBM-bandwidth kernel
    return pl.pallas_call(
        _bn_relu_kernel,
        out_shape=jax.ShapeDtypeStruct((R, Cp), jnp.bfloat16),
        grid_spec=pltpu.PrefetchScalarGridSpec(
            num_scalar_prefetch=0,
            grid=(R // rt,),
            in_specs=[pl.BlockSpec((rt, Cp), lambda i: (i, 0)),
                      pl.BlockSpec((1, Cp), lambda i: (0, 0)),
                      pl.BlockSpec((1, Cp), lambda i: (0, 0))],
            out_specs=pl.BlockSpec((rt, Cp), lambda i: (i, 0))),
        compiler_params=pltpu.CompilerParams(
            dimension_semantics=("parallel",),
            vmem_limit_bytes=_VMEM_LIMIT),
    )(x2d, scale.reshape(1, Cp), shift.reshape(1, Cp))


# ---------------------------------------------------------------------------
# ConvTranspose2d(K=4, s=2, p=1) via sub-pixel decomposition (plain-JAX glue)
# ---------------------------------------------------------------------------
def _subpixel_im2col(h):
    """Sub-pixel im2col for ConvTranspose2d(K=4, stride=2, pad=1).

    Output parity (py, px) of the transposed conv is an ordinary stride-1
    2x2 convolution over the 1-padded input:
        y[2m+py, 2n+px] = sum_{dy,dx in {0,1}} xpad[m+py+dy, n+px+dx] *
                          w[:, :, 3-2*dy-py, 3-2*dx-px]
    Returns A of shape (4, N*H*W, 4*Cin) in h's dtype (bf16); parity index
    p = 2*py+px, K-columns ordered (dy, dx, cin) to match _subpixel_weights.
    """
    N, H, W, Cin = h.shape
    xp = jnp.pad(h, ((0, 0), (1, 1), (1, 1), (0, 0)))
    mats = []
    for py in (0, 1):
        for px in (0, 1):
            taps = [xp[:, py + dy:py + dy + H, px + dx:px + dx + W, :]
                    for dy in (0, 1) for dx in (0, 1)]
            a = jnp.stack(taps, axis=3)               # (N, H, W, 4, Cin)
            mats.append(a.reshape(N * H * W, 4 * Cin))
    return jnp.stack(mats, axis=0)                    # (4, N*H*W, 4*Cin)


def _subpixel_weights(w):
    """(Cin, Cout, 4, 4) ConvTranspose2d weight -> (4, 4*Cin, Cout) per-parity
    2x2 sub-kernels matching _subpixel_im2col's column ordering."""
    cin, cout = w.shape[0], w.shape[1]
    mats = []
    for py in (0, 1):
        for px in (0, 1):
            taps = [w[:, :, 3 - 2 * dy - py, 3 - 2 * dx - px]
                    for dy in (0, 1) for dx in (0, 1)]
            mats.append(jnp.stack(taps, axis=0).reshape(4 * cin, cout))
    return jnp.stack(mats, axis=0)


def _prep_b(b):
    """Zero-pad a (P, K, Ncols) GEMM rhs to multiples of 128 and cast to bf16.
    Done once at init so the per-forward path never touches the weights."""
    P, K, Nc = b.shape
    Kp = _round_up(K, 128)
    Np = _round_up(Nc, 128)
    return jnp.pad(b, ((0, 0), (0, Kp - K), (0, Np - Nc))).astype(jnp.bfloat16)


def _bn_scale_shift(csum, csq, count, gamma, beta, eps=1e-5):
    mean = csum / count
    var = jnp.maximum(csq / count - mean * mean, 0.0)   # clamp cancellation
    scale = gamma * jax.lax.rsqrt(var + eps)
    shift = beta - mean * scale
    return scale, shift


def _conv_t_s2(h, b_padded, cout, gamma=None, beta=None, activation="none"):
    """ConvTranspose2d(4, stride=2, pad=1, bias=False) on NHWC `h` via four
    parity GEMMs batched along the leading grid axis; optionally followed by
    BatchNorm(batch stats)+ReLU, or a fused Sigmoid epilogue."""
    N, H, W, _ = h.shape
    M = N * H * W
    A = _subpixel_im2col(h)                               # (4, M, 4*Cin) bf16
    if gamma is not None:
        out, csum, csq = gemm(A, b_padded, with_stats=True)
        _, Mp, Np = out.shape
        scale, shift = _bn_scale_shift(csum[:cout], csq[:cout],
                                       float(4 * M), gamma, beta)
        y = bn_relu(out.reshape(4 * Mp, Np),
                    jnp.pad(scale, (0, Np - cout)),
                    jnp.pad(shift, (0, Np - cout))).reshape(4, Mp, Np)
    else:
        y = gemm(A, b_padded, activation=activation, out_dtype=jnp.float32)
    y = y[:, :M, :cout]
    # interleave parities: y[p=(py,px), (n,m,mm), c] -> (n, 2m+py, 2mm+px, c)
    y = y.reshape(2, 2, N, H, W, cout).transpose(2, 3, 0, 4, 1, 5)
    return y.reshape(N, 2 * H, 2 * W, cout)


# ---------------------------------------------------------------------------
# Parameters (spectral norm + precomputed GEMM rhs) and forward pass
# ---------------------------------------------------------------------------
def spectral_normalize(w, n_iters=10):
    """Spectral norm of a ConvTranspose2d weight (Cin, Cout, K, K), matricized
    along dim=1 (out-channels) as PyTorch does for ConvTranspose*d."""
    # TODO(synk): PyTorch keeps stateful u/v buffers updated once per forward
    # from a random init; here we use deterministic power iterations at init.
    cout = w.shape[1]
    wm = jnp.transpose(w, (1, 0, 2, 3)).reshape(cout, -1)
    u = jnp.ones((cout,), jnp.float32) / jnp.sqrt(float(cout))
    v = None
    for _ in range(n_iters):
        v = wm.T @ u
        v = v / (jnp.linalg.norm(v) + 1e-12)
        u = wm @ v
        u = u / (jnp.linalg.norm(u) + 1e-12)
    sigma = u @ (wm @ v)
    return w / sigma


def init_params(key, channel_size, latent_size, dim_mults):
    ngf = 64
    hidden = [ngf * m for m in reversed(list(dim_mults))]
    keys = jax.random.split(key, len(hidden) + 1)
    blocks = []

    # block 0: ConvTranspose(latent, hidden[0], 4, 1, 0) on a 1x1 input — a
    # plain matmul whose rhs is w reordered to (Cin, (oy, ox, cout)).
    w = spectral_normalize(
        0.02 * jax.random.normal(keys[0], (latent_size, hidden[0], 4, 4),
                                 jnp.float32))
    b0 = w.transpose(0, 2, 3, 1).reshape(latent_size, 16 * hidden[0])
    blocks.append(dict(b=_prep_b(b0[None]), cout=hidden[0],
                       gamma=jnp.ones((hidden[0],), jnp.float32),
                       beta=jnp.zeros((hidden[0],), jnp.float32)))

    # middle blocks: ConvTranspose(cin, cout, 4, 2, 1) + BN + ReLU
    for k_i, (cin, cout) in zip(keys[1:-1], zip(hidden[:-1], hidden[1:])):
        w = spectral_normalize(
            0.02 * jax.random.normal(k_i, (cin, cout, 4, 4), jnp.float32))
        blocks.append(dict(b=_prep_b(_subpixel_weights(w)), cout=cout,
                           gamma=jnp.ones((cout,), jnp.float32),
                           beta=jnp.zeros((cout,), jnp.float32)))

    # final: ConvTranspose(ngf, channel_size, 4, 2, 1) + Sigmoid
    w = spectral_normalize(
        0.02 * jax.random.normal(keys[-1], (ngf, channel_size, 4, 4),
                                 jnp.float32))
    return dict(blocks=blocks, final_b=_prep_b(_subpixel_weights(w)),
                channel_size=channel_size)


def generator_forward(x_nchw, params):
    """Full Generator forward.  x_nchw: (N, latent, 1, 1).  Returns NCHW."""
    N = x_nchw.shape[0]
    blocks = params["blocks"]

    # ---- block 0: matmul form of the 1x1-input ConvTranspose; GEMM columns
    # are ordered (oy, ox, cout) so the result reshapes directly into NHWC.
    blk = blocks[0]
    c0 = blk["cout"]
    ncols = 16 * c0
    out, csum, csq = gemm(
        x_nchw.reshape(1, N, -1).astype(jnp.bfloat16), blk["b"],
        with_stats=True)
    _, Mp, Np = out.shape
    scale, shift = _bn_scale_shift(csum[:ncols].reshape(16, c0).sum(0),
                                   csq[:ncols].reshape(16, c0).sum(0),
                                   float(N * 16), blk["gamma"], blk["beta"])
    y = bn_relu(out.reshape(Mp, Np),
                jnp.pad(jnp.tile(scale, 16), (0, Np - ncols)),
                jnp.pad(jnp.tile(shift, 16), (0, Np - ncols)))
    h = y[:N, :ncols].reshape(N, 4, 4, c0)           # NHWC, bf16

    # ---- middle blocks: stride-2 ConvTranspose + BN(batch stats) + ReLU
    for blk in blocks[1:]:
        h = _conv_t_s2(h, blk["b"], blk["cout"],
                       gamma=blk["gamma"], beta=blk["beta"])

    # ---- final stride-2 ConvTranspose (ngf -> channel_size) + Sigmoid (f32)
    h = _conv_t_s2(h, params["final_b"], params["channel_size"],
                   activation="sigmoid")
    return h.transpose(0, 3, 1, 2)                   # NHWC -> NCHW (boundary)


if __name__ == "__main__":
    key = jax.random.PRNGKey(0)
    pkey, xkey = jax.random.split(key)

    batch = 2
    channel_size = 3
    latent_size = 32
    dim_mults = (1, 2, 4)   # same structure as default (1,2,4,8,16), kept small

    params = init_params(pkey, channel_size, latent_size, dim_mults)
    x = jax.random.normal(xkey, (batch, latent_size, 1, 1), jnp.float32)

    fwd = jax.jit(lambda inp: generator_forward(inp, params))
    out = jax.block_until_ready(fwd(x))

    # 1x1 -> 4 -> 8 -> 16 -> 32 spatial, sigmoid output in (0, 1)
    assert out.shape == (batch, channel_size, 32, 32), out.shape
    assert out.dtype == jnp.float32
    assert bool(jnp.all((out >= 0.0) & (out <= 1.0)))
    print("KERNEL_OK")
</pallas_src>

<mosaic_0001>
module attributes {stable_mosaic.version = 11 : i64} {
  func.func @_gemm_kernel(%arg0: i32, %arg1: i32, %arg2: i32, %arg3: memref<1x8x128xbf16, #tpu.memory_space<vmem>>, %arg4: memref<1x128x1024xbf16, #tpu.memory_space<vmem>>, %arg5: memref<1x8x1024xbf16, #tpu.memory_space<vmem>>, %arg6: memref<1x8x1024xf32, #tpu.memory_space<vmem>>, %arg7: memref<1x8x1024xf32, #tpu.memory_space<vmem>>) attributes {dimension_semantics = [#tpu.dimension_semantics<parallel>, #tpu.dimension_semantics<parallel>, #tpu.dimension_semantics<parallel>], iteration_bounds = array<i64: 1, 1, 4>, scalar_prefetch = 0 : i64, scratch_operands = 0 : i64, tpu.core_type = #tpu.core_type<tc>, window_params = [{transform_indices = @transform_0, window_bounds = array<i64: 1, 8, 128>}, {transform_indices = @transform_1, window_bounds = array<i64: 1, 128, 1024>}, {transform_indices = @transform_2, window_bounds = array<i64: 1, 8, 1024>}, {transform_indices = @transform_3, window_bounds = array<i64: 1, 8, 1024>}, {transform_indices = @transform_4, window_bounds = array<i64: 1, 8, 1024>}]} {
    %c0 = arith.constant 0 : index
    %c0_0 = arith.constant 0 : index
    %c0_1 = arith.constant 0 : index
    %0 = vector.load %arg3[%c0, %c0_0, %c0_1] : memref<1x8x128xbf16, #tpu.memory_space<vmem>>, vector<1x8x128xbf16>
    %1 = vector.shape_cast %0 : vector<1x8x128xbf16> to vector<8x128xbf16>
    %c0_2 = arith.constant 0 : index
    %c0_3 = arith.constant 0 : index
    %c0_4 = arith.constant 0 : index
    %2 = vector.load %arg4[%c0_2, %c0_3, %c0_4] : memref<1x128x1024xbf16, #tpu.memory_space<vmem>>, vector<1x128x1024xbf16>
    %3 = vector.shape_cast %2 : vector<1x128x1024xbf16> to vector<128x1024xbf16>
    %cst = arith.constant dense<0.000000e+00> : vector<8x1024xf32>
    %4 = tpu.matmul %1, %3, %cst {dimension_numbers = #tpu.dot_dimension_numbers<[1], [0], [0], [1], [0, 0, 1, 1], [], []>} : vector<8x128xbf16>, vector<128x1024xbf16>, vector<8x1024xf32> -> vector<8x1024xf32>
    %5 = arith.truncf %4 : vector<8x1024xf32> to vector<8x1024xbf16>
    %c0_5 = arith.constant 0 : index
    %c0_6 = arith.constant 0 : index
    %c0_7 = arith.constant 0 : index
    %6 = vector.load %arg5[%c0_5, %c0_6, %c0_7] : memref<1x8x1024xbf16, #tpu.memory_space<vmem>>, vector<1x8x1024xbf16>
    %7 = vector.shape_cast %6 : vector<1x8x1024xbf16> to vector<8x1024xbf16>
    %8 = vector.shape_cast %5 : vector<8x1024xbf16> to vector<1x8x1024xbf16>
    tpu.vector_store %arg5[%c0_5, %c0_6, %c0_7], %8 {strides = array<i32>} : memref<1x8x1024xbf16, #tpu.memory_space<vmem>>, vector<1x8x1024xbf16>,
    %c0_8 = arith.constant 0 : index
    %c0_9 = arith.constant 0 : index
    %c0_10 = arith.constant 0 : index
    %9 = vector.load %arg6[%c0_8, %c0_9, %c0_10] : memref<1x8x1024xf32, #tpu.memory_space<vmem>>, vector<1x8x1024xf32>
    %10 = vector.shape_cast %9 : vector<1x8x1024xf32> to vector<8x1024xf32>
    %11 = vector.shape_cast %4 : vector<8x1024xf32> to vector<1x8x1024xf32>
    tpu.vector_store %arg6[%c0_8, %c0_9, %c0_10], %11 {strides = array<i32>} : memref<1x8x1024xf32, #tpu.memory_space<vmem>>, vector<1x8x1024xf32>,
    %12 = arith.mulf %4, %4 : vector<8x1024xf32>
    %c0_11 = arith.constant 0 : index
    %c0_12 = arith.constant 0 : index
    %c0_13 = arith.constant 0 : index
    %13 = vector.load %arg7[%c0_11, %c0_12, %c0_13] : memref<1x8x1024xf32, #tpu.memory_space<vmem>>, vector<1x8x1024xf32>
    %14 = vector.shape_cast %13 : vector<1x8x1024xf32> to vector<8x1024xf32>
    %15 = vector.shape_cast %12 : vector<8x1024xf32> to vector<1x8x1024xf32>
    tpu.vector_store %arg7[%c0_11, %c0_12, %c0_13], %15 {strides = array<i32>} : memref<1x8x1024xf32, #tpu.memory_space<vmem>>, vector<1x8x1024xf32>,
    return
  }
  func.func @transform_0(%arg0: i32, %arg1: i32, %arg2: i32) -> (i32, i32, i32) {
    %c0_i32 = arith.constant 0 : i32
    %c0_i32_0 = arith.constant 0 : i32
    return %arg0, %arg1, %c0_i32 : i32, i32, i32
  }
  func.func @transform_1(%arg0: i32, %arg1: i32, %arg2: i32) -> (i32, i32, i32) {
    %c0_i32 = arith.constant 0 : i32
    %c0_i32_0 = arith.constant 0 : i32
    return %arg0, %c0_i32, %arg2 : i32, i32, i32
  }
  func.func @transform_2(%arg0: i32, %arg1: i32, %arg2: i32) -> (i32, i32, i32) {
    %c0_i32 = arith.constant 0 : i32
    return %arg0, %arg1, %arg2 : i32, i32, i32
  }
  func.func @transform_3(%arg0: i32, %arg1: i32, %arg2: i32) -> (i32, i32, i32) {
    %c0_i32 = arith.constant 0 : i32
    return %arg0, %arg1, %arg2 : i32, i32, i32
  }
  func.func @transform_4(%arg0: i32, %arg1: i32, %arg2: i32) -> (i32, i32, i32) {
    %c0_i32 = arith.constant 0 : i32
    return %arg0, %arg1, %arg2 : i32, i32, i32
  }
}

module attributes {stable_mosaic.version = 11 : i64} {
  func.func @_bn_relu_kernel(%arg0: i32, %arg1: memref<8x4096xbf16, #tpu.memory_space<vmem>>, %arg2: memref<1x4096xf32, #tpu.memory_space<vmem>>, %arg3: memref<1x4096xf32, #tpu.memory_space<vmem>>, %arg4: memref<8x4096xbf16, #tpu.memory_space<vmem>>) attributes {dimension_semantics = [#tpu.dimension_semantics<parallel>], iteration_bounds = array<i64: 1>, scalar_prefetch = 0 : i64, scratch_operands = 0 : i64, tpu.core_type = #tpu.core_type<tc>, window_params = [{transform_indices = @transform_0, window_bounds = array<i64: 8, 4096>}, {pipeline_mode = #tpu.pipeline_mode<synchronous>, transform_indices = @transform_1, window_bounds = array<i64: 1, 4096>}, {pipeline_mode = #tpu.pipeline_mode<synchronous>, transform_indices = @transform_2, window_bounds = array<i64: 1, 4096>}, {transform_indices = @transform_3, window_bounds = array<i64: 8, 4096>}]} {
    %c0 = arith.constant 0 : index
    %c0_0 = arith.constant 0 : index
    %0 = vector.load %arg1[%c0, %c0_0] : memref<8x4096xbf16, #tpu.memory_space<vmem>>, vector<8x4096xbf16>
    %1 = arith.extf %0 : vector<8x4096xbf16> to vector<8x4096xf32>
    %c0_1 = arith.constant 0 : index
    %c0_2 = arith.constant 0 : index
    %2 = vector.load %arg2[%c0_1, %c0_2] : memref<1x4096xf32, #tpu.memory_space<vmem>>, vector<1x4096xf32>
    %3 = vector.broadcast %2 : vector<1x4096xf32> to vector<8x4096xf32>
    %4 = arith.mulf %1, %3 : vector<8x4096xf32>
    %c0_3 = arith.constant 0 : index
    %c0_4 = arith.constant 0 : index
    %5 = vector.load %arg3[%c0_3, %c0_4] : memref<1x4096xf32, #tpu.memory_space<vmem>>, vector<1x4096xf32>
    %6 = vector.broadcast %5 : vector<1x4096xf32> to vector<8x4096xf32>
    %7 = arith.addf %4, %6 : vector<8x4096xf32>
    %cst = arith.constant 0.000000e+00 : f32
    %8 = vector.broadcast %cst : f32 to vector<8x4096xf32>
    %9 = arith.maximumf %7, %8 : vector<8x4096xf32>
    %10 = arith.truncf %9 : vector<8x4096xf32> to vector<8x4096xbf16>
    %c0_5 = arith.constant 0 : index
    %c0_6 = arith.constant 0 : index
    %11 = vector.load %arg4[%c0_5, %c0_6] : memref<8x4096xbf16, #tpu.memory_space<vmem>>, vector<8x4096xbf16>
    tpu.vector_store %arg4[%c0_5, %c0_6], %10 {strides = array<i32>} : memref<8x4096xbf16, #tpu.memory_space<vmem>>, vector<8x4096xbf16>,
    return
  }
  func.func @transform_0(%arg0: i32) -> (i32, i32) {
    %c0_i32 = arith.constant 0 : i32
    %c0_i32_0 = arith.constant 0 : i32
    return %arg0, %c0_i32 : i32, i32
  }
  func.func @transform_1(%arg0: i32) -> (i32, i32) {
    %c0_i32 = arith.constant 0 : i32
    %c0_i32_0 = arith.constant 0 : i32
    %c0_i32_1 = arith.constant 0 : i32
    return %c0_i32, %c0_i32_0 : i32, i32
  }
  func.func @transform_2(%arg0: i32) -> (i32, i32) {
    %c0_i32 = arith.constant 0 : i32
    %c0_i32_0 = arith.constant 0 : i32
    %c0_i32_1 = arith.constant 0 : i32
    return %c0_i32, %c0_i32_0 : i32, i32
  }
  func.func @transform_3(%arg0: i32) -> (i32, i32) {
    %c0_i32 = arith.constant 0 : i32
    %c0_i32_0 = arith.constant 0 : i32
    return %arg0, %c0_i32 : i32, i32
  }
}

module attributes {stable_mosaic.version = 11 : i64} {
  func.func @_bn_relu_kernel(%arg0: i32, %arg1: memref<128x128xbf16, #tpu.memory_space<vmem>>, %arg2: memref<1x128xf32, #tpu.memory_space<vmem>>, %arg3: memref<1x128xf32, #tpu.memory_space<vmem>>, %arg4: memref<128x128xbf16, #tpu.memory_space<vmem>>) attributes {dimension_semantics = [#tpu.dimension_semantics<parallel>], iteration_bounds = array<i64: 1>, scalar_prefetch = 0 : i64, scratch_operands = 0 : i64, tpu.core_type = #tpu.core_type<tc>, window_params = [{transform_indices = @transform_0, window_bounds = array<i64: 128, 128>}, {pipeline_mode = #tpu.pipeline_mode<synchronous>, transform_indices = @transform_1, window_bounds = array<i64: 1, 128>}, {pipeline_mode = #tpu.pipeline_mode<synchronous>, transform_indices = @transform_2, window_bounds = array<i64: 1, 128>}, {transform_indices = @transform_3, window_bounds = array<i64: 128, 128>}]} {
    %c0 = arith.constant 0 : index
    %c0_0 = arith.constant 0 : index
    %0 = vector.load %arg1[%c0, %c0_0] : memref<128x128xbf16, #tpu.memory_space<vmem>>, vector<128x128xbf16>
    %1 = arith.extf %0 : vector<128x128xbf16> to vector<128x128xf32>
    %c0_1 = arith.constant 0 : index
    %c0_2 = arith.constant 0 : index
    %2 = vector.load %arg2[%c0_1, %c0_2] : memref<1x128xf32, #tpu.memory_space<vmem>>, vector<1x128xf32>
    %3 = vector.broadcast %2 : vector<1x128xf32> to vector<128x128xf32>
    %4 = arith.mulf %1, %3 : vector<128x128xf32>
    %c0_3 = arith.constant 0 : index
    %c0_4 = arith.constant 0 : index
    %5 = vector.load %arg3[%c0_3, %c0_4] : memref<1x128xf32, #tpu.memory_space<vmem>>, vector<1x128xf32>
    %6 = vector.broadcast %5 : vector<1x128xf32> to vector<128x128xf32>
    %7 = arith.addf %4, %6 : vector<128x128xf32>
    %cst = arith.constant 0.000000e+00 : f32
    %8 = vector.broadcast %cst : f32 to vector<128x128xf32>
    %9 = arith.maximumf %7, %8 : vector<128x128xf32>
    %10 = arith.truncf %9 : vector<128x128xf32> to vector<128x128xbf16>
    %c0_5 = arith.constant 0 : index
    %c0_6 = arith.constant 0 : index
    %11 = vector.load %arg4[%c0_5, %c0_6] : memref<128x128xbf16, #tpu.memory_space<vmem>>, vector<128x128xbf16>
    tpu.vector_store %arg4[%c0_5, %c0_6], %10 {strides = array<i32>} : memref<128x128xbf16, #tpu.memory_space<vmem>>, vector<128x128xbf16>,
    return
  }
  func.func @transform_0(%arg0: i32) -> (i32, i32) {
    %c0_i32 = arith.constant 0 : i32
    %c0_i32_0 = arith.constant 0 : i32
    return %arg0, %c0_i32 : i32, i32
  }
  func.func @transform_1(%arg0: i32) -> (i32, i32) {
    %c0_i32 = arith.constant 0 : i32
    %c0_i32_0 = arith.constant 0 : i32
    %c0_i32_1 = arith.constant 0 : i32
    return %c0_i32, %c0_i32_0 : i32, i32
  }
  func.func @transform_2(%arg0: i32) -> (i32, i32) {
    %c0_i32 = arith.constant 0 : i32
    %c0_i32_0 = arith.constant 0 : i32
    %c0_i32_1 = arith.constant 0 : i32
    return %c0_i32, %c0_i32_0 : i32, i32
  }
  func.func @transform_3(%arg0: i32) -> (i32, i32) {
    %c0_i32 = arith.constant 0 : i32
    %c0_i32_0 = arith.constant 0 : i32
    return %arg0, %c0_i32 : i32, i32
  }
}

module attributes {stable_mosaic.version = 11 : i64} {
  func.func @_gemm_kernel(%arg0: i32, %arg1: i32, %arg2: i32, %arg3: i32, %arg4: memref<1x32x512xbf16, #tpu.memory_space<vmem>>, %arg5: memref<1x512x128xbf16, #tpu.memory_space<vmem>>, %arg6: memref<1x32x128xbf16, #tpu.memory_space<vmem>>, %arg7: memref<1x8x128xf32, #tpu.memory_space<vmem>>, %arg8: memref<1x8x128xf32, #tpu.memory_space<vmem>>, %arg9: memref<32x128xf32, #tpu.memory_space<vmem>>) attributes {dimension_semantics = [#tpu.dimension_semantics<parallel>, #tpu.dimension_semantics<parallel>, #tpu.dimension_semantics<parallel>, #tpu.dimension_semantics<arbitrary>], iteration_bounds = array<i64: 4, 1, 1, 2>, scalar_prefetch = 0 : i64, scratch_operands = 1 : i64, tpu.core_type = #tpu.core_type<tc>, window_params = [{transform_indices = @transform_0, window_bounds = array<i64: 1, 32, 512>}, {transform_indices = @transform_1, window_bounds = array<i64: 1, 512, 128>}, {transform_indices = @transform_2, window_bounds = array<i64: 1, 32, 128>}, {transform_indices = @transform_3, window_bounds = array<i64: 1, 8, 128>}, {transform_indices = @transform_4, window_bounds = array<i64: 1, 8, 128>}]} {
    %c0_i32 = arith.constant 0 : i32
    %0 = arith.cmpi eq, %arg3, %c0_i32 : i32
    %1 = arith.extui %0 : i1 to i32
    %c0_i32_0 = arith.constant 0 : i32
    %2 = arith.cmpi ne, %1, %c0_i32_0 : i32
    scf.if %2 {
      %cst_11 = arith.constant 0.000000e+00 : f32
      %14 = vector.broadcast %cst_11 : f32 to vector<32x128xf32>
      %c0_12 = arith.constant 0 : index
      %c0_13 = arith.constant 0 : index
      %15 = vector.load %arg9[%c0_12, %c0_13] : memref<32x128xf32, #tpu.memory_space<vmem>>, vector<32x128xf32>
      tpu.vector_store %arg9[%c0_12, %c0_13], %14 {strides = array<i32>} : memref<32x128xf32, #tpu.memory_space<vmem>>, vector<32x128xf32>,
    } else {
    }
    %c0 = arith.constant 0 : index
    %c0_1 = arith.constant 0 : index
    %3 = vector.load %arg9[%c0, %c0_1] : memref<32x128xf32, #tpu.memory_space<vmem>>, vector<32x128xf32>
    %c0_2 = arith.constant 0 : index
    %c0_3 = arith.constant 0 : index
    %c0_4 = arith.constant 0 : index
    %4 = vector.load %arg4[%c0_2, %c0_3, %c0_4] : memref<1x32x512xbf16, #tpu.memory_space<vmem>>, vector<1x32x512xbf16>
    %5 = vector.shape_cast %4 : vector<1x32x512xbf16> to vector<32x512xbf16>
    %c0_5 = arith.constant 0 : index
    %c0_6 = arith.constant 0 : index
    %c0_7 = arith.constant 0 : index
    %6 = vector.load %arg5[%c0_5, %c0_6, %c0_7] : memref<1x512x128xbf16, #tpu.memory_space<vmem>>, vector<1x512x128xbf16>
    %7 = vector.shape_cast %6 : vector<1x512x128xbf16> to vector<512x128xbf16>
    %cst = arith.constant dense<0.000000e+00> : vector<32x128xf32>
    %8 = tpu.matmul %5, %7, %cst {dimension_numbers = #tpu.dot_dimension_numbers<[1], [0], [0], [1], [0, 0, 1, 1], [], []>} : vector<32x512xbf16>, vector<512x128xbf16>, vector<32x128xf32> -> vector<32x128xf32>
    %9 = arith.addf %3, %8 : vector<32x128xf32>
    %c0_8 = arith.constant 0 : index
    %c0_9 = arith.constant 0 : index
    %10 = vector.load %arg9[%c0_8, %c0_9] : memref<32x128xf32, #tpu.memory_space<vmem>>, vector<32x128xf32>
    tpu.vector_store %arg9[%c0_8, %c0_9], %9 {strides = array<i32>} : memref<32x128xf32, #tpu.memory_space<vmem>>, vector<32x128xf32>,
    %c1_i32 = arith.constant 1 : i32
    %11 = arith.cmpi eq, %arg3, %c1_i32 : i32
    %12 = arith.extui %11 : i1 to i32
    %c0_i32_10 = arith.constant 0 : i32
    %13 = arith.cmpi ne, %12, %c0_i32_10 : i32
    scf.if %13 {
      %c0_11 = arith.constant 0 : index
      %c0_12 = arith.constant 0 : index
      %14 = vector.load %arg9[%c0_11, %c0_12] : memref<32x128xf32, #tpu.memory_space<vmem>>, vector<32x128xf32>
      %15 = arith.truncf %14 : vector<32x128xf32> to vector<32x128xbf16>
      %c0_13 = arith.constant 0 : index
      %c0_14 = arith.constant 0 : index
      %c0_15 = arith.constant 0 : index
      %16 = vector.load %arg6[%c0_13, %c0_14, %c0_15] : memref<1x32x128xbf16, #tpu.memory_space<vmem>>, vector<1x32x128xbf16>
      %17 = vector.shape_cast %16 : vector<1x32x128xbf16> to vector<32x128xbf16>
      %18 = vector.shape_cast %15 : vector<32x128xbf16> to vector<1x32x128xbf16>
      tpu.vector_store %arg6[%c0_13, %c0_14, %c0_15], %18 {strides = array<i32>} : memref<1x32x128xbf16, #tpu.memory_space<vmem>>, vector<1x32x128xbf16>,
      %19 = vector.extract_strided_slice %14 {offsets = [0, 0], sizes = [8, 128], strides = [1, 1]} : vector<32x128xf32> to vector<8x128xf32>
      %20 = vector.extract_strided_slice %14 {offsets = [8, 0], sizes = [8, 128], strides = [1, 1]} : vector<32x128xf32> to vector<8x128xf32>
      %21 = vector.extract_strided_slice %14 {offsets = [16, 0], sizes = [8, 128], strides = [1, 1]} : vector<32x128xf32> to vector<8x128xf32>
      %22 = vector.extract_strided_slice %14 {offsets = [24, 0], sizes = [8, 128], strides = [1, 1]} : vector<32x128xf32> to vector<8x128xf32>
      %23 = arith.addf %19, %20 : vector<8x128xf32>
      %24 = arith.addf %21, %22 : vector<8x128xf32>
      %25 = arith.addf %23, %24 : vector<8x128xf32>
      %c0_16 = arith.constant 0 : index
      %c0_17 = arith.constant 0 : index
      %c0_18 = arith.constant 0 : index
      %26 = vector.load %arg7[%c0_16, %c0_17, %c0_18] : memref<1x8x128xf32, #tpu.memory_space<vmem>>, vector<1x8x128xf32>
      %27 = vector.shape_cast %26 : vector<1x8x128xf32> to vector<8x128xf32>
      %28 = vector.shape_cast %25 : vector<8x128xf32> to vector<1x8x128xf32>
      tpu.vector_store %arg7[%c0_16, %c0_17, %c0_18], %28 {strides = array<i32>} : memref<1x8x128xf32, #tpu.memory_space<vmem>>, vector<1x8x128xf32>,
      %29 = arith.mulf %19, %19 : vector<8x128xf32>
      %30 = arith.mulf %20, %20 : vector<8x128xf32>
      %31 = arith.mulf %21, %21 : vector<8x128xf32>
      %32 = arith.mulf %22, %22 : vector<8x128xf32>
      %33 = arith.addf %29, %30 : vector<8x128xf32>
      %34 = arith.addf %31, %32 : vector<8x128xf32>
      %35 = arith.addf %33, %34 : vector<8x128xf32>
      %c0_19 = arith.constant 0 : index
      %c0_20 = arith.constant 0 : index
      %c0_21 = arith.constant 0 : index
      %36 = vector.load %arg8[%c0_19, %c0_20, %c0_21] : memref<1x8x128xf32, #tpu.memory_space<vmem>>, vector<1x8x128xf32>
      %37 = vector.shape_cast %36 : vector<1x8x128xf32> to vector<8x128xf32>
      %38 = vector.shape_cast %35 : vector<8x128xf32> to vector<1x8x128xf32>
      tpu.vector_store %arg8[%c0_19, %c0_20, %c0_21], %38 {strides = array<i32>} : memref<1x8x128xf32, #tpu.memory_space<vmem>>, vector<1x8x128xf32>,
    } else {
    }
    return
  }
  func.func @transform_0(%arg0: i32, %arg1: i32, %arg2: i32, %arg3: i32) -> (i32, i32, i32) {
    %c0_i32 = arith.constant 0 : i32
    return %arg0, %arg1, %arg3 : i32, i32, i32
  }
  func.func @transform_1(%arg0: i32, %arg1: i32, %arg2: i32, %arg3: i32) -> (i32, i32, i32) {
    %c0_i32 = arith.constant 0 : i32
    return %arg0, %arg3, %arg2 : i32, i32, i32
  }
  func.func @transform_2(%arg0: i32, %arg1: i32, %arg2: i32, %arg3: i32) -> (i32, i32, i32) {
    %c0_i32 = arith.constant 0 : i32
    return %arg0, %arg1, %arg2 : i32, i32, i32
  }
  func.func @transform_3(%arg0: i32, %arg1: i32, %arg2: i32, %arg3: i32) -> (i32, i32, i32) {
    %c0_i32 = arith.constant 0 : i32
    return %arg0, %arg1, %arg2 : i32, i32, i32
  }
  func.func @transform_4(%arg0: i32, %arg1: i32, %arg2: i32, %arg3: i32) -> (i32, i32, i32) {
    %c0_i32 = arith.constant 0 : i32
    return %arg0, %arg1, %arg2 : i32, i32, i32
  }
}

module attributes {stable_mosaic.version = 11 : i64} {
  func.func @_bn_relu_kernel(%arg0: i32, %arg1: memref<512x128xbf16, #tpu.memory_space<vmem>>, %arg2: memref<1x128xf32, #tpu.memory_space<vmem>>, %arg3: memref<1x128xf32, #tpu.memory_space<vmem>>, %arg4: memref<512x128xbf16, #tpu.memory_space<vmem>>) attributes {dimension_semantics = [#tpu.dimension_semantics<parallel>], iteration_bounds = array<i64: 1>, scalar_prefetch = 0 : i64, scratch_operands = 0 : i64, tpu.core_type = #tpu.core_type<tc>, window_params = [{transform_indices = @transform_0, window_bounds = array<i64: 512, 128>}, {pipeline_mode = #tpu.pipeline_mode<synchronous>, transform_indices = @transform_1, window_bounds = array<i64: 1, 128>}, {pipeline_mode = #tpu.pipeline_mode<synchronous>, transform_indices = @transform_2, window_bounds = array<i64: 1, 128>}, {transform_indices = @transform_3, window_bounds = array<i64: 512, 128>}]} {
    %c0 = arith.constant 0 : index
    %c0_0 = arith.constant 0 : index
    %0 = vector.load %arg1[%c0, %c0_0] : memref<512x128xbf16, #tpu.memory_space<vmem>>, vector<512x128xbf16>
    %1 = arith.extf %0 : vector<512x128xbf16> to vector<512x128xf32>
    %c0_1 = arith.constant 0 : index
    %c0_2 = arith.constant 0 : index
    %2 = vector.load %arg2[%c0_1, %c0_2] : memref<1x128xf32, #tpu.memory_space<vmem>>, vector<1x128xf32>
    %3 = vector.broadcast %2 : vector<1x128xf32> to vector<512x128xf32>
    %4 = arith.mulf %1, %3 : vector<512x128xf32>
    %c0_3 = arith.constant 0 : index
    %c0_4 = arith.constant 0 : index
    %5 = vector.load %arg3[%c0_3, %c0_4] : memref<1x128xf32, #tpu.memory_space<vmem>>, vector<1x128xf32>
    %6 = vector.broadcast %5 : vector<1x128xf32> to vector<512x128xf32>
    %7 = arith.addf %4, %6 : vector<512x128xf32>
    %cst = arith.constant 0.000000e+00 : f32
    %8 = vector.broadcast %cst : f32 to vector<512x128xf32>
    %9 = arith.maximumf %7, %8 : vector<512x128xf32>
    %10 = arith.truncf %9 : vector<512x128xf32> to vector<512x128xbf16>
    %c0_5 = arith.constant 0 : index
    %c0_6 = arith.constant 0 : index
    %11 = vector.load %arg4[%c0_5, %c0_6] : memref<512x128xbf16, #tpu.memory_space<vmem>>, vector<512x128xbf16>
    tpu.vector_store %arg4[%c0_5, %c0_6], %10 {strides = array<i32>} : memref<512x128xbf16, #tpu.memory_space<vmem>>, vector<512x128xbf16>,
    return
  }
  func.func @transform_0(%arg0: i32) -> (i32, i32) {
    %c0_i32 = arith.constant 0 : i32
    %c0_i32_0 = arith.constant 0 : i32
    return %arg0, %c0_i32 : i32, i32
  }
  func.func @transform_1(%arg0: i32) -> (i32, i32) {
    %c0_i32 = arith.constant 0 : i32
    %c0_i32_0 = arith.constant 0 : i32
    %c0_i32_1 = arith.constant 0 : i32
    return %c0_i32, %c0_i32_0 : i32, i32
  }
  func.func @transform_2(%arg0: i32) -> (i32, i32) {
    %c0_i32 = arith.constant 0 : i32
    %c0_i32_0 = arith.constant 0 : i32
    %c0_i32_1 = arith.constant 0 : i32
    return %c0_i32, %c0_i32_0 : i32, i32
  }
  func.func @transform_3(%arg0: i32) -> (i32, i32) {
    %c0_i32 = arith.constant 0 : i32
    %c0_i32_0 = arith.constant 0 : i32
    return %arg0, %c0_i32 : i32, i32
  }
}

module attributes {stable_mosaic.version = 11 : i64} {
  func.func @_gemm_kernel(%arg0: i32, %arg1: i32, %arg2: i32, %arg3: memref<1x128x512xbf16, #tpu.memory_space<vmem>>, %arg4: memref<1x512x128xbf16, #tpu.memory_space<vmem>>, %arg5: memref<1x128x128xbf16, #tpu.memory_space<vmem>>, %arg6: memref<1x8x128xf32, #tpu.memory_space<vmem>>, %arg7: memref<1x8x128xf32, #tpu.memory_space<vmem>>) attributes {dimension_semantics = [#tpu.dimension_semantics<parallel>, #tpu.dimension_semantics<parallel>, #tpu.dimension_semantics<parallel>], iteration_bounds = array<i64: 4, 1, 1>, scalar_prefetch = 0 : i64, scratch_operands = 0 : i64, tpu.core_type = #tpu.core_type<tc>, window_params = [{transform_indices = @transform_0, window_bounds = array<i64: 1, 128, 512>}, {transform_indices = @transform_1, window_bounds = array<i64: 1, 512, 128>}, {transform_indices = @transform_2, window_bounds = array<i64: 1, 128, 128>}, {transform_indices = @transform_3, window_bounds = array<i64: 1, 8, 128>}, {transform_indices = @transform_4, window_bounds = array<i64: 1, 8, 128>}]} {
    %c0 = arith.constant 0 : index
    %c0_0 = arith.constant 0 : index
    %c0_1 = arith.constant 0 : index
    %0 = vector.load %arg3[%c0, %c0_0, %c0_1] : memref<1x128x512xbf16, #tpu.memory_space<vmem>>, vector<1x128x512xbf16>
    %1 = vector.shape_cast %0 : vector<1x128x512xbf16> to vector<128x512xbf16>
    %c0_2 = arith.constant 0 : index
    %c0_3 = arith.constant 0 : index
    %c0_4 = arith.constant 0 : index
    %2 = vector.load %arg4[%c0_2, %c0_3, %c0_4] : memref<1x512x128xbf16, #tpu.memory_space<vmem>>, vector<1x512x128xbf16>
    %3 = vector.shape_cast %2 : vector<1x512x128xbf16> to vector<512x128xbf16>
    %cst = arith.constant dense<0.000000e+00> : vector<128x128xf32>
    %4 = tpu.matmul %1, %3, %cst {dimension_numbers = #tpu.dot_dimension_numbers<[1], [0], [0], [1], [0, 0, 1, 1], [], []>} : vector<128x512xbf16>, vector<512x128xbf16>, vector<128x128xf32> -> vector<128x128xf32>
    %5 = arith.truncf %4 : vector<128x128xf32> to vector<128x128xbf16>
    %c0_5 = arith.constant 0 : index
    %c0_6 = arith.constant 0 : index
    %c0_7 = arith.constant 0 : index
    %6 = vector.load %arg5[%c0_5, %c0_6, %c0_7] : memref<1x128x128xbf16, #tpu.memory_space<vmem>>, vector<1x128x128xbf16>
    %7 = vector.shape_cast %6 : vector<1x128x128xbf16> to vector<128x128xbf16>
    %8 = vector.shape_cast %5 : vector<128x128xbf16> to vector<1x128x128xbf16>
    tpu.vector_store %arg5[%c0_5, %c0_6, %c0_7], %8 {strides = array<i32>} : memref<1x128x128xbf16, #tpu.memory_space<vmem>>, vector<1x128x128xbf16>,
    %9 = vector.extract_strided_slice %4 {offsets = [0, 0], sizes = [8, 128], strides = [1, 1]} : vector<128x128xf32> to vector<8x128xf32>
    %10 = vector.extract_strided_slice %4 {offsets = [8, 0], sizes = [8, 128], strides = [1, 1]} : vector<128x128xf32> to vector<8x128xf32>
    %11 = vector.extract_strided_slice %4 {offsets = [16, 0], sizes = [8, 128], strides = [1, 1]} : vector<128x128xf32> to vector<8x128xf32>
    %12 = vector.extract_strided_slice %4 {offsets = [24, 0], sizes = [8, 128], strides = [1, 1]} : vector<128x128xf32> to vector<8x128xf32>
    %13 = vector.extract_strided_slice %4 {offsets = [32, 0], sizes = [8, 128], strides = [1, 1]} : vector<128x128xf32> to vector<8x128xf32>
    %14 = vector.extract_strided_slice %4 {offsets = [40, 0], sizes = [8, 128], strides = [1, 1]} : vector<128x128xf32> to vector<8x128xf32>
    %15 = vector.extract_strided_slice %4 {offsets = [48, 0], sizes = [8, 128], strides = [1, 1]} : vector<128x128xf32> to vector<8x128xf32>
    %16 = vector.extract_strided_slice %4 {offsets = [56, 0], sizes = [8, 128], strides = [1, 1]} : vector<128x128xf32> to vector<8x128xf32>
    %17 = vector.extract_strided_slice %4 {offsets = [64, 0], sizes = [8, 128], strides = [1, 1]} : vector<128x128xf32> to vector<8x128xf32>
    %18 = vector.extract_strided_slice %4 {offsets = [72, 0], sizes = [8, 128], strides = [1, 1]} : vector<128x128xf32> to vector<8x128xf32>
    %19 = vector.extract_strided_slice %4 {offsets = [80, 0], sizes = [8, 128], strides = [1, 1]} : vector<128x128xf32> to vector<8x128xf32>
    %20 = vector.extract_strided_slice %4 {offsets = [88, 0], sizes = [8, 128], strides = [1, 1]} : vector<128x128xf32> to vector<8x128xf32>
    %21 = vector.extract_strided_slice %4 {offsets = [96, 0], sizes = [8, 128], strides = [1, 1]} : vector<128x128xf32> to vector<8x128xf32>
    %22 = vector.extract_strided_slice %4 {offsets = [104, 0], sizes = [8, 128], strides = [1, 1]} : vector<128x128xf32> to vector<8x128xf32>
    %23 = vector.extract_strided_slice %4 {offsets = [112, 0], sizes = [8, 128], strides = [1, 1]} : vector<128x128xf32> to vector<8x128xf32>
    %24 = vector.extract_strided_slice %4 {offsets = [120, 0], sizes = [8, 128], strides = [1, 1]} : vector<128x128xf32> to vector<8x128xf32>
    %25 = arith.addf %9, %10 : vector<8x128xf32>
    %26 = arith.addf %11, %12 : vector<8x128xf32>
    %27 = arith.addf %13, %14 : vector<8x128xf32>
    %28 = arith.addf %15, %16 : vector<8x128xf32>
    %29 = arith.addf %17, %18 : vector<8x128xf32>
    %30 = arith.addf %19, %20 : vector<8x128xf32>
    %31 = arith.addf %21, %22 : vector<8x128xf32>
    %32 = arith.addf %23, %24 : vector<8x128xf32>
    %33 = arith.addf %25, %26 : vector<8x128xf32>
    %34 = arith.addf %27, %28 : vector<8x128xf32>
    %35 = arith.addf %29, %30 : vector<8x128xf32>
    %36 = arith.addf %31, %32 : vector<8x128xf32>
    %37 = arith.addf %33, %34 : vector<8x128xf32>
    %38 = arith.addf %35, %36 : vector<8x128xf32>
    %39 = arith.addf %37, %38 : vector<8x128xf32>
    %c0_8 = arith.constant 0 : index
    %c0_9 = arith.constant 0 : index
    %c0_10 = arith.constant 0 : index
    %40 = vector.load %arg6[%c0_8, %c0_9, %c0_10] : memref<1x8x128xf32, #tpu.memory_space<vmem>>, vector<1x8x128xf32>
    %41 = vector.shape_cast %40 : vector<1x8x128xf32> to vector<8x128xf32>
    %42 = vector.shape_cast %39 : vector<8x128xf32> to vector<1x8x128xf32>
    tpu.vector_store %arg6[%c0_8, %c0_9, %c0_10], %42 {strides = array<i32>} : memref<1x8x128xf32, #tpu.memory_space<vmem>>, vector<1x8x128xf32>,
    %43 = arith.mulf %9, %9 : vector<8x128xf32>
    %44 = arith.mulf %10, %10 : vector<8x128xf32>
    %45 = arith.mulf %11, %11 : vector<8x128xf32>
    %46 = arith.mulf %12, %12 : vector<8x128xf32>
    %47 = arith.mulf %13, %13 : vector<8x128xf32>
    %48 = arith.mulf %14, %14 : vector<8x128xf32>
    %49 = arith.mulf %15, %15 : vector<8x128xf32>
    %50 = arith.mulf %16, %16 : vector<8x128xf32>
    %51 = arith.mulf %17, %17 : vector<8x128xf32>
    %52 = arith.mulf %18, %18 : vector<8x128xf32>
    %53 = arith.mulf %19, %19 : vector<8x128xf32>
    %54 = arith.mulf %20, %20 : vector<8x128xf32>
    %55 = arith.mulf %21, %21 : vector<8x128xf32>
    %56 = arith.mulf %22, %22 : vector<8x128xf32>
    %57 = arith.mulf %23, %23 : vector<8x128xf32>
    %58 = arith.mulf %24, %24 : vector<8x128xf32>
    %59 = arith.addf %43, %44 : vector<8x128xf32>
    %60 = arith.addf %45, %46 : vector<8x128xf32>
    %61 = arith.addf %47, %48 : vector<8x128xf32>
    %62 = arith.addf %49, %50 : vector<8x128xf32>
    %63 = arith.addf %51, %52 : vector<8x128xf32>
    %64 = arith.addf %53, %54 : vector<8x128xf32>
    %65 = arith.addf %55, %56 : vector<8x128xf32>
    %66 = arith.addf %57, %58 : vector<8x128xf32>
    %67 = arith.addf %59, %60 : vector<8x128xf32>
    %68 = arith.addf %61, %62 : vector<8x128xf32>
    %69 = arith.addf %63, %64 : vector<8x128xf32>
    %70 = arith.addf %65, %66 : vector<8x128xf32>
    %71 = arith.addf %67, %68 : vector<8x128xf32>
    %72 = arith.addf %69, %70 : vector<8x128xf32>
    %73 = arith.addf %71, %72 : vector<8x128xf32>
    %c0_11 = arith.constant 0 : index
    %c0_12 = arith.constant 0 : index
    %c0_13 = arith.constant 0 : index
    %74 = vector.load %arg7[%c0_11, %c0_12, %c0_13] : memref<1x8x128xf32, #tpu.memory_space<vmem>>, vector<1x8x128xf32>
    %75 = vector.shape_cast %74 : vector<1x8x128xf32> to vector<8x128xf32>
    %76 = vector.shape_cast %73 : vector<8x128xf32> to vector<1x8x128xf32>
    tpu.vector_store %arg7[%c0_11, %c0_12, %c0_13], %76 {strides = array<i32>} : memref<1x8x128xf32, #tpu.memory_space<vmem>>, vector<1x8x128xf32>,
    return
  }
  func.func @transform_0(%arg0: i32, %arg1: i32, %arg2: i32) -> (i32, i32, i32) {
    %c0_i32 = arith.constant 0 : i32
    %c0_i32_0 = arith.constant 0 : i32
    return %arg0, %arg1, %c0_i32 : i32, i32, i32
  }
  func.func @transform_1(%arg0: i32, %arg1: i32, %arg2: i32) -> (i32, i32, i32) {
    %c0_i32 = arith.constant 0 : i32
    %c0_i32_0 = arith.constant 0 : i32
    return %arg0, %c0_i32, %arg2 : i32, i32, i32
  }
  func.func @transform_2(%arg0: i32, %arg1: i32, %arg2: i32) -> (i32, i32, i32) {
    %c0_i32 = arith.constant 0 : i32
    return %arg0, %arg1, %arg2 : i32, i32, i32
  }
  func.func @transform_3(%arg0: i32, %arg1: i32, %arg2: i32) -> (i32, i32, i32) {
    %c0_i32 = arith.constant 0 : i32
    return %arg0, %arg1, %arg2 : i32, i32, i32
  }
  func.func @transform_4(%arg0: i32, %arg1: i32, %arg2: i32) -> (i32, i32, i32) {
    %c0_i32 = arith.constant 0 : i32
    return %arg0, %arg1, %arg2 : i32, i32, i32
  }
}

module attributes {stable_mosaic.version = 11 : i64} {
  func.func @_gemm_kernel(%arg0: i32, %arg1: i32, %arg2: i32, %arg3: memref<1x256x256xbf16, #tpu.memory_space<vmem>>, %arg4: memref<1x256x128xbf16, #tpu.memory_space<vmem>>, %arg5: memref<1x256x128xf32, #tpu.memory_space<vmem>>) attributes {dimension_semantics = [#tpu.dimension_semantics<parallel>, #tpu.dimension_semantics<parallel>, #tpu.dimension_semantics<parallel>], iteration_bounds = array<i64: 4, 2, 1>, scalar_prefetch = 0 : i64, scratch_operands = 0 : i64, tpu.core_type = #tpu.core_type<tc>, window_params = [{transform_indices = @transform_0, window_bounds = array<i64: 1, 256, 256>}, {transform_indices = @transform_1, window_bounds = array<i64: 1, 256, 128>}, {transform_indices = @transform_2, window_bounds = array<i64: 1, 256, 128>}]} {
    %c0 = arith.constant 0 : index
    %c0_0 = arith.constant 0 : index
    %c0_1 = arith.constant 0 : index
    %0 = vector.load %arg3[%c0, %c0_0, %c0_1] : memref<1x256x256xbf16, #tpu.memory_space<vmem>>, vector<1x256x256xbf16>
    %1 = vector.shape_cast %0 : vector<1x256x256xbf16> to vector<256x256xbf16>
    %c0_2 = arith.constant 0 : index
    %c0_3 = arith.constant 0 : index
    %c0_4 = arith.constant 0 : index
    %2 = vector.load %arg4[%c0_2, %c0_3, %c0_4] : memref<1x256x128xbf16, #tpu.memory_space<vmem>>, vector<1x256x128xbf16>
    %3 = vector.shape_cast %2 : vector<1x256x128xbf16> to vector<256x128xbf16>
    %cst = arith.constant dense<0.000000e+00> : vector<256x128xf32>
    %4 = tpu.matmul %1, %3, %cst {dimension_numbers = #tpu.dot_dimension_numbers<[1], [0], [0], [1], [0, 0, 1, 1], [], []>} : vector<256x256xbf16>, vector<256x128xbf16>, vector<256x128xf32> -> vector<256x128xf32>
    %5 = arith.negf %4 : vector<256x128xf32>
    %6 = math.exp %5 : vector<256x128xf32>
    %cst_5 = arith.constant 1.000000e+00 : f32
    %7 = vector.broadcast %cst_5 : f32 to vector<256x128xf32>
    %8 = arith.addf %7, %6 : vector<256x128xf32>
    %9 = arith.divf %7, %8 : vector<256x128xf32>
    %c0_6 = arith.constant 0 : index
    %c0_7 = arith.constant 0 : index
    %c0_8 = arith.constant 0 : index
    %10 = vector.load %arg5[%c0_6, %c0_7, %c0_8] : memref<1x256x128xf32, #tpu.memory_space<vmem>>, vector<1x256x128xf32>
    %11 = vector.shape_cast %10 : vector<1x256x128xf32> to vector<256x128xf32>
    %12 = vector.shape_cast %9 : vector<256x128xf32> to vector<1x256x128xf32>
    tpu.vector_store %arg5[%c0_6, %c0_7, %c0_8], %12 {strides = array<i32>} : memref<1x256x128xf32, #tpu.memory_space<vmem>>, vector<1x256x128xf32>,
    return
  }
  func.func @transform_0(%arg0: i32, %arg1: i32, %arg2: i32) -> (i32, i32, i32) {
    %c0_i32 = arith.constant 0 : i32
    %c0_i32_0 = arith.constant 0 : i32
    return %arg0, %arg1, %c0_i32 : i32, i32, i32
  }
  func.func @transform_1(%arg0: i32, %arg1: i32, %arg2: i32) -> (i32, i32, i32) {
    %c0_i32 = arith.constant 0 : i32
    %c0_i32_0 = arith.constant 0 : i32
    return %arg0, %c0_i32, %arg2 : i32, i32, i32
  }
  func.func @transform_2(%arg0: i32, %arg1: i32, %arg2: i32) -> (i32, i32, i32) {
    %c0_i32 = arith.constant 0 : i32
    return %arg0, %arg1, %arg2 : i32, i32, i32
  }
}

</mosaic_0001>

<bundles_post_ra>
// kernel: _lambda_.8
= control target key start
LH: loop header
LB: loop body
LE: loop exit
PB: predicated region body
PF: predicated region fallthrough
CT: control target
= control target key end

     0   :  { %s548_s0 = inlined_call_operand.vmem [shape: bf16[8,4096], index: 0, kind: input, shape index: {}]   ;;  %s549_s1 = inlined_call_operand.vmem [shape: f32[1,4096], index: 1, kind: input, shape index: {}]   ;;  %s550_s2 = inlined_call_operand.vmem [shape: f32[1,4096], index: 2, kind: input, shape index: {}]   ;;  %s551_s3 = inlined_call_operand.vmem [shape: bf16[8,4096], index: 3, kind: output, shape index: {}]  }
   0x1   :  { %v14_v0 = vld [vmem:[%s548_s0] sm:$0xff]  ;;  %v15_v7 = vld [vmem:[%s548_s0 + $0x8] sm:$0xff]  ;;  %v16_v8 = vld [vmem:[%s548_s0 + $0x10] sm:$0xff] }
   0x2   :  { %v62_v1 = vld [vmem:[%s549_s1] sm:$0xff]  ;;  %v30_v3 = vunpack.c.l.bf16 %v14_v0  ;;  %v31_v4 = vunpack.c.h.bf16 %v14_v0  ;;  %v32_v11 = vunpack.c.l.bf16 %v15_v7  ;;  %v33_v12 = vunpack.c.h.bf16 %v15_v7  ;;  %v17_v25 = vld [vmem:[%s548_s0 + $0x18] sm:$0xff]  ;;  %v391_v47 = vld [vmem:[%s549_s1 + $0x8] sm:$0xff] }
   0x3   :  { %v367_v2 = vld [vmem:[%s550_s2] sm:$0xff]  ;;  %v70_v5 = vperm.slane %v62_v1, 0  ;;  %v71_v6 = vperm.slane %v62_v1, 1  ;;  %v72_v15 = vperm.slane %v62_v1, 2  ;;  %v73_v16 = vperm.slane %v62_v1, 3  ;;  %v396_v48 = vld [vmem:[%s550_s2 + $0x8] sm:$0xff] }
   0x4   :  { %v174_v9 = vperm.slane %v367_v2, 0  ;;  %v175_v10 = vperm.slane %v367_v2, 1  ;;  %v176_v17 = vperm.slane %v367_v2, 2  ;;  %v177_v18 = vperm.slane %v367_v2, 3  ;;  %v18_v38 = vld [vmem:[%s548_s0 + $0x20] sm:$0xff]  ;;  %v19_v53 = vld [vmem:[%s548_s0 + $0x28] sm:$0xff] }
   0x5   :  { %v134_v13 = vmul.f32 %v70_v5, %v30_v3  ;;  %v135_v14 = vmul.f32 %v71_v6, %v31_v4  ;;  %v34_v19 = vunpack.c.l.bf16 %v16_v8  ;;  %v35_v20 = vunpack.c.h.bf16 %v16_v8 }
   0x6   :  { %v136_v23 = vmul.f32 %v72_v15, %v32_v11  ;;  %v137_v24 = vmul.f32 %v73_v16, %v33_v12  ;;  %v74_v26 = vperm.slane %v62_v1, 4  ;;  %v75_v27 = vperm.slane %v62_v1, 5 }
   0x7   :  { %v238_v21 = vadd.f32 %v174_v9, %v134_v13  ;;  %v239_v22 = vadd.f32 %v175_v10, %v135_v14  ;;  %v178_v28 = vperm.slane %v367_v2, 4  ;;  %v179_v29 = vperm.slane %v367_v2, 5 }
   0x8   :  { %v240_v32 = vadd.f32 %v176_v17, %v136_v23  ;;  %v241_v33 = vadd.f32 %v177_v18, %v137_v24  ;;  %v138_v34 = vmul.f32 %v74_v26, %v34_v19  ;;  %v139_v35 = vmul.f32 %v75_v27, %v35_v20  ;;  %v21_v19 = vld [vmem:[%s548_s0 + $0x38] sm:$0xff] }
   0x9   :  { %v270_v30 = vmax.f32 %v238_v21, 0.0  ;;  %v271_v31 = vmax.f32 %v239_v22, 0.0  ;;  %v36_v36 = vunpack.c.l.bf16 %v17_v25  ;;  %v37_v37 = vunpack.c.h.bf16 %v17_v25 }
   0xa   :  { %v272_v40 = vmax.f32 %v240_v32, 0.0  ;;  %v273_v41 = vmax.f32 %v241_v33, 0.0  ;;  %v76_v42 = vperm.slane %v62_v1, 6  ;;  %v242_v43 = vadd.f32 %v178_v28, %v138_v34  ;;  %v22_v32 = vld [vmem:[%s548_s0 + $0x40] sm:$0xff] }
   0xb   :  { %v302_v39 = vpack.c.bf16 %v271_v31, %v270_v30  ;;  %v243_v44 = vadd.f32 %v179_v29, %v139_v35  ;;  %v77_v45 = vperm.slane %v62_v1, 7  ;;  %v180_v46 = vperm.slane %v367_v2, 6 }
   0xc   :  { %v303_v49 = vpack.c.bf16 %v273_v41, %v272_v40  ;;  %v140_v50 = vmul.f32 %v76_v42, %v36_v36  ;;  %v181_v51 = vperm.slane %v367_v2, 7  ;;  %v38_v52 = vunpack.c.l.bf16 %v18_v38  ;;  %v20_v2 = vld [vmem:[%s548_s0 + $0x30] sm:$0xff] }
   0xd   :  { %318 = vst [vmem:[%s551_s3] sm:$0xff] %v302_v39  ;;  %v274_v54 = vmax.f32 %v242_v43, 0.0  ;;  %v275_v55 = vmax.f32 %v243_v44, 0.0  ;;  %v141_v56 = vmul.f32 %v77_v45, %v37_v37  ;;  %v39_v57 = vunpack.c.h.bf16 %v18_v38  ;;  %v444_v41 = vld [vmem:[%s549_s1 + $0x10] sm:$0xff] }
   0xe   :  { %319 = vst [vmem:[%s551_s3 + $0x8] sm:$0xff] %v303_v49  ;;  %v244_v58 = vadd.f32 %v180_v46, %v140_v50  ;;  %v78_v59 = vperm.slane %v391_v47, 0  ;;  %v79_v60 = vperm.slane %v391_v47, 1  ;;  %v182_v61 = vperm.slane %v396_v48, 0  ;;  %v449_v42 = vld [vmem:[%s550_s2 + $0x10] sm:$0xff] }
   0xf   :  { %v304_v62 = vpack.c.bf16 %v275_v55, %v274_v54  ;;  %v245_v63 = vadd.f32 %v181_v51, %v141_v56  ;;  %v183_v0 = vperm.slane %v396_v48, 1  ;;  %v40_v1 = vunpack.c.l.bf16 %v19_v53 }
  0x10   :  { %v276_v3 = vmax.f32 %v244_v58, 0.0  ;;  %v142_v4 = vmul.f32 %v78_v59, %v38_v52  ;;  %v143_v5 = vmul.f32 %v79_v60, %v39_v57  ;;  %v41_v6 = vunpack.c.h.bf16 %v19_v53  ;;  %v24_v60 = vld [vmem:[%s548_s0 + $0x50] sm:$0xff] }
  0x11   :  { %320 = vst [vmem:[%s551_s3 + $0x10] sm:$0xff] %v304_v62  ;;  %v277_v7 = vmax.f32 %v245_v63, 0.0  ;;  %v80_v8 = vperm.slane %v391_v47, 2  ;;  %v81_v9 = vperm.slane %v391_v47, 3  ;;  %v184_v10 = vperm.slane %v396_v48, 2 }
  0x12   :  { %v246_v11 = vadd.f32 %v182_v61, %v142_v4  ;;  %v247_v12 = vadd.f32 %v183_v0, %v143_v5  ;;  %v185_v13 = vperm.slane %v396_v48, 3  ;;  %v42_v14 = vunpack.c.l.bf16 %v20_v2 }
  0x13   :  { %v305_v15 = vpack.c.bf16 %v277_v7, %v276_v3  ;;  %v144_v16 = vmul.f32 %v80_v8, %v40_v1  ;;  %v145_v17 = vmul.f32 %v81_v9, %v41_v6  ;;  %v43_v18 = vunpack.c.h.bf16 %v20_v2 }
  0x14   :  { %v278_v20 = vmax.f32 %v246_v11, 0.0  ;;  %v279_v21 = vmax.f32 %v247_v12, 0.0  ;;  %v82_v22 = vperm.slane %v391_v47, 4  ;;  %v83_v23 = vperm.slane %v391_v47, 5 }
  0x15   :  { %321 = vst [vmem:[%s551_s3 + $0x18] sm:$0xff] %v305_v15  ;;  %v248_v24 = vadd.f32 %v184_v10, %v144_v16  ;;  %v249_v25 = vadd.f32 %v185_v13, %v145_v17  ;;  %v186_v26 = vperm.slane %v396_v48, 4  ;;  %v187_v27 = vperm.slane %v396_v48, 5  ;;  %v25_v13 = vld [vmem:[%s548_s0 + $0x58] sm:$0xff] }
  0x16   :  { %v306_v28 = vpack.c.bf16 %v279_v21, %v278_v20  ;;  %v146_v29 = vmul.f32 %v82_v22, %v42_v14  ;;  %v147_v30 = vmul.f32 %v83_v23, %v43_v18  ;;  %v44_v31 = vunpack.c.l.bf16 %v21_v19 }
  0x17   :  { %v280_v33 = vmax.f32 %v248_v24, 0.0  ;;  %v281_v34 = vmax.f32 %v249_v25, 0.0  ;;  %v45_v35 = vunpack.c.h.bf16 %v21_v19  ;;  %v84_v36 = vperm.slane %v391_v47, 6 }
  0x18   :  { %322 = vst [vmem:[%s551_s3 + $0x20] sm:$0xff] %v306_v28  ;;  %v250_v37 = vadd.f32 %v186_v26, %v146_v29  ;;  %v251_v38 = vadd.f32 %v187_v27, %v147_v30  ;;  %v85_v39 = vperm.slane %v391_v47, 7  ;;  %v188_v40 = vperm.slane %v396_v48, 6  ;;  %v23_v47 = vld [vmem:[%s548_s0 + $0x48] sm:$0xff]  ;;  %v26_v26 = vld [vmem:[%s548_s0 + $0x60] sm:$0xff] }
  0x19   :  { %v307_v43 = vpack.c.bf16 %v281_v34, %v280_v33  ;;  %v148_v44 = vmul.f32 %v84_v36, %v44_v31  ;;  %v189_v45 = vperm.slane %v396_v48, 7  ;;  %v46_v46 = vunpack.c.l.bf16 %v22_v32  ;;  %v499_v36 = vld [vmem:[%s550_s2 + $0x18] sm:$0xff] }
  0x1a   :  { %v282_v49 = vmax.f32 %v250_v37, 0.0  ;;  %v283_v50 = vmax.f32 %v251_v38, 0.0  ;;  %v149_v51 = vmul.f32 %v85_v39, %v45_v35  ;;  %v47_v52 = vunpack.c.h.bf16 %v22_v32  ;;  %v494_v35 = vld [vmem:[%s549_s1 + $0x18] sm:$0xff] }
  0x1b   :  { %323 = vst [vmem:[%s551_s3 + $0x28] sm:$0xff] %v307_v43  ;;  %v252_v53 = vadd.f32 %v188_v40, %v148_v44  ;;  %v86_v54 = vperm.slane %v444_v41, 0  ;;  %v87_v55 = vperm.slane %v444_v41, 1  ;;  %v190_v48 = vperm.slane %v449_v42, 0 }
  0x1c   :  { %v308_v56 = vpack.c.bf16 %v283_v50, %v282_v49  ;;  %v253_v57 = vadd.f32 %v189_v45, %v149_v51  ;;  %v191_v58 = vperm.slane %v449_v42, 1  ;;  %v48_v59 = vunpack.c.l.bf16 %v23_v47 }
  0x1d   :  { %v284_v61 = vmax.f32 %v252_v53, 0.0  ;;  %v150_v62 = vmul.f32 %v86_v54, %v46_v46  ;;  %v151_v63 = vmul.f32 %v87_v55, %v47_v52  ;;  %v49_v0 = vunpack.c.h.bf16 %v23_v47  ;;  %v28_v55 = vld [vmem:[%s548_s0 + $0x70] sm:$0xff] }
  0x1e   :  { %324 = vst [vmem:[%s551_s3 + $0x30] sm:$0xff] %v308_v56  ;;  %v285_v1 = vmax.f32 %v253_v57, 0.0  ;;  %v88_v2 = vperm.slane %v444_v41, 2  ;;  %v89_v3 = vperm.slane %v444_v41, 3  ;;  %v192_v4 = vperm.slane %v449_v42, 2 }
  0x1f   :  { %v254_v5 = vadd.f32 %v190_v48, %v150_v62  ;;  %v255_v6 = vadd.f32 %v191_v58, %v151_v63  ;;  %v193_v7 = vperm.slane %v449_v42, 3  ;;  %v50_v8 = vunpack.c.l.bf16 %v24_v60 }
  0x20   :  { %v309_v9 = vpack.c.bf16 %v285_v1, %v284_v61  ;;  %v152_v10 = vmul.f32 %v88_v2, %v48_v59  ;;  %v153_v11 = vmul.f32 %v89_v3, %v49_v0  ;;  %v51_v12 = vunpack.c.h.bf16 %v24_v60 }
  0x21   :  { %v286_v14 = vmax.f32 %v254_v5, 0.0  ;;  %v287_v15 = vmax.f32 %v255_v6, 0.0  ;;  %v90_v16 = vperm.slane %v444_v41, 4  ;;  %v91_v17 = vperm.slane %v444_v41, 5 }
  0x22   :  { %325 = vst [vmem:[%s551_s3 + $0x38] sm:$0xff] %v309_v9  ;;  %v256_v18 = vadd.f32 %v192_v4, %v152_v10  ;;  %v257_v19 = vadd.f32 %v193_v7, %v153_v11  ;;  %v194_v20 = vperm.slane %v449_v42, 4  ;;  %v195_v21 = vperm.slane %v449_v42, 5  ;;  %v29_v7 = vld [vmem:[%s548_s0 + $0x78] sm:$0xff] }
  0x23   :  { %v310_v22 = vpack.c.bf16 %v287_v15, %v286_v14  ;;  %v154_v23 = vmul.f32 %v90_v16, %v50_v8  ;;  %v155_v24 = vmul.f32 %v91_v17, %v51_v12  ;;  %v52_v25 = vunpack.c.l.bf16 %v25_v13 }
  0x24   :  { %v288_v27 = vmax.f32 %v256_v18, 0.0  ;;  %v289_v28 = vmax.f32 %v257_v19, 0.0  ;;  %v53_v29 = vunpack.c.h.bf16 %v25_v13  ;;  %v92_v30 = vperm.slane %v444_v41, 6 }
  0x25   :  { %326 = vst [vmem:[%s551_s3 + $0x40] sm:$0xff] %v310_v22  ;;  %v258_v31 = vadd.f32 %v194_v20, %v154_v23  ;;  %v259_v32 = vadd.f32 %v195_v21, %v155_v24  ;;  %v93_v33 = vperm.slane %v444_v41, 7  ;;  %v196_v34 = vperm.slane %v449_v42, 6  ;;  %v27_v41 = vld [vmem:[%s548_s0 + $0x68] sm:$0xff] }
  0x26   :  { %v311_v37 = vpack.c.bf16 %v289_v28, %v288_v27  ;;  %v156_v38 = vmul.f32 %v92_v30, %v52_v25  ;;  %v197_v39 = vperm.slane %v449_v42, 7  ;;  %v54_v40 = vunpack.c.l.bf16 %v26_v26 }
  0x27   :  { %v290_v43 = vmax.f32 %v258_v31, 0.0  ;;  %v291_v44 = vmax.f32 %v259_v32, 0.0  ;;  %v157_v45 = vmul.f32 %v93_v33, %v53_v29  ;;  %v55_v46 = vunpack.c.h.bf16 %v26_v26 }
  0x28   :  { %327 = vst [vmem:[%s551_s3 + $0x48] sm:$0xff] %v311_v37  ;;  %v260_v47 = vadd.f32 %v196_v34, %v156_v38  ;;  %v94_v49 = vperm.slane %v494_v35, 0  ;;  %v95_v50 = vperm.slane %v494_v35, 1  ;;  %v198_v42 = vperm.slane %v499_v36, 0 }
  0x29   :  { %v312_v51 = vpack.c.bf16 %v291_v44, %v290_v43  ;;  %v261_v52 = vadd.f32 %v197_v39, %v157_v45  ;;  %v199_v53 = vperm.slane %v499_v36, 1  ;;  %v56_v54 = vunpack.c.l.bf16 %v27_v41 }
  0x2a   :  { %v292_v48 = vmax.f32 %v260_v47, 0.0  ;;  %v158_v56 = vmul.f32 %v94_v49, %v54_v40  ;;  %v159_v57 = vmul.f32 %v95_v50, %v55_v46  ;;  %v57_v58 = vunpack.c.h.bf16 %v27_v41 }
  0x2b   :  { %328 = vst [vmem:[%s551_s3 + $0x50] sm:$0xff] %v312_v51  ;;  %v293_v59 = vmax.f32 %v261_v52, 0.0  ;;  %v96_v60 = vperm.slane %v494_v35, 2  ;;  %v97_v61 = vperm.slane %v494_v35, 3  ;;  %v200_v62 = vperm.slane %v499_v36, 2 }
  0x2c   :  { %v262_v63 = vadd.f32 %v198_v42, %v158_v56  ;;  %v263_v0 = vadd.f32 %v199_v53, %v159_v57  ;;  %v201_v1 = vperm.slane %v499_v36, 3  ;;  %v58_v2 = vunpack.c.l.bf16 %v28_v55 }
  0x2d   :  { %v313_v3 = vpack.c.bf16 %v293_v59, %v292_v48  ;;  %v160_v4 = vmul.f32 %v96_v60, %v56_v54  ;;  %v161_v5 = vmul.f32 %v97_v61, %v57_v58  ;;  %v59_v6 = vunpack.c.h.bf16 %v28_v55 }
  0x2e   :  { %v294_v8 = vmax.f32 %v262_v63, 0.0  ;;  %v295_v9 = vmax.f32 %v263_v0, 0.0  ;;  %v98_v10 = vperm.slane %v494_v35, 4  ;;  %v99_v11 = vperm.slane %v494_v35, 5 }
  0x2f   :  { %329 = vst [vmem:[%s551_s3 + $0x58] sm:$0xff] %v313_v3  ;;  %v264_v12 = vadd.f32 %v200_v62, %v160_v4  ;;  %v265_v13 = vadd.f32 %v201_v1, %v161_v5  ;;  %v202_v14 = vperm.slane %v499_v36, 4  ;;  %v203_v15 = vperm.slane %v499_v36, 5 }
  0x30   :  { %v314_v16 = vpack.c.bf16 %v295_v9, %v294_v8  ;;  %v162_v17 = vmul.f32 %v98_v10, %v58_v2  ;;  %v163_v18 = vmul.f32 %v99_v11, %v59_v6  ;;  %v60_v19 = vunpack.c.l.bf16 %v29_v7 }
  0x31   :  { %v296_v20 = vmax.f32 %v264_v12, 0.0  ;;  %v297_v21 = vmax.f32 %v265_v13, 0.0  ;;  %v61_v22 = vunpack.c.h.bf16 %v29_v7  ;;  %v100_v23 = vperm.slane %v494_v35, 6 }
  0x32   :  { %330 = vst [vmem:[%s551_s3 + $0x60] sm:$0xff] %v314_v16  ;;  %v266_v24 = vadd.f32 %v202_v14, %v162_v17  ;;  %v267_v25 = vadd.f32 %v203_v15, %v163_v18  ;;  %v101_v26 = vperm.slane %v494_v35, 7  ;;  %v204_v27 = vperm.slane %v499_v36, 6 }
  0x33   :  { %v315_v28 = vpack.c.bf16 %v297_v21, %v296_v20  ;;  %v164_v29 = vmul.f32 %v100_v23, %v60_v19  ;;  %v205_v30 = vperm.slane %v499_v36, 7 }
  0x34   :  { %v298_v31 = vmax.f32 %v266_v24, 0.0  ;;  %v299_v32 = vmax.f32 %v267_v25, 0.0  ;;  %v165_v33 = vmul.f32 %v101_v26, %v61_v22 }
  0x35   :  { %331 = vst [vmem:[%s551_s3 + $0x68] sm:$0xff] %v315_v28  ;;  %v268_v34 = vadd.f32 %v204_v27, %v164_v29 }
  0x36   :  { %v316_v37 = vpack.c.bf16 %v299_v32, %v298_v31  ;;  %v269_v38 = vadd.f32 %v205_v30, %v165_v33 }
  0x37   :  { %v300_v39 = vmax.f32 %v268_v34, 0.0 }
  0x38   :  { %332 = vst [vmem:[%s551_s3 + $0x70] sm:$0xff] %v316_v37  ;;  %v301_v35 = vmax.f32 %v269_v38, 0.0 }
  0x3a   :  { %v317_v40 = vpack.c.bf16 %v301_v35, %v300_v39 }
  0x3c   :  { %333 = vst [vmem:[%s551_s3 + $0x78] sm:$0xff] %v317_v40 }

// kernel: _lambda_.7
= control target key start
LH: loop header
LB: loop body
LE: loop exit
PB: predicated region body
PF: predicated region fallthrough
CT: control target
= control target key end

     0   :  { %10 = vsyncpa [#allocation3], 0  ;;  %s1914_s0 = inlined_call_operand.vmem [shape: bf16[1,8,128], index: 0, kind: input, shape index: {}]   ;;  %s1915_s1 = inlined_call_operand.hbm [shape: bf16[1,128,4096], index: 1, kind: input, shape index: {}]   ;;  %s1916_s2 = inlined_call_operand.vmem [shape: bf16[1,8,4096], index: 2, kind: output, shape index: {0}]   ;;  %s1917_s3 = inlined_call_operand.vmem [shape: f32[1,8,4096], index: 3, kind: output, shape index: {1}]   ;;  %s1918_s4 = inlined_call_operand.vmem [shape: f32[1,8,4096], index: 4, kind: output, shape index: {2}]  }
   0x1   :  { %12 = vsyncpa [#allocation3 + $0x1], 0  ;;  %s1652_s15 = smov 0   ;;  %s1654_s16 = smov 0  }
   0x2   :  { %s1656_s17 = smov 0   ;;  %s1658_s18 = smov 0  }
   0x3   :  { %s1660_s19 = smov 0   ;;  %s1662_s20 = smov 0  }
   0x4 LB: > { %s1145_s21 = sadd.s32 4294967295, %s1622_s20   ;;  %s30_s22 = sadd.s32 1, %s1618_s19  ;;  %s1622_s20 = sphi %s1662_s20, %s18_s20   ;;  %s1618_s19 = sphi %s1660_s19, %s1925_s19   ;;  %s1614_s18 = sphi %s1658_s18, %s1924_s18   ;;  %s1610_s17 = sphi %s1656_s17, %s1923_s17   ;;  %s1606_s16 = sphi %s1654_s16, %s1922_s16   ;;  %s1602_s15 = sphi %s1652_s15, %s1921_s15  }
   0x5   : > { %p31_p0 = scmp.ge.s32.totalorder %s30_s22, 4  ;;  %s74_s23 = sadd.s32 1, %s1610_s17 }
   0x6   : > { %p81_p1 = scmp.ne.s32.totalorder %s1610_s17, %s1606_s16  ;;  %p82_p2 = scmp.eq.s32.totalorder %s1622_s20, 0 }
   0x7   : > { %s1927_s22 = smov (%p31_p0, %s30_s22), 0  ;;  %p87_p4 = scmp.ne.s32.totalorder %s1606_s16, %s1602_s15 }
   0x8   : > { %p1688_p3 = por %p82_p2, %p81_p1  ;;  %s70_s25 = ssub.s32 %s1618_s19, %s1927_s22 }
   0x9   : > { %p88_p5 = scmp.eq.s32.totalorder %s1145_s21, 0  ;;  %p72_p6 = scmp.eq.s32.totalorder %s70_s25, 0 }
   0xa   : > { %p1490_p8 = scmp.lt.s32.totalorder %s1622_s20, 4  ;;  %s211_s28 = sand.u32 1, %s1610_s17  }
   0xb   : > { %p1695_p7 = por %p88_p5, %p87_p4  ;;  %s1419_s29 = sshll.u32 %s1618_s19, 5 }
   0xc   : > { %s1701_s27 = scalar_select %p72_p6, %s1610_s17, %s74_s23  }
   0xd   : > { %s1150_s30 = sshll.u32 %s211_s28, 9  ;;  %s222_s7 = scalar_lea.hbm %s1915_s1, %s1419_s29 }
   0xe   : > { %s223_s8 = sshll.u32 %s222_s7, 4  ;;  %s215_s9 = scalar_lea.vmem [#allocation2], %s1150_s30  ;;  %s224_s8 = int_to_ptr.hbm [resolvable:$true] %s223_s8 }
   0xf   : > { %s225_s10 = sshll.u32 %s215_s9, 4  ;;  %p1487_p9 = pnand %p1490_p8, %p1688_p3  ;;  %s226_s10 = int_to_ptr.vmem [resolvable:$true] %s225_s10 }
  0x10   : > { %p1153_p10 = scmp.ge.s32.totalorder %s1622_s20, 1  ;;  %s212_s11 = scalar_lea.sflag [#allocation3], %s211_s28 }
  0x11   : > { %s1624_s12 = smov 2048   ;;  %s1625_s13 = smov 512  }
  0x12   : > { %s1626_s14 = smov 32   ;;  %p233_p11 = scmp.lt.s32.totalorder %s1622_s20, 5 }
  0x13   : > { %1489 = dma.hbm_to_vmem [thread:$0]  (!%p1487_p9), %s224_s8, 8192, %s226_s10, %s212_s11, %s1624_s12, %s1625_s13, %s1626_s14  }
  0x14   : > { %p234_p12 = pnand %p1153_p10, %p233_p11 }
  0x15   : > { %s239_s15 = sand.u32 (!%p234_p12), 1, %s1606_s16  }
  0x16   : > { %237 = sbr.rel (%p234_p12) target bundleno = 237 (0xed), region = 28  ;;  %s1154_s21 = sshll.u32 (!%p234_p12), %s239_s15, 9 }
  0x17   : > { %s240_s23 = scalar_lea.sflag (!%p234_p12), [#allocation3], %s239_s15  ;;  %s1713_s25 = scalar_lea.vmem (!%p234_p12), [#allocation2], %s1154_s21 }
  0x1b   : > { %1597 = dma.done.wait (%p1695_p7), %s240_s23, 8192  }
  0x1c   : > { %1599 = vsyncadd (%p1695_p7), %s240_s23, 4294959104  ;;  %v1387_v0 = vld [vmem:[%s1713_s25 + $0x1c0] sm:$0xf]  ;;  %v1476_v2 = vld [vmem:[%s1713_s25 + $0x1c4] sm:$0xf]  ;;  %s1155_s28 = sshll.u32 %s1614_s18, 3 }
  0x1d   : > { %v1480_v1 = vld [vmem:[%s1713_s25 + $0x1dc] sm:$0xf0]  ;;  %v1389_v4 = vld [vmem:[%s1713_s25 + $0x1e0] sm:$0xf0]  ;;  %v1395_v5 = vld [vmem:[%s1713_s25 + $0x1c8] sm:$0xf] }
  0x1e   : > { %v1388_v3 = vor.u32 %v1480_v1, %v1387_v0  ;;  %v1481_v6 = vld [vmem:[%s1713_s25 + $0x1e4] sm:$0xf0]  ;;  %v1392_v7 = vor.u32 %v1476_v2, %v1389_v4  ;;  %v1477_v9 = vld [vmem:[%s1713_s25 + $0x1cc] sm:$0xf]  ;;  %v1355_v11 = vld [vmem:[%s1713_s25 + $0x180] sm:$0xf] }
  0x1f   : > { %v1396_v8 = vor.u32 %v1481_v6, %v1395_v5  ;;  %v1397_v10 = vld [vmem:[%s1713_s25 + $0x1e8] sm:$0xf0]  ;;  %v1472_v13 = vld [vmem:[%s1713_s25 + $0x19c] sm:$0xf0]  ;;  %v1468_v14 = vld [vmem:[%s1713_s25 + $0x184] sm:$0xf] }
  0x20   : > { %745 = vmatpush.bf16.msra.mxu0 %v1388_v3  ;;  %v1400_v12 = vor.u32 %v1477_v9, %v1397_v10  ;;  %v1357_v15 = vld [vmem:[%s1713_s25 + $0x1a0] sm:$0xf0]  ;;  %758 = vmatpush.bf16.msra.mxu1 %v1392_v7  ;;  %v1356_v16 = vor.u32 %v1472_v13, %v1355_v11  ;;  %v1363_v18 = vld [vmem:[%s1713_s25 + $0x188] sm:$0xf]  ;;  %v1469_v20 = vld [vmem:[%s1713_s25 + $0x18c] sm:$0xf] }
  0x21   : > { %771 = vmatpush.bf16.msra.mxu2 %v1396_v8  ;;  %v1360_v17 = vor.u32 %v1468_v14, %v1357_v15  ;;  %v1473_v19 = vld [vmem:[%s1713_s25 + $0x1a4] sm:$0xf0]  ;;  %v1365_v22 = vld [vmem:[%s1713_s25 + $0x1a8] sm:$0xf0]  ;;  %v1323_v23 = vld [vmem:[%s1713_s25 + $0x140] sm:$0xf] }
  0x22   : > { %784 = vmatpush.bf16.msra.mxu3 %v1400_v12  ;;  %v1364_v21 = vor.u32 %v1473_v19, %v1363_v18  ;;  %v1464_v24 = vld [vmem:[%s1713_s25 + $0x15c] sm:$0xf0]  ;;  %v1368_v25 = vor.u32 %v1469_v20, %v1365_v22  ;;  %v1460_v26 = vld [vmem:[%s1713_s25 + $0x144] sm:$0xf]  ;;  %v1331_v28 = vld [vmem:[%s1713_s25 + $0x148] sm:$0xf] }
  0x23   : > { %v1325_v27 = vld [vmem:[%s1713_s25 + $0x160] sm:$0xf0]  ;;  %v1324_v29 = vor.u32 %v1464_v24, %v1323_v23  ;;  %v1465_v30 = vld [vmem:[%s1713_s25 + $0x164] sm:$0xf0]  ;;  %v1461_v31 = vld [vmem:[%s1713_s25 + $0x14c] sm:$0xf] }
  0x24   : > { %746 = vmatpush.bf16.msra.mxu0 %v1356_v16  ;;  %v1333_v32 = vld [vmem:[%s1713_s25 + $0x168] sm:$0xf0]  ;;  %759 = vmatpush.bf16.msra.mxu1 %v1360_v17  ;;  %v1328_v33 = vor.u32 %v1460_v26, %v1325_v27  ;;  %v1332_v34 = vor.u32 %v1465_v30, %v1331_v28  ;;  %v1291_v35 = vld [vmem:[%s1713_s25 + $0x100] sm:$0xf]  ;;  %v1452_v37 = vld [vmem:[%s1713_s25 + $0x104] sm:$0xf] }
  0x25   : > { %772 = vmatpush.bf16.msra.mxu2 %v1364_v21  ;;  %v1456_v36 = vld [vmem:[%s1713_s25 + $0x11c] sm:$0xf0]  ;;  %v1336_v38 = vor.u32 %v1461_v31, %v1333_v32  ;;  %v1293_v39 = vld [vmem:[%s1713_s25 + $0x120] sm:$0xf0]  ;;  %v1299_v40 = vld [vmem:[%s1713_s25 + $0x108] sm:$0xf] }
  0x26   : > { %785 = vmatpush.bf16.msra.mxu3 %v1368_v25  ;;  %v1457_v41 = vld [vmem:[%s1713_s25 + $0x124] sm:$0xf0]  ;;  %v1453_v42 = vld [vmem:[%s1713_s25 + $0x10c] sm:$0xf]  ;;  %v1292_v44 = vor.u32 %v1456_v36, %v1291_v35  ;;  %v1296_v45 = vor.u32 %v1452_v37, %v1293_v39  ;;  %v1259_v47 = vld [vmem:[%s1713_s25 + $0xc0] sm:$0xf] }
  0x27   : > { %v1301_v43 = vld [vmem:[%s1713_s25 + $0x128] sm:$0xf0]  ;;  %v1300_v46 = vor.u32 %v1457_v41, %v1299_v40  ;;  %v1448_v48 = vld [vmem:[%s1713_s25 + $0xdc] sm:$0xf0]  ;;  %v1444_v49 = vld [vmem:[%s1713_s25 + $0xc4] sm:$0xf] }
  0x28   : > { %747 = vmatpush.bf16.msra.mxu0 %v1324_v29  ;;  %760 = vmatpush.bf16.msra.mxu1 %v1328_v33  ;;  %v1304_v50 = vor.u32 %v1453_v42, %v1301_v43  ;;  %v1261_v51 = vld [vmem:[%s1713_s25 + $0xe0] sm:$0xf0]  ;;  %v1267_v52 = vld [vmem:[%s1713_s25 + $0xc8] sm:$0xf]  ;;  %v1445_v54 = vld [vmem:[%s1713_s25 + $0xcc] sm:$0xf]  ;;  %v1260_v56 = vor.u32 %v1448_v48, %v1259_v47 }
  0x29   : > { %773 = vmatpush.bf16.msra.mxu2 %v1332_v34  ;;  %v1449_v53 = vld [vmem:[%s1713_s25 + $0xe4] sm:$0xf0]  ;;  %v1269_v55 = vld [vmem:[%s1713_s25 + $0xe8] sm:$0xf0]  ;;  %v1264_v57 = vor.u32 %v1444_v49, %v1261_v51  ;;  %v1227_v59 = vld [vmem:[%s1713_s25 + $0x80] sm:$0xf] }
  0x2a   : > { %786 = vmatpush.bf16.msra.mxu3 %v1336_v38  ;;  %v1268_v58 = vor.u32 %v1449_v53, %v1267_v52  ;;  %v1440_v60 = vld [vmem:[%s1713_s25 + $0x9c] sm:$0xf0]  ;;  %v1436_v61 = vld [vmem:[%s1713_s25 + $0x84] sm:$0xf]  ;;  %v1272_v62 = vor.u32 %v1445_v54, %v1269_v55  ;;  %v1235_v0 = vld [vmem:[%s1713_s25 + $0x88] sm:$0xf] }
  0x2b   : > { %v1229_v63 = vld [vmem:[%s1713_s25 + $0xa0] sm:$0xf0]  ;;  %v1441_v1 = vld [vmem:[%s1713_s25 + $0xa4] sm:$0xf0]  ;;  %v1437_v2 = vld [vmem:[%s1713_s25 + $0x8c] sm:$0xf]  ;;  %v1228_v4 = vor.u32 %v1440_v60, %v1227_v59 }
  0x2c   : > { %748 = vmatpush.bf16.msra.mxu0 %v1292_v44  ;;  %761 = vmatpush.bf16.msra.mxu1 %v1296_v45  ;;  %v1237_v3 = vld [vmem:[%s1713_s25 + $0xa8] sm:$0xf0]  ;;  %v1232_v5 = vor.u32 %v1436_v61, %v1229_v63  ;;  %v1236_v6 = vor.u32 %v1441_v1, %v1235_v0  ;;  %v1195_v7 = vld [vmem:[%s1713_s25 + $0x40] sm:$0xf]  ;;  %v1428_v9 = vld [vmem:[%s1713_s25 + $0x44] sm:$0xf] }
  0x2d   : > { %774 = vmatpush.bf16.msra.mxu2 %v1300_v46  ;;  %v1432_v8 = vld [vmem:[%s1713_s25 + $0x5c] sm:$0xf0]  ;;  %v1240_v10 = vor.u32 %v1437_v2, %v1237_v3  ;;  %v1197_v11 = vld [vmem:[%s1713_s25 + $0x60] sm:$0xf0]  ;;  %v1203_v12 = vld [vmem:[%s1713_s25 + $0x48] sm:$0xf] }
  0x2e   : > { %787 = vmatpush.bf16.msra.mxu3 %v1304_v50  ;;  %v1433_v13 = vld [vmem:[%s1713_s25 + $0x64] sm:$0xf0]  ;;  %v1429_v14 = vld [vmem:[%s1713_s25 + $0x4c] sm:$0xf]  ;;  %v1196_v16 = vor.u32 %v1432_v8, %v1195_v7  ;;  %v1163_v17 = vld [vmem:[%s1713_s25] sm:$0xf]  ;;  %v1200_v19 = vor.u32 %v1428_v9, %v1197_v11 }
  0x2f   : > { %v1205_v15 = vld [vmem:[%s1713_s25 + $0x68] sm:$0xf0]  ;;  %v1424_v18 = vld [vmem:[%s1713_s25 + $0x1c] sm:$0xf0]  ;;  %v1204_v20 = vor.u32 %v1433_v13, %v1203_v12  ;;  %v1420_v21 = vld [vmem:[%s1713_s25 + $0x4] sm:$0xf] }
  0x30   : > { %749 = vmatpush.bf16.msra.mxu0 %v1260_v56  ;;  %762 = vmatpush.bf16.msra.mxu1 %v1264_v57  ;;  %v1165_v22 = vld [vmem:[%s1713_s25 + $0x20] sm:$0xf0]  ;;  %v1171_v23 = vld [vmem:[%s1713_s25 + $0x8] sm:$0xf]  ;;  %v1208_v24 = vor.u32 %v1429_v14, %v1205_v15  ;;  %v1421_v26 = vld [vmem:[%s1713_s25 + $0xc] sm:$0xf]  ;;  %v1164_v31 = vor.u32 %v1424_v18, %v1163_v17 }
  0x31   : > { %775 = vmatpush.bf16.msra.mxu2 %v1268_v58  ;;  %v1425_v25 = vld [vmem:[%s1713_s25 + $0x24] sm:$0xf0]  ;;  %v1173_v27 = vld [vmem:[%s1713_s25 + $0x28] sm:$0xf0]  ;;  %v1403_v28 = vld [vmem:[%s1713_s25 + $0x1d0] sm:$0xf]  ;;  %v1168_v35 = vor.u32 %v1420_v21, %v1165_v22 }
  0x32   : > { %788 = vmatpush.bf16.msra.mxu3 %v1272_v62  ;;  %v1482_v29 = vld [vmem:[%s1713_s25 + $0x1ec] sm:$0xf0]  ;;  %v1478_v30 = vld [vmem:[%s1713_s25 + $0x1d4] sm:$0xf]  ;;  %v1411_v33 = vld [vmem:[%s1713_s25 + $0x1d8] sm:$0xf]  ;;  %v1172_v36 = vor.u32 %v1425_v25, %v1171_v23  ;;  %v1176_v39 = vor.u32 %v1421_v26, %v1173_v27 }
  0x33   : > { %v1405_v32 = vld [vmem:[%s1713_s25 + $0x1f0] sm:$0xf0]  ;;  %v1483_v34 = vld [vmem:[%s1713_s25 + $0x1f4] sm:$0xf0]  ;;  %v1479_v37 = vld [vmem:[%s1713_s25 + $0x1dc] sm:$0xf]  ;;  %v1404_v40 = vor.u32 %v1482_v29, %v1403_v28 }
  0x34   : > { %750 = vmatpush.bf16.msra.mxu0 %v1228_v4  ;;  %763 = vmatpush.bf16.msra.mxu1 %v1232_v5  ;;  %v1413_v38 = vld [vmem:[%s1713_s25 + $0x1f8] sm:$0xf0]  ;;  %v1408_v41 = vor.u32 %v1478_v30, %v1405_v32  ;;  %v1412_v42 = vor.u32 %v1483_v34, %v1411_v33  ;;  %v1371_v43 = vld [vmem:[%s1713_s25 + $0x190] sm:$0xf]  ;;  %v1470_v45 = vld [vmem:[%s1713_s25 + $0x194] sm:$0xf] }
  0x35   : > { %776 = vmatpush.bf16.msra.mxu2 %v1236_v6  ;;  %v1474_v44 = vld [vmem:[%s1713_s25 + $0x1ac] sm:$0xf0]  ;;  %v1416_v46 = vor.u32 %v1479_v37, %v1413_v38  ;;  %v1373_v47 = vld [vmem:[%s1713_s25 + $0x1b0] sm:$0xf0]  ;;  %v1379_v48 = vld [vmem:[%s1713_s25 + $0x198] sm:$0xf] }
  0x36   : > { %789 = vmatpush.bf16.msra.mxu3 %v1240_v10  ;;  %v1475_v49 = vld [vmem:[%s1713_s25 + $0x1b4] sm:$0xf0]  ;;  %v1471_v50 = vld [vmem:[%s1713_s25 + $0x19c] sm:$0xf]  ;;  %v1802_v52 = vld [vmem:[%s1914_s0] sm:$0xf]  ;;  %v1372_v53 = vor.u32 %v1474_v44, %v1371_v43  ;;  %v1376_v54 = vor.u32 %v1470_v45, %v1373_v47 }
  0x37   : > { %v1381_v51 = vld [vmem:[%s1713_s25 + $0x1b8] sm:$0xf0]  ;;  %v1380_v55 = vor.u32 %v1475_v49, %v1379_v48  ;;  %v1339_v56 = vld [vmem:[%s1713_s25 + $0x150] sm:$0xf]  ;;  %v1462_v58 = vld [vmem:[%s1713_s25 + $0x154] sm:$0xf] }
  0x38   : > { %751 = vmatpush.bf16.msra.mxu0 %v1196_v16  ;;  %764 = vmatpush.bf16.msra.mxu1 %v1200_v19  ;;  %v1466_v57 = vld [vmem:[%s1713_s25 + $0x16c] sm:$0xf0]  ;;  %v1384_v59 = vor.u32 %v1471_v50, %v1381_v51  ;;  %v1341_v60 = vld [vmem:[%s1713_s25 + $0x170] sm:$0xf0]  ;;  %v1347_v61 = vld [vmem:[%s1713_s25 + $0x158] sm:$0xf] }
  0x39   : > { %777 = vmatpush.bf16.msra.mxu2 %v1204_v20  ;;  %v1467_v62 = vld [vmem:[%s1713_s25 + $0x174] sm:$0xf0]  ;;  %v1463_v63 = vld [vmem:[%s1713_s25 + $0x15c] sm:$0xf]  ;;  %v1340_v1 = vor.u32 %v1466_v57, %v1339_v56  ;;  %v1344_v2 = vor.u32 %v1462_v58, %v1341_v60  ;;  %v1307_v4 = vld [vmem:[%s1713_s25 + $0x110] sm:$0xf] }
  0x3a   : > { %790 = vmatpush.bf16.msra.mxu3 %v1208_v24  ;;  %v1349_v0 = vld [vmem:[%s1713_s25 + $0x178] sm:$0xf0]  ;;  %v1348_v3 = vor.u32 %v1467_v62, %v1347_v61  ;;  %v1458_v5 = vld [vmem:[%s1713_s25 + $0x12c] sm:$0xf0]  ;;  %v1454_v6 = vld [vmem:[%s1713_s25 + $0x114] sm:$0xf] }
  0x3b   : > { %v1352_v7 = vor.u32 %v1463_v63, %v1349_v0  ;;  %v1309_v8 = vld [vmem:[%s1713_s25 + $0x130] sm:$0xf0]  ;;  %v1315_v9 = vld [vmem:[%s1713_s25 + $0x118] sm:$0xf]  ;;  %v1455_v11 = vld [vmem:[%s1713_s25 + $0x11c] sm:$0xf]  ;;  %v1308_v13 = vor.u32 %v1458_v5, %v1307_v4 }
  0x3c   : > { %752 = vmatpush.bf16.msra.mxu0 %v1164_v31  ;;  %765 = vmatpush.bf16.msra.mxu1 %v1168_v35  ;;  %v1459_v10 = vld [vmem:[%s1713_s25 + $0x134] sm:$0xf0]  ;;  %v1317_v12 = vld [vmem:[%s1713_s25 + $0x138] sm:$0xf0]  ;;  %v1312_v14 = vor.u32 %v1454_v6, %v1309_v8  ;;  %v1275_v16 = vld [vmem:[%s1713_s25 + $0xd0] sm:$0xf] }
  0x3d   : > { %778 = vmatpush.bf16.msra.mxu2 %v1172_v36  ;;  %v1316_v15 = vor.u32 %v1459_v10, %v1315_v9  ;;  %v1450_v17 = vld [vmem:[%s1713_s25 + $0xec] sm:$0xf0]  ;;  %v1446_v18 = vld [vmem:[%s1713_s25 + $0xd4] sm:$0xf]  ;;  %v1320_v19 = vor.u32 %v1455_v11, %v1317_v12  ;;  %v1283_v21 = vld [vmem:[%s1713_s25 + $0xd8] sm:$0xf] }
  0x3e   : > { %791 = vmatpush.bf16.msra.mxu3 %v1176_v39  ;;  %v1277_v20 = vld [vmem:[%s1713_s25 + $0xf0] sm:$0xf0]  ;;  %v1451_v22 = vld [vmem:[%s1713_s25 + $0xf4] sm:$0xf0]  ;;  %v1447_v23 = vld [vmem:[%s1713_s25 + $0xdc] sm:$0xf]  ;;  %v1276_v25 = vor.u32 %v1450_v17, %v1275_v16 }
  0x3f   : > { %753 = vmatmul.bf16.vlgmr.msra.gmra.mxu0 %v1802_v52  ;;  %766 = vmatmul.bf16.vlgmr.msra.gmra.mxu1 %v1802_v52  ;;  %v1285_v24 = vld [vmem:[%s1713_s25 + $0xf8] sm:$0xf0]  ;;  %v1280_v26 = vor.u32 %v1446_v18, %v1277_v20  ;;  %v1284_v27 = vor.u32 %v1451_v22, %v1283_v21  ;;  %v1243_v28 = vld [vmem:[%s1713_s25 + $0x90] sm:$0xf]  ;;  %v1438_v30 = vld [vmem:[%s1713_s25 + $0x94] sm:$0xf] }
  0x40   : > { %797 = vmatpush.bf16.msrb.mxu0 %v1404_v40  ;;  %810 = vmatpush.bf16.msrb.mxu1 %v1408_v41  ;;  %v1442_v29 = vld [vmem:[%s1713_s25 + $0xac] sm:$0xf0]  ;;  %v1288_v31 = vor.u32 %v1447_v23, %v1285_v24  ;;  %v1245_v32 = vld [vmem:[%s1713_s25 + $0xb0] sm:$0xf0]  ;;  %v1251_v33 = vld [vmem:[%s1713_s25 + $0x98] sm:$0xf] }
  0x41   : > { %823 = vmatpush.bf16.msrb.mxu2 %v1412_v42  ;;  %792 = vmatmul.bf16.vlgmr.msra.gmra.mxu3 %v1802_v52  ;;  %v1443_v34 = vld [vmem:[%s1713_s25 + $0xb4] sm:$0xf0]  ;;  %v1439_v35 = vld [vmem:[%s1713_s25 + $0x9c] sm:$0xf]  ;;  %v1244_v37 = vor.u32 %v1442_v29, %v1243_v28  ;;  %v1248_v38 = vor.u32 %v1438_v30, %v1245_v32  ;;  %v1211_v40 = vld [vmem:[%s1713_s25 + $0x50] sm:$0xf] }
  0x42   : > { %836 = vmatpush.bf16.msrb.mxu3 %v1416_v46  ;;  %779 = vmatmul.bf16.vlgmr.msra.gmra.mxu2 %v1802_v52  ;;  %v1253_v36 = vld [vmem:[%s1713_s25 + $0xb8] sm:$0xf0]  ;;  %v1252_v39 = vor.u32 %v1443_v34, %v1251_v33  ;;  %v1434_v41 = vld [vmem:[%s1713_s25 + $0x6c] sm:$0xf0]  ;;  %v1430_v42 = vld [vmem:[%s1713_s25 + $0x54] sm:$0xf] }
  0x43   : > { %v1256_v43 = vor.u32 %v1439_v35, %v1253_v36  ;;  %v1213_v44 = vld [vmem:[%s1713_s25 + $0x70] sm:$0xf0]  ;;  %v1219_v45 = vld [vmem:[%s1713_s25 + $0x58] sm:$0xf]  ;;  %v1431_v47 = vld [vmem:[%s1713_s25 + $0x5c] sm:$0xf]  ;;  %v1212_v49 = vor.u32 %v1434_v41, %v1211_v40 }
  0x44   : > { %798 = vmatpush.bf16.msrb.mxu0 %v1372_v53  ;;  %811 = vmatpush.bf16.msrb.mxu1 %v1376_v54  ;;  %v1435_v46 = vld [vmem:[%s1713_s25 + $0x74] sm:$0xf0]  ;;  %v1221_v48 = vld [vmem:[%s1713_s25 + $0x78] sm:$0xf0]  ;;  %v1216_v50 = vor.u32 %v1430_v42, %v1213_v44  ;;  %v1179_v53 = vld [vmem:[%s1713_s25 + $0x10] sm:$0xf] }
  0x45   : > { %824 = vmatpush.bf16.msrb.mxu2 %v1380_v55  ;;  %v1220_v51 = vor.u32 %v1435_v46, %v1219_v45  ;;  %v1426_v54 = vld [vmem:[%s1713_s25 + $0x2c] sm:$0xf0]  ;;  %v1422_v55 = vld [vmem:[%s1713_s25 + $0x14] sm:$0xf]  ;;  %v1224_v56 = vor.u32 %v1431_v47, %v1221_v48  ;;  %v1187_v58 = vld [vmem:[%s1713_s25 + $0x18] sm:$0xf] }
  0x46   : > { %837 = vmatpush.bf16.msrb.mxu3 %v1384_v59  ;;  %v1181_v57 = vld [vmem:[%s1713_s25 + $0x30] sm:$0xf0]  ;;  %v1427_v59 = vld [vmem:[%s1713_s25 + $0x34] sm:$0xf0]  ;;  %v1423_v60 = vld [vmem:[%s1713_s25 + $0x1c] sm:$0xf]  ;;  %v1180_v62 = vor.u32 %v1426_v54, %v1179_v53 }
  0x47   : > { %v1189_v61 = vld [vmem:[%s1713_s25 + $0x38] sm:$0xf0]  ;;  %v1184_v63 = vor.u32 %v1422_v55, %v1181_v57  ;;  %v1188_v0 = vor.u32 %v1427_v59, %v1187_v58  ;;  %p323_p13 = scmp.lt.s32.totalorder %s1155_s28, 31 }
  0x48   : > { %799 = vmatpush.bf16.msrb.mxu0 %v1340_v1  ;;  %812 = vmatpush.bf16.msrb.mxu1 %v1344_v2  ;;  %v1192_v1 = vor.u32 %v1423_v60, %v1189_v61 }
  0x49   : > { %825 = vmatpush.bf16.msrb.mxu2 %v1348_v3  ;;  %s1929_s28 = smov (!%p323_p13, %s1155_s28), 31 }
  0x4a   : > { %838 = vmatpush.bf16.msrb.mxu3 %v1352_v7  ;;  %s1158_s29 = sshll.u32 %s1929_s28, 3  ;;  %s1156_s7 = sshll.u32 %s1929_s28, 2 }
  0x4b   : > { %s1864_s6 = scalar_lea.vmem %s1917_s3, %s1158_s29  ;;  %s1869_s10 = scalar_lea.vmem %s1918_s4, %s1158_s29 }
  0x4c   : > { %800 = vmatpush.bf16.msrb.mxu0 %v1308_v13  ;;  %813 = vmatpush.bf16.msrb.mxu1 %v1312_v14  ;;  %s1875_s12 = scalar_lea.vmem %s1916_s2, %s1156_s7 }
  0x4d   : > { %826 = vmatpush.bf16.msrb.mxu2 %v1316_v15 }
  0x4e   : > { %839 = vmatpush.bf16.msrb.mxu3 %v1320_v19 }
  0x50   : > { %801 = vmatpush.bf16.msrb.mxu0 %v1276_v25  ;;  %814 = vmatpush.bf16.msrb.mxu1 %v1280_v26 }
  0x51   : > { %827 = vmatpush.bf16.msrb.mxu2 %v1284_v27 }
  0x52   : > { %840 = vmatpush.bf16.msrb.mxu3 %v1288_v31 }
  0x54   : > { %802 = vmatpush.bf16.msrb.mxu0 %v1244_v37  ;;  %815 = vmatpush.bf16.msrb.mxu1 %v1248_v38 }
  0x55   : > { %828 = vmatpush.bf16.msrb.mxu2 %v1252_v39 }
  0x56   : > { %841 = vmatpush.bf16.msrb.mxu3 %v1256_v43 }
  0x58   : > { %803 = vmatpush.bf16.msrb.mxu0 %v1212_v49  ;;  %816 = vmatpush.bf16.msrb.mxu1 %v1216_v50 }
  0x59   : > { %829 = vmatpush.bf16.msrb.mxu2 %v1220_v51 }
  0x5a   : > { %842 = vmatpush.bf16.msrb.mxu3 %v1224_v56 }
  0x5c   : > { %804 = vmatpush.bf16.msrb.mxu0 %v1180_v62  ;;  %817 = vmatpush.bf16.msrb.mxu1 %v1184_v63 }
  0x5d   : > { %830 = vmatpush.bf16.msrb.mxu2 %v1188_v0 }
  0x5e   : > { %843 = vmatpush.bf16.msrb.mxu3 %v1192_v1 }
  0x5f   : > { %805 = vmatmul.bf16.vlgmr.msrb.gmra.mxu0 %v1802_v52  ;;  %818 = vmatmul.bf16.vlgmr.msrb.gmra.mxu1 %v1802_v52 }
  0x60   : > { %831 = vmatmul.bf16.vlgmr.msrb.gmra.mxu2 %v1802_v52 }
  0x61   : > { %844 = vmatmul.bf16.vlgmr.msrb.gmra.mxu3 %v1802_v52 }
  0xbc   : > { %v754_v52 = vpop.f32.mrf.mxu0  ;;  %v767_v3 = vpop.f32.mrf.mxu1 }
  0xbd   : > { %857 = vst [vmem:[%s1864_s6] sm:$0xff] %v754_v52  ;;  %v865_v2 = vmul.f32 %v754_v52, %v754_v52  ;;  %v849_v4 = vpack.c.bf16 %v767_v3, %v754_v52  ;;  %v866_v5 = vmul.f32 %v767_v3, %v767_v3 }
  0xbe   : > { %858 = vst [vmem:[%s1864_s6 + $0x8] sm:$0xff] %v767_v3 }
  0xbf   : > { %873 = vst [vmem:[%s1869_s10] sm:$0xff] %v865_v2 }
  0xc0   : > { %853 = vst [vmem:[%s1875_s12] sm:$0xff] %v849_v4 }
  0xc1   : > { %874 = vst [vmem:[%s1869_s10 + $0x8] sm:$0xff] %v866_v5 }
  0xc4   : > { %v793_v8 = vpop.f32.mrf.mxu3  ;;  %v756_v11 = vpop.f32.mrf.mxu0 }
  0xc5   : > { %v780_v6 = vpop.f32.mrf.mxu2  ;;  %860 = vst [vmem:[%s1864_s6 + $0x18] sm:$0xff] %v793_v8  ;;  %v868_v10 = vmul.f32 %v793_v8, %v793_v8  ;;  %v769_v12 = vpop.f32.mrf.mxu1 }
  0xc6   : > { %859 = vst [vmem:[%s1864_s6 + $0x10] sm:$0xff] %v780_v6  ;;  %v867_v7 = vmul.f32 %v780_v6, %v780_v6  ;;  %v850_v9 = vpack.c.bf16 %v793_v8, %v780_v6 }
  0xc7   : > { %876 = vst [vmem:[%s1869_s10 + $0x18] sm:$0xff] %v868_v10 }
  0xc8   : > { %875 = vst [vmem:[%s1869_s10 + $0x10] sm:$0xff] %v867_v7 }
  0xc9   : > { %854 = vst [vmem:[%s1875_s12 + $0x8] sm:$0xff] %v850_v9 }
  0xcc   : > { %v795_v14 = vpop.f32.mrf.mxu3 }
  0xcd   : > { %v782_v13 = vpop.f32.mrf.mxu2 }
  0xdc   : > { %v806_v15 = vpop.f32.mrf.mxu0  ;;  %v819_v17 = vpop.f32.mrf.mxu1 }
  0xdd   : > { %861 = vst [vmem:[%s1864_s6 + $0x20] sm:$0xff] %v806_v15  ;;  %v869_v16 = vmul.f32 %v806_v15, %v806_v15  ;;  %v851_v18 = vpack.c.bf16 %v819_v17, %v806_v15  ;;  %v870_v19 = vmul.f32 %v819_v17, %v819_v17 }
  0xde   : > { %862 = vst [vmem:[%s1864_s6 + $0x28] sm:$0xff] %v819_v17 }
  0xdf   : > { %877 = vst [vmem:[%s1869_s10 + $0x20] sm:$0xff] %v869_v16 }
  0xe0   : > { %855 = vst [vmem:[%s1875_s12 + $0x10] sm:$0xff] %v851_v18 }
  0xe1   : > { %878 = vst [vmem:[%s1869_s10 + $0x28] sm:$0xff] %v870_v19 }
  0xe3   : > { %v832_v20 = vpop.f32.mrf.mxu2 }
  0xe4   : > { %863 = vst [vmem:[%s1864_s6 + $0x30] sm:$0xff] %v832_v20  ;;  %v871_v21 = vmul.f32 %v832_v20, %v832_v20  ;;  %v845_v22 = vpop.f32.mrf.mxu3  ;;  %v808_v23 = vpop.f32.mrf.mxu0 }
  0xe5   : > { %v852_v24 = vpack.c.bf16 %v845_v22, %v832_v20  ;;  %864 = vst [vmem:[%s1864_s6 + $0x38] sm:$0xff] %v845_v22  ;;  %v872_v25 = vmul.f32 %v845_v22, %v845_v22  ;;  %v821_v26 = vpop.f32.mrf.mxu1 }
  0xe6   : > { %879 = vst [vmem:[%s1869_s10 + $0x30] sm:$0xff] %v871_v21 }
  0xe7   : > { %856 = vst [vmem:[%s1875_s12 + $0x18] sm:$0xff] %v852_v24 }
  0xe8   : > { %880 = vst [vmem:[%s1869_s10 + $0x38] sm:$0xff] %v872_v25 }
  0xeb   : > { %v834_v27 = vpop.f32.mrf.mxu2 }
  0xec   : > { %v847_v28 = vpop.f32.mrf.mxu3 }
  0xed PF: > { %s18_s20 = sadd.s32 1, %s1622_s20   ;;  %s1921_s15 = smov %s1606_s16 }
  0xee   : > { %p15_p0 = scmp.ge.s32.totalorder %s18_s20, 6   ;;  %s1922_s16 = smov %s1610_s17 }
  0xef   : > { %s1923_s17 = smov %s1701_s27  ;;  %s1924_s18 = smov %s1618_s19 }
  0xf0   : > { %s1925_s19 = smov %s1927_s22  ;;  %17 = sbr.rel (!%p15_p0) target bundleno = 4 (0x4), region = 95 }
  0xf5   :  { %985 = vsyncpa [#allocation3], 1 }
  0xf6   :  { %987 = vsyncpa [#allocation3 + $0x1], 1 }

// kernel: _lambda_.10
= control target key start
LH: loop header
LB: loop body
LE: loop exit
PB: predicated region body
PF: predicated region fallthrough
CT: control target
= control target key end

     0   :  { %s336_s0 = inlined_call_operand.vmem [shape: bf16[128,128], index: 0, kind: input, shape index: {}]   ;;  %s337_s1 = inlined_call_operand.vmem [shape: f32[1,128], index: 1, kind: input, shape index: {}]   ;;  %s338_s2 = inlined_call_operand.vmem [shape: f32[1,128], index: 2, kind: input, shape index: {}]   ;;  %s339_s3 = inlined_call_operand.vmem [shape: bf16[128,128], index: 3, kind: output, shape index: {}]  }
   0x1   :  { %v139_v0 = vld [vmem:[%s336_s0] sm:$0xff]   ;;  %v210_v5 = vld [vmem:[%s336_s0 + $0x8] sm:$0xff]   ;;  %v211_v8 = vld [vmem:[%s336_s0 + $0x10] sm:$0xff]  }
   0x2   :  { %v252_v1 = vld [vmem:[%s337_s1] ss:$0 sm:$0xff]  ;;  %v140_v2 = vunpack.c.l.bf16 %v139_v0  ;;  %v141_v3 = vunpack.c.h.bf16 %v139_v0  ;;  %v144_v6 = vunpack.c.l.bf16 %v210_v5  ;;  %v145_v7 = vunpack.c.h.bf16 %v210_v5  ;;  %v212_v9 = vld [vmem:[%s336_s0 + $0x18] sm:$0xff]   ;;  %v214_v35 = vld [vmem:[%s336_s0 + $0x28] sm:$0xff]  }
   0x3   :  { %v257_v4 = vld [vmem:[%s338_s2] ss:$0 sm:$0xff]  ;;  %v148_v12 = vunpack.c.l.bf16 %v211_v8  ;;  %v149_v13 = vunpack.c.h.bf16 %v211_v8  ;;  %v152_v16 = vunpack.c.l.bf16 %v212_v9  ;;  %v153_v17 = vunpack.c.h.bf16 %v212_v9  ;;  %v215_v40 = vld [vmem:[%s336_s0 + $0x30] sm:$0xff]   ;;  %v216_v45 = vld [vmem:[%s336_s0 + $0x38] sm:$0xff]  }
   0x4   :  { %v50_v10 = vmul.f32 %v252_v1, %v140_v2  ;;  %v51_v11 = vmul.f32 %v252_v1, %v141_v3  ;;  %v52_v14 = vmul.f32 %v252_v1, %v144_v6  ;;  %v53_v15 = vmul.f32 %v252_v1, %v145_v7  ;;  %v213_v26 = vld [vmem:[%s336_s0 + $0x20] sm:$0xff]  }
   0x5   :  { %v54_v20 = vmul.f32 %v252_v1, %v148_v12  ;;  %v55_v21 = vmul.f32 %v252_v1, %v149_v13  ;;  %v56_v24 = vmul.f32 %v252_v1, %v152_v16  ;;  %v57_v25 = vmul.f32 %v252_v1, %v153_v17 }
   0x6   :  { %v70_v18 = vadd.f32 %v257_v4, %v50_v10  ;;  %v71_v19 = vadd.f32 %v257_v4, %v51_v11  ;;  %v72_v22 = vadd.f32 %v257_v4, %v52_v14  ;;  %v73_v23 = vadd.f32 %v257_v4, %v53_v15 }
   0x7   :  { %v74_v29 = vadd.f32 %v257_v4, %v54_v20  ;;  %v75_v30 = vadd.f32 %v257_v4, %v55_v21  ;;  %v76_v33 = vadd.f32 %v257_v4, %v56_v24  ;;  %v77_v34 = vadd.f32 %v257_v4, %v57_v25 }
   0x8   :  { %v86_v27 = vmax.f32 %v70_v18, 0.0  ;;  %v87_v28 = vmax.f32 %v71_v19, 0.0  ;;  %v88_v31 = vmax.f32 %v72_v22, 0.0  ;;  %v89_v32 = vmax.f32 %v73_v23, 0.0 }
   0x9   :  { %v90_v37 = vmax.f32 %v74_v29, 0.0  ;;  %v91_v38 = vmax.f32 %v75_v30, 0.0  ;;  %v156_v39 = vunpack.c.l.bf16 %v213_v26  ;;  %v92_v42 = vmax.f32 %v76_v33, 0.0 }
   0xa   :  { %v173_v36 = vpack.c.bf16 %v87_v28, %v86_v27  ;;  %v178_v41 = vpack.c.bf16 %v89_v32, %v88_v31  ;;  %v93_v43 = vmax.f32 %v77_v34, 0.0  ;;  %v157_v44 = vunpack.c.h.bf16 %v213_v26 }
   0xb   :  { %v183_v46 = vpack.c.bf16 %v91_v38, %v90_v37  ;;  %v58_v47 = vmul.f32 %v252_v1, %v156_v39  ;;  %v160_v48 = vunpack.c.l.bf16 %v214_v35  ;;  %v161_v49 = vunpack.c.h.bf16 %v214_v35 }
   0xc   :  { %174 = vst [vmem:[%s339_s3] sm:$0xff] %v173_v36   ;;  %v188_v50 = vpack.c.bf16 %v93_v43, %v92_v42  ;;  %v59_v51 = vmul.f32 %v252_v1, %v157_v44  ;;  %v164_v52 = vunpack.c.l.bf16 %v215_v40  ;;  %v165_v53 = vunpack.c.h.bf16 %v215_v40 }
   0xd   :  { %217 = vst [vmem:[%s339_s3 + $0x8] sm:$0xff] %v178_v41   ;;  %v78_v54 = vadd.f32 %v257_v4, %v58_v47  ;;  %v60_v55 = vmul.f32 %v252_v1, %v160_v48  ;;  %v61_v56 = vmul.f32 %v252_v1, %v161_v49  ;;  %v168_v57 = vunpack.c.l.bf16 %v216_v45 }
   0xe   :  { %218 = vst [vmem:[%s339_s3 + $0x10] sm:$0xff] %v183_v46   ;;  %v79_v58 = vadd.f32 %v257_v4, %v59_v51  ;;  %v62_v59 = vmul.f32 %v252_v1, %v164_v52  ;;  %v63_v60 = vmul.f32 %v252_v1, %v165_v53  ;;  %v169_v61 = vunpack.c.h.bf16 %v216_v45 }
   0xf   :  { %219 = vst [vmem:[%s339_s3 + $0x18] sm:$0xff] %v188_v50   ;;  %v94_v62 = vmax.f32 %v78_v54, 0.0  ;;  %v80_v63 = vadd.f32 %v257_v4, %v60_v55  ;;  %v81_v0 = vadd.f32 %v257_v4, %v61_v56  ;;  %v64_v2 = vmul.f32 %v252_v1, %v168_v57 }
  0x10   :  { %v95_v3 = vmax.f32 %v79_v58, 0.0  ;;  %v82_v5 = vadd.f32 %v257_v4, %v62_v59  ;;  %v83_v6 = vadd.f32 %v257_v4, %v63_v60  ;;  %v65_v7 = vmul.f32 %v252_v1, %v169_v61 }
  0x11   :  { %v96_v8 = vmax.f32 %v80_v63, 0.0  ;;  %v97_v9 = vmax.f32 %v81_v0, 0.0  ;;  %v84_v10 = vadd.f32 %v257_v4, %v64_v2 }
  0x12   :  { %v193_v11 = vpack.c.bf16 %v95_v3, %v94_v62  ;;  %v98_v12 = vmax.f32 %v82_v5, 0.0  ;;  %v99_v13 = vmax.f32 %v83_v6, 0.0  ;;  %v85_v14 = vadd.f32 %v257_v4, %v65_v7 }
  0x13   :  { %v198_v15 = vpack.c.bf16 %v97_v9, %v96_v8  ;;  %v100_v16 = vmax.f32 %v84_v10, 0.0 }
  0x14   :  { %220 = vst [vmem:[%s339_s3 + $0x20] sm:$0xff] %v193_v11   ;;  %v203_v17 = vpack.c.bf16 %v99_v13, %v98_v12  ;;  %v101_v18 = vmax.f32 %v85_v14, 0.0 }
  0x15   :  { %221 = vst [vmem:[%s339_s3 + $0x28] sm:$0xff] %v198_v15  }
  0x16   :  { %222 = vst [vmem:[%s339_s3 + $0x30] sm:$0xff] %v203_v17   ;;  %v208_v1 = vpack.c.bf16 %v101_v18, %v100_v16 }
  0x18   :  { %223 = vst [vmem:[%s339_s3 + $0x38] sm:$0xff] %v208_v1  }

// kernel: _lambda_.9
= control target key start
LH: loop header
LB: loop body
LE: loop exit
PB: predicated region body
PF: predicated region fallthrough
CT: control target
= control target key end

     0   :  { %s1585_s0 = inlined_call_operand.vmem [shape: bf16[4,32,1024], index: 0, kind: input, shape index: {}]   ;;  %s1586_s1 = inlined_call_operand.vmem [shape: bf16[4,1024,128], index: 1, kind: input, shape index: {}]   ;;  %s1587_s2 = inlined_call_operand.vmem [shape: bf16[4,32,128], index: 2, kind: output, shape index: {0}]   ;;  %s1588_s3 = inlined_call_operand.vmem [shape: f32[4,8,128], index: 3, kind: output, shape index: {1}]   ;;  %s1589_s4 = inlined_call_operand.vmem [shape: f32[4,8,128], index: 4, kind: output, shape index: {2}]  }
   0x1   :  { %1590 = sst [smem:[#allocation4_spill]] %s1585_s0 }
   0x2   :  { %s1422_s15 = smov 0   ;;  %s1424_s16 = smov 0  }
   0x3   :  { %s1426_s17 = smov 0   ;;  %s1428_s18 = smov 0  }
   0x4   :  { %s1430_s19 = smov 0   ;;  %s1432_s20 = smov 0  }
   0x5   :  { %s1434_s21 = smov 0  }
   0x6 LB: > { %s30_s22 = sadd.s32 1, %s1386_s19  ;;  %s41_s23 = sadd.s32 1, %s1390_s20  ;;  %s1394_s21 = sphi %s1434_s21, %s15_s21   ;;  %s1390_s20 = sphi %s1432_s20, %s1597_s20   ;;  %s1386_s19 = sphi %s1430_s19, %s1596_s19   ;;  %s1382_s18 = sphi %s1428_s18, %s1595_s18   ;;  %s1378_s17 = sphi %s1426_s17, %s1594_s17   ;;  %s1374_s16 = sphi %s1424_s16, %s1593_s16   ;;  %s1370_s15 = sphi %s1422_s15, %s1592_s15  }
   0x7   : > { %p31_p0 = scmp.ge.s32.totalorder %s30_s22, 2  ;;  %p59_p1 = scmp.ne.s32.totalorder %s1374_s16, %s1370_s15 }
   0x8   : > { %p60_p2 = scmp.eq.s32.totalorder %s1394_s21, 0  ;;  %s52_s27 = sadd.s32 1, %s1374_s16 }
   0x9   : > { %s1599_s22 = smov (%p31_p0, %s30_s22), 0  ;;  %s1601_s23 = smov (!%p31_p0, %s41_s23), %s1390_s20 }
   0xa   : > { %p61_p3 = por %p60_p2, %p59_p1  ;;  %p43_p4 = scmp.ge.s32.totalorder %s1601_s23, 4 }
   0xb   : > { %s48_s24 = ssub.s32 %s1386_s19, %s1599_s22  ;;  %p1053_p6 = scmp.ge.s32.totalorder %s1394_s21, 8 }
   0xc   : > { %s1603_s23 = smov (%p43_p4, %s1601_s23), 0 }
   0xd   : > { %s45_s25 = ssub.s32 %s1390_s20, %s1603_s23  ;;  %205 = sbr.rel (%p1053_p6) target bundleno = 36 (0x24), region = 16 }
   0xe   : > { %s49_s26 = sor.u32 %s48_s24, %s45_s25 }
   0xf   : > { %p50_p5 = scmp.eq.s32.totalorder %s49_s26, 0 }
  0x11   : > { %s1473_s28 = scalar_select %p50_p5, %s1374_s16, %s52_s27  }
  0x12   : > { %208 = sbr.rel (!%p61_p3) target bundleno = 36 (0x24), region = 20  ;;  %s210_s29 = sand.u32 (%p61_p3), 1, %s1374_s16  }
  0x13   : > { %s1055_s30 = sshll.u32 (%p61_p3), %s1386_s19, 2  ;;  %s1054_s5 = sshll.u32 (%p61_p3), %s210_s29, 6 }
  0x14   : > { %s1056_s6 = sshll.u32 (%p61_p3), %s1390_s20, 5  ;;  %s1591_s0 = sld [smem:[#allocation4_spill]] (%p61_p3) }
  0x15   : > { %s218_s7 = sadd.s32 (%p61_p3), %s1056_s6, %s1055_s30  ;;  %s212_s12 = scalar_lea.vmem (%p61_p3), [#allocation3], %s1054_s5 }
  0x16   : > { %s1057_s8 = sshll.u32 (%p61_p3), %s218_s7, 2 }
  0x1a   : > { %s220_s11 = scalar_lea.vmem %s1591_s0, %s1057_s8 }
  0x1b   : > { %v233_v0 = vld [vmem:[%s220_s11] sm:$0xff]  ;;  %v235_v1 = vld [vmem:[%s220_s11 + $0x8] sm:$0xff] }
  0x1c   : > { %v237_v2 = vld [vmem:[%s220_s11 + $0x20] sm:$0xff]  ;;  %234 = vst [vmem:[%s212_s12] sm:$0xff] %v233_v0  ;;  %v239_v3 = vld [vmem:[%s220_s11 + $0x28] sm:$0xff] }
  0x1d   : > { %236 = vst [vmem:[%s212_s12 + $0x8] sm:$0xff] %v235_v1  ;;  %v241_v4 = vld [vmem:[%s220_s11 + $0x40] sm:$0xff]  ;;  %v243_v5 = vld [vmem:[%s220_s11 + $0x48] sm:$0xff] }
  0x1e   : > { %238 = vst [vmem:[%s212_s12 + $0x10] sm:$0xff] %v237_v2  ;;  %v245_v6 = vld [vmem:[%s220_s11 + $0x60] sm:$0xff]  ;;  %v247_v7 = vld [vmem:[%s220_s11 + $0x68] sm:$0xff] }
  0x1f   : > { %240 = vst [vmem:[%s212_s12 + $0x18] sm:$0xff] %v239_v3 }
  0x20   : > { %242 = vst [vmem:[%s212_s12 + $0x20] sm:$0xff] %v241_v4 }
  0x21   : > { %244 = vst [vmem:[%s212_s12 + $0x28] sm:$0xff] %v243_v5 }
  0x22   : > { %246 = vst [vmem:[%s212_s12 + $0x30] sm:$0xff] %v245_v6 }
  0x23   : > { %248 = vst [vmem:[%s212_s12 + $0x38] sm:$0xff] %v247_v7 }
  0x24 PF: > { %p1058_p7 = scmp.ge.s32.totalorder %s1394_s21, 1  ;;  %p269_p8 = scmp.lt.s32.totalorder %s1394_s21, 9 }
  0x26   : > { %p270_p9 = pnand %p1058_p7, %p269_p8 }
  0x27   : > { %s276_s13 = sand.u32 (!%p270_p9), 1, %s1370_s15   ;;  %s1060_s14 = sshll.u32 (!%p270_p9), %s1378_s17, 6 }
  0x28   : > { %273 = sbr.rel (%p270_p9) target bundleno = 272 (0x110), region = 47  ;;  %s1059_s24 = sshll.u32 (!%p270_p9), %s276_s13, 6 }
  0x29   : > { %p343_p10 = scmp.lt.s32.totalorder (!%p270_p9), %s1382_s18, 3  ;;  %p345_p11 = scmp.lt.s32.totalorder (!%p270_p9), %s1060_s14, 127 }
  0x2a   : > { %p1067_p12 = scmp.ne.s32.totalorder (!%p270_p9), %s1378_s17, 0 }
  0x2d   : > { %s1605_s18 = smov (!%p343_p10, %s1382_s18), 3  ;;  %s1607_s14 = smov (!%p345_p11, %s1060_s14), 127 }
  0x2e   : > { %s1061_s25 = sshll.u32 %s1605_s18, 7  ;;  %s1231_s26 = sshll.u32 %s1605_s18, 4 }
  0x2f   : > { %s351_s27 = sadd.s32 %s1061_s25, %s1607_s14  ;;  %s1491_s5 = scalar_lea.vmem %s1587_s2, %s1231_s26 }
  0x30   : > { %s1062_s6 = sshll.u32 %s351_s27, 2  ;;  %s1065_s7 = sshll.u32 %s1605_s18, 3 }
  0x31   : > { %s1496_s15 = scalar_lea.vmem %s1586_s1, %s1062_s6  ;;  %s1501_s12 = scalar_lea.vmem %s1588_s3, %s1065_s7 }
  0x32   : > { %s1506_s14 = scalar_lea.vmem %s1589_s4, %s1065_s7  ;;  %s1508_s25 = scalar_lea.vmem [#allocation3], %s1059_s24 }
  0x33   : > { %391 = sbr.rel (%p1067_p12) target bundleno = 61 (0x3d), region = 55 }
  0x38   : > { %v1396_v8 = vmov 0.0  }
  0x39   : > { %392 = vst [vmem:[#allocation2 + $0x10] sm:$0xff] %v1396_v8 }
  0x3a   : > { %393 = vst [vmem:[#allocation2] sm:$0xff] %v1396_v8 }
  0x3b   : > { %394 = vst [vmem:[#allocation2 + $0x18] sm:$0xff] %v1396_v8 }
  0x3c   : > { %395 = vst [vmem:[#allocation2 + $0x8] sm:$0xff] %v1396_v8 }
  0x3d PF: > { %v1247_v9 = vld [vmem:[%s1496_s15 + $0x38] sm:$0xff]  ;;  %v1246_v13 = vld [vmem:[%s1496_s15 + $0x30] sm:$0xff]  ;;  %v1245_v17 = vld [vmem:[%s1496_s15 + $0x28] sm:$0xff]  ;;  %p1228_p13 = scmp.ne.s32.totalorder %s1378_s17, 1 }
  0x3e   : > { %v1255_v10 = vld [vmem:[%s1496_s15 + $0x78] sm:$0xff]  ;;  %704 = vmatpush.bf16.msra.mxu0 %v1247_v9  ;;  %v1254_v14 = vld [vmem:[%s1496_s15 + $0x70] sm:$0xff]  ;;  %v1253_v18 = vld [vmem:[%s1496_s15 + $0x68] sm:$0xff] }
  0x3f   : > { %v1263_v11 = vld [vmem:[%s1496_s15 + $0xb8] sm:$0xff]  ;;  %723 = vmatpush.bf16.msra.mxu1 %v1255_v10  ;;  %v1262_v15 = vld [vmem:[%s1496_s15 + $0xb0] sm:$0xff]  ;;  %v1261_v19 = vld [vmem:[%s1496_s15 + $0xa8] sm:$0xff] }
  0x40   : > { %v1271_v12 = vld [vmem:[%s1496_s15 + $0xf8] sm:$0xff]  ;;  %742 = vmatpush.bf16.msra.mxu2 %v1263_v11  ;;  %v1270_v16 = vld [vmem:[%s1496_s15 + $0xf0] sm:$0xff]  ;;  %v1269_v20 = vld [vmem:[%s1496_s15 + $0xe8] sm:$0xff] }
  0x41   : > { %761 = vmatpush.bf16.msra.mxu3 %v1271_v12  ;;  %v1244_v21 = vld [vmem:[%s1496_s15 + $0x20] sm:$0xff]  ;;  %v1243_v25 = vld [vmem:[%s1496_s15 + $0x18] sm:$0xff]  ;;  %v1242_v29 = vld [vmem:[%s1496_s15 + $0x10] sm:$0xff] }
  0x42   : > { %705 = vmatpush.bf16.msra.mxu0 %v1246_v13  ;;  %v1252_v22 = vld [vmem:[%s1496_s15 + $0x60] sm:$0xff]  ;;  %v1251_v26 = vld [vmem:[%s1496_s15 + $0x58] sm:$0xff]  ;;  %v1250_v30 = vld [vmem:[%s1496_s15 + $0x50] sm:$0xff] }
  0x43   : > { %724 = vmatpush.bf16.msra.mxu1 %v1254_v14  ;;  %v1260_v23 = vld [vmem:[%s1496_s15 + $0xa0] sm:$0xff]  ;;  %v1259_v27 = vld [vmem:[%s1496_s15 + $0x98] sm:$0xff]  ;;  %v1258_v31 = vld [vmem:[%s1496_s15 + $0x90] sm:$0xff] }
  0x44   : > { %743 = vmatpush.bf16.msra.mxu2 %v1262_v15  ;;  %v1268_v24 = vld [vmem:[%s1496_s15 + $0xe0] sm:$0xff]  ;;  %v1267_v28 = vld [vmem:[%s1496_s15 + $0xd8] sm:$0xff]  ;;  %v1266_v32 = vld [vmem:[%s1496_s15 + $0xd0] sm:$0xff] }
  0x45   : > { %762 = vmatpush.bf16.msra.mxu3 %v1270_v16  ;;  %v1241_v33 = vld [vmem:[%s1496_s15 + $0x8] sm:$0xff]  ;;  %v1240_v37 = vld [vmem:[%s1496_s15] sm:$0xff]  ;;  %v1234_v42 = vld [vmem:[%s1508_s25 + $0xc] sm:$0xf0] }
  0x46   : > { %706 = vmatpush.bf16.msra.mxu0 %v1245_v17  ;;  %v1249_v34 = vld [vmem:[%s1496_s15 + $0x48] sm:$0xff]  ;;  %v1248_v38 = vld [vmem:[%s1496_s15 + $0x40] sm:$0xff]  ;;  %v1072_v44 = vld [vmem:[%s1508_s25 + $0x10] sm:$0xf0] }
  0x47   : > { %725 = vmatpush.bf16.msra.mxu1 %v1253_v18  ;;  %v1257_v35 = vld [vmem:[%s1496_s15 + $0x88] sm:$0xff]  ;;  %v1256_v39 = vld [vmem:[%s1496_s15 + $0x80] sm:$0xff]  ;;  %v1235_v46 = vld [vmem:[%s1508_s25 + $0x14] sm:$0xf0] }
  0x48   : > { %744 = vmatpush.bf16.msra.mxu2 %v1261_v19  ;;  %v1265_v36 = vld [vmem:[%s1496_s15 + $0xc8] sm:$0xff]  ;;  %v1264_v40 = vld [vmem:[%s1496_s15 + $0xc0] sm:$0xff]  ;;  %v1080_v48 = vld [vmem:[%s1508_s25 + $0x18] sm:$0xf0] }
  0x49   : > { %763 = vmatpush.bf16.msra.mxu3 %v1269_v20  ;;  %v1070_v41 = vld [vmem:[%s1508_s25] sm:$0xf]  ;;  %v1232_v43 = vld [vmem:[%s1508_s25 + $0x4] sm:$0xf]  ;;  %v1078_v45 = vld [vmem:[%s1508_s25 + $0x8] sm:$0xf] }
  0x4a   : > { %707 = vmatpush.bf16.msra.mxu0 %v1244_v21  ;;  %v1233_v47 = vld [vmem:[%s1508_s25 + $0xc] sm:$0xf]  ;;  %v1071_v49 = vor.u32 %v1234_v42, %v1070_v41  ;;  %v1075_v50 = vor.u32 %v1232_v43, %v1072_v44  ;;  %v1079_v51 = vor.u32 %v1235_v46, %v1078_v45  ;;  %v1086_v53 = vld [vmem:[%s1508_s25 + $0x20] sm:$0xf]  ;;  %v1238_v54 = vld [vmem:[%s1508_s25 + $0x2c] sm:$0xf0] }
  0x4b   : > { %726 = vmatpush.bf16.msra.mxu1 %v1252_v22  ;;  %v1083_v52 = vor.u32 %v1233_v47, %v1080_v48  ;;  %v1236_v55 = vld [vmem:[%s1508_s25 + $0x24] sm:$0xf]  ;;  %v1088_v56 = vld [vmem:[%s1508_s25 + $0x30] sm:$0xf0]  ;;  %v1094_v57 = vld [vmem:[%s1508_s25 + $0x28] sm:$0xf]  ;;  %v1087_v61 = vor.u32 %v1238_v54, %v1086_v53 }
  0x4c   : > { %745 = vmatpush.bf16.msra.mxu2 %v1260_v23  ;;  %v1239_v58 = vld [vmem:[%s1508_s25 + $0x34] sm:$0xf0]  ;;  %v1237_v59 = vld [vmem:[%s1508_s25 + $0x2c] sm:$0xf]  ;;  %v1096_v60 = vld [vmem:[%s1508_s25 + $0x38] sm:$0xf0]  ;;  %v1091_v62 = vor.u32 %v1236_v55, %v1088_v56 }
  0x4d   : > { %764 = vmatpush.bf16.msra.mxu3 %v1268_v24  ;;  %v1095_v63 = vor.u32 %v1239_v58, %v1094_v57  ;;  %v1099_v0 = vor.u32 %v1237_v59, %v1096_v60  ;;  %v396_v9 = vld [vmem:[#allocation2 + $0x10] sm:$0xff]  ;;  %v397_v16 = vld [vmem:[#allocation2] sm:$0xff] }
  0x4e   : > { %708 = vmatpush.bf16.msra.mxu0 %v1243_v25  ;;  %v398_v25 = vld [vmem:[#allocation2 + $0x18] sm:$0xff] }
  0x4f   : > { %727 = vmatpush.bf16.msra.mxu1 %v1251_v26 }
  0x50   : > { %746 = vmatpush.bf16.msra.mxu2 %v1259_v27 }
  0x51   : > { %765 = vmatpush.bf16.msra.mxu3 %v1267_v28 }
  0x52   : > { %709 = vmatpush.bf16.msra.mxu0 %v1242_v29 }
  0x53   : > { %728 = vmatpush.bf16.msra.mxu1 %v1250_v30 }
  0x54   : > { %747 = vmatpush.bf16.msra.mxu2 %v1258_v31 }
  0x55   : > { %766 = vmatpush.bf16.msra.mxu3 %v1266_v32 }
  0x56   : > { %710 = vmatpush.bf16.msra.mxu0 %v1241_v33  ;;  %v399_v33 = vld [vmem:[#allocation2 + $0x8] sm:$0xff] }
  0x57   : > { %729 = vmatpush.bf16.msra.mxu1 %v1249_v34 }
  0x58   : > { %748 = vmatpush.bf16.msra.mxu2 %v1257_v35 }
  0x59   : > { %767 = vmatpush.bf16.msra.mxu3 %v1265_v36 }
  0x5a   : > { %711 = vmatpush.bf16.msra.mxu0 %v1240_v37 }
  0x5b   : > { %730 = vmatpush.bf16.msra.mxu1 %v1248_v38 }
  0x5c   : > { %749 = vmatpush.bf16.msra.mxu2 %v1256_v39 }
  0x5d   : > { %768 = vmatpush.bf16.msra.mxu3 %v1264_v40  ;;  %712 = vmatmul.bf16.vlgmr.msra.gmra.mxu0 %v1071_v49 }
  0x5e   : > { %731 = vmatmul.bf16.vlgmr.msra.gmra.mxu1 %v1075_v50 }
  0x5f   : > { %750 = vmatmul.bf16.vlgmr.msra.gmra.mxu2 %v1079_v51 }
  0x60   : > { %769 = vmatmul.bf16.vlgmr.msra.gmra.mxu3 %v1083_v52 }
  0x6d   : > { %717 = vmatmul.bf16.gmra.mxu0 %v1087_v61 }
  0x6e   : > { %736 = vmatmul.bf16.gmra.mxu1 %v1091_v62 }
  0x6f   : > { %755 = vmatmul.bf16.gmra.mxu2 %v1095_v63 }
  0x70   : > { %774 = vmatmul.bf16.gmra.mxu3 %v1099_v0 }
  0xda   : > { %v713_v1 = vpop.f32.mrf.mxu0 }
  0xdb   : > { %v732_v2 = vpop.f32.mrf.mxu1 }
  0xdc   : > { %v733_v3 = vadd.f32 %v732_v2, %v713_v1 }
  0xe2   : > { %v751_v4 = vpop.f32.mrf.mxu2  ;;  %v715_v7 = vpop.f32.mrf.mxu0 }
  0xe3   : > { %v770_v5 = vpop.f32.mrf.mxu3  ;;  %v752_v6 = vadd.f32 %v751_v4, %v733_v3  ;;  %v734_v8 = vpop.f32.mrf.mxu1 }
  0xe4   : > { %v735_v12 = vadd.f32 %v734_v8, %v715_v7 }
  0xe5   : > { %v771_v10 = vadd.f32 %v770_v5, %v752_v6 }
  0xe7   : > { %v780_v11 = vadd.f32 %v771_v10, %v396_v9 }
  0xe9   : > { %784 = vst [vmem:[#allocation2 + $0x10] sm:$0xff] %v780_v11 }
  0xea   : > { %v753_v13 = vpop.f32.mrf.mxu2  ;;  %v718_v17 = vpop.f32.mrf.mxu0 }
  0xeb   : > { %v772_v14 = vpop.f32.mrf.mxu3  ;;  %v754_v15 = vadd.f32 %v753_v13, %v735_v12  ;;  %v737_v18 = vpop.f32.mrf.mxu1 }
  0xec   : > { %v738_v21 = vadd.f32 %v737_v18, %v718_v17 }
  0xed   : > { %v773_v19 = vadd.f32 %v772_v14, %v754_v15 }
  0xef   : > { %v781_v20 = vadd.f32 %v773_v19, %v397_v16 }
  0xf1   : > { %785 = vst [vmem:[#allocation2] sm:$0xff] %v781_v20 }
  0xf2   : > { %v756_v22 = vpop.f32.mrf.mxu2  ;;  %v720_v27 = vpop.f32.mrf.mxu0 }
  0xf3   : > { %v775_v23 = vpop.f32.mrf.mxu3  ;;  %v757_v24 = vadd.f32 %v756_v22, %v738_v21  ;;  %v739_v28 = vpop.f32.mrf.mxu1 }
  0xf4   : > { %v740_v30 = vadd.f32 %v739_v28, %v720_v27 }
  0xf5   : > { %v776_v26 = vadd.f32 %v775_v23, %v757_v24 }
  0xf7   : > { %v782_v29 = vadd.f32 %v776_v26, %v398_v25 }
  0xf9   : > { %786 = vst [vmem:[#allocation2 + $0x18] sm:$0xff] %v782_v29 }
  0xfa   : > { %v758_v31 = vpop.f32.mrf.mxu2 }
  0xfb   : > { %v759_v32 = vadd.f32 %v758_v31, %v740_v30  ;;  %v777_v34 = vpop.f32.mrf.mxu3 }
  0xfd   : > { %v778_v35 = vadd.f32 %v777_v34, %v759_v32  ;;  %791 = sbr.rel (%p1228_p13) target bundleno = 272 (0x110), region = 59 }
  0xff   : > { %v783_v36 = vadd.f32 %v778_v35, %v399_v33 }
 0x101   : > { %787 = vst [vmem:[#allocation2 + $0x8] sm:$0xff] %v783_v36 }
 0x102   : > { %v792_v37 = vld [vmem:[#allocation2 + $0x10] sm:$0xff]  ;;  %v793_v38 = vld [vmem:[#allocation2] sm:$0xff]  ;;  %v794_v39 = vld [vmem:[#allocation2 + $0x18] sm:$0xff] }
 0x103   : > { %v1275_v40 = vpack.c.bf16 %v793_v38, %v792_v37  ;;  %v804_v42 = vadd.f32 %v793_v38, %v792_v37  ;;  %v808_v43 = vmul.f32 %v792_v37, %v792_v37  ;;  %v809_v44 = vmul.f32 %v793_v38, %v793_v38 }
 0x104   : > { %v810_v47 = vmul.f32 %v794_v39, %v794_v39 }
 0x105   : > { %1276 = vst [vmem:[%s1491_s5] sm:$0xff] %v1275_v40   ;;  %v812_v49 = vadd.f32 %v809_v44, %v808_v43 }
 0x108   : > { %v795_v41 = vld [vmem:[#allocation2 + $0x8] sm:$0xff] }
 0x109   : > { %v1280_v45 = vpack.c.bf16 %v795_v41, %v794_v39  ;;  %v805_v46 = vadd.f32 %v795_v41, %v794_v39  ;;  %v811_v48 = vmul.f32 %v795_v41, %v795_v41 }
 0x10b   : > { %1282 = vst [vmem:[%s1491_s5 + $0x8] sm:$0xff] %v1280_v45   ;;  %v806_v50 = vadd.f32 %v805_v46, %v804_v42  ;;  %v813_v51 = vadd.f32 %v811_v48, %v810_v47 }
 0x10d   : > { %807 = vst [vmem:[%s1501_s12] sm:$0xff] %v806_v50  ;;  %v814_v52 = vadd.f32 %v813_v51, %v812_v49 }
 0x10f   : > { %815 = vst [vmem:[%s1506_s14] sm:$0xff] %v814_v52 }
 0x110 PF: > { %s15_s21 = sadd.s32 1, %s1394_s21   ;;  %s1592_s15 = smov %s1374_s16 }
 0x111   : > { %p12_p0 = scmp.ge.s32.totalorder %s15_s21, 10   ;;  %s1593_s16 = smov %s1473_s28 }
 0x112   : > { %s1594_s17 = smov %s1386_s19  ;;  %s1595_s18 = smov %s1390_s20 }
 0x113   : > { %s1596_s19 = smov %s1599_s22  ;;  %s1597_s20 = smov %s1603_s23 }
 0x114   :  { %14 = sbr.rel (!%p12_p0) target bundleno = 6 (0x6), region = 121 }

// kernel: _lambda_.12
= control target key start
LH: loop header
LB: loop body
LE: loop exit
PB: predicated region body
PF: predicated region fallthrough
CT: control target
= control target key end

     0   :  { %s1176_s0 = inlined_call_operand.vmem [shape: bf16[512,128], index: 0, kind: input, shape index: {}]   ;;  %s1177_s1 = inlined_call_operand.vmem [shape: f32[1,128], index: 1, kind: input, shape index: {}]   ;;  %s1178_s2 = inlined_call_operand.vmem [shape: f32[1,128], index: 2, kind: input, shape index: {}]   ;;  %s1179_s3 = inlined_call_operand.vmem [shape: bf16[512,128], index: 3, kind: output, shape index: {}]  }
   0x1   :  { %v475_v0 = vld [vmem:[%s1176_s0] sm:$0xff]   ;;  %v762_v5 = vld [vmem:[%s1176_s0 + $0x8] sm:$0xff]   ;;  %v763_v8 = vld [vmem:[%s1176_s0 + $0x10] sm:$0xff]  }
   0x2   :  { %v852_v1 = vld [vmem:[%s1177_s1] ss:$0 sm:$0xff]  ;;  %v476_v2 = vunpack.c.l.bf16 %v475_v0  ;;  %v477_v3 = vunpack.c.h.bf16 %v475_v0  ;;  %v480_v6 = vunpack.c.l.bf16 %v762_v5  ;;  %v481_v7 = vunpack.c.h.bf16 %v762_v5  ;;  %v764_v9 = vld [vmem:[%s1176_s0 + $0x18] sm:$0xff]   ;;  %v766_v35 = vld [vmem:[%s1176_s0 + $0x28] sm:$0xff]  }
   0x3   :  { %v857_v4 = vld [vmem:[%s1178_s2] ss:$0 sm:$0xff]  ;;  %v484_v12 = vunpack.c.l.bf16 %v763_v8  ;;  %v485_v13 = vunpack.c.h.bf16 %v763_v8  ;;  %v488_v16 = vunpack.c.l.bf16 %v764_v9  ;;  %v489_v17 = vunpack.c.h.bf16 %v764_v9  ;;  %v767_v40 = vld [vmem:[%s1176_s0 + $0x30] sm:$0xff]   ;;  %v768_v45 = vld [vmem:[%s1176_s0 + $0x38] sm:$0xff]  }
   0x4   :  { %v146_v10 = vmul.f32 %v852_v1, %v476_v2  ;;  %v147_v11 = vmul.f32 %v852_v1, %v477_v3  ;;  %v148_v14 = vmul.f32 %v852_v1, %v480_v6  ;;  %v149_v15 = vmul.f32 %v852_v1, %v481_v7  ;;  %v765_v26 = vld [vmem:[%s1176_s0 + $0x20] sm:$0xff]  }
   0x5   :  { %v150_v20 = vmul.f32 %v852_v1, %v484_v12  ;;  %v151_v21 = vmul.f32 %v852_v1, %v485_v13  ;;  %v152_v24 = vmul.f32 %v852_v1, %v488_v16  ;;  %v153_v25 = vmul.f32 %v852_v1, %v489_v17  ;;  %v769_v62 = vld [vmem:[%s1176_s0 + $0x40] sm:$0xff]   ;;  %v770_v13 = vld [vmem:[%s1176_s0 + $0x48] sm:$0xff]  }
   0x6   :  { %v214_v18 = vadd.f32 %v857_v4, %v146_v10  ;;  %v215_v19 = vadd.f32 %v857_v4, %v147_v11  ;;  %v216_v22 = vadd.f32 %v857_v4, %v148_v14  ;;  %v217_v23 = vadd.f32 %v857_v4, %v149_v15 }
   0x7   :  { %v218_v29 = vadd.f32 %v857_v4, %v150_v20  ;;  %v219_v30 = vadd.f32 %v857_v4, %v151_v21  ;;  %v220_v33 = vadd.f32 %v857_v4, %v152_v24  ;;  %v221_v34 = vadd.f32 %v857_v4, %v153_v25 }
   0x8   :  { %v278_v27 = vmax.f32 %v214_v18, 0.0  ;;  %v279_v28 = vmax.f32 %v215_v19, 0.0  ;;  %v280_v31 = vmax.f32 %v216_v22, 0.0  ;;  %v281_v32 = vmax.f32 %v217_v23, 0.0  ;;  %v771_v18 = vld [vmem:[%s1176_s0 + $0x50] sm:$0xff]   ;;  %v772_v23 = vld [vmem:[%s1176_s0 + $0x58] sm:$0xff]  }
   0x9   :  { %v282_v37 = vmax.f32 %v218_v29, 0.0  ;;  %v283_v38 = vmax.f32 %v219_v30, 0.0  ;;  %v492_v39 = vunpack.c.l.bf16 %v765_v26  ;;  %v284_v42 = vmax.f32 %v220_v33, 0.0 }
   0xa   :  { %v605_v36 = vpack.c.bf16 %v279_v28, %v278_v27  ;;  %v610_v41 = vpack.c.bf16 %v281_v32, %v280_v31  ;;  %v285_v43 = vmax.f32 %v221_v34, 0.0  ;;  %v493_v44 = vunpack.c.h.bf16 %v765_v26 }
   0xb   :  { %v615_v46 = vpack.c.bf16 %v283_v38, %v282_v37  ;;  %v154_v47 = vmul.f32 %v852_v1, %v492_v39  ;;  %v496_v48 = vunpack.c.l.bf16 %v766_v35  ;;  %v497_v49 = vunpack.c.h.bf16 %v766_v35 }
   0xc   :  { %606 = vst [vmem:[%s1179_s3] sm:$0xff] %v605_v36   ;;  %v620_v50 = vpack.c.bf16 %v285_v43, %v284_v42  ;;  %v155_v51 = vmul.f32 %v852_v1, %v493_v44  ;;  %v500_v52 = vunpack.c.l.bf16 %v767_v40  ;;  %v501_v53 = vunpack.c.h.bf16 %v767_v40  ;;  %v773_v36 = vld [vmem:[%s1176_s0 + $0x60] sm:$0xff]  }
   0xd   :  { %793 = vst [vmem:[%s1179_s3 + $0x8] sm:$0xff] %v610_v41   ;;  %v222_v54 = vadd.f32 %v857_v4, %v154_v47  ;;  %v156_v55 = vmul.f32 %v852_v1, %v496_v48  ;;  %v157_v56 = vmul.f32 %v852_v1, %v497_v49  ;;  %v504_v57 = vunpack.c.l.bf16 %v768_v45 }
   0xe   :  { %794 = vst [vmem:[%s1179_s3 + $0x10] sm:$0xff] %v615_v46   ;;  %v223_v58 = vadd.f32 %v857_v4, %v155_v51  ;;  %v158_v59 = vmul.f32 %v852_v1, %v500_v52  ;;  %v159_v60 = vmul.f32 %v852_v1, %v501_v53  ;;  %v505_v61 = vunpack.c.h.bf16 %v768_v45  ;;  %v774_v53 = vld [vmem:[%s1176_s0 + $0x68] sm:$0xff]  }
   0xf   :  { %795 = vst [vmem:[%s1179_s3 + $0x18] sm:$0xff] %v620_v50   ;;  %v286_v63 = vmax.f32 %v222_v54, 0.0  ;;  %v224_v0 = vadd.f32 %v857_v4, %v156_v55  ;;  %v225_v2 = vadd.f32 %v857_v4, %v157_v56  ;;  %v160_v3 = vmul.f32 %v852_v1, %v504_v57 }
  0x10   :  { %v287_v5 = vmax.f32 %v223_v58, 0.0  ;;  %v226_v6 = vadd.f32 %v857_v4, %v158_v59  ;;  %v227_v7 = vadd.f32 %v857_v4, %v159_v60  ;;  %v161_v8 = vmul.f32 %v852_v1, %v505_v61  ;;  %v775_v58 = vld [vmem:[%s1176_s0 + $0x70] sm:$0xff]  }
  0x11   :  { %v288_v9 = vmax.f32 %v224_v0, 0.0  ;;  %v289_v10 = vmax.f32 %v225_v2, 0.0  ;;  %v228_v11 = vadd.f32 %v857_v4, %v160_v3  ;;  %v508_v12 = vunpack.c.l.bf16 %v769_v62 }
  0x12   :  { %v625_v14 = vpack.c.bf16 %v287_v5, %v286_v63  ;;  %v290_v15 = vmax.f32 %v226_v6, 0.0  ;;  %v291_v16 = vmax.f32 %v227_v7, 0.0  ;;  %v229_v17 = vadd.f32 %v857_v4, %v161_v8  ;;  %v776_v63 = vld [vmem:[%s1176_s0 + $0x78] sm:$0xff]  }
  0x13   :  { %v630_v19 = vpack.c.bf16 %v289_v10, %v288_v9  ;;  %v292_v20 = vmax.f32 %v228_v11, 0.0  ;;  %v509_v21 = vunpack.c.h.bf16 %v769_v62  ;;  %v162_v22 = vmul.f32 %v852_v1, %v508_v12 }
  0x14   :  { %796 = vst [vmem:[%s1179_s3 + $0x20] sm:$0xff] %v625_v14   ;;  %v635_v24 = vpack.c.bf16 %v291_v16, %v290_v15  ;;  %v293_v25 = vmax.f32 %v229_v17, 0.0  ;;  %v512_v26 = vunpack.c.l.bf16 %v770_v13  ;;  %v513_v27 = vunpack.c.h.bf16 %v770_v13  ;;  %v777_v14 = vld [vmem:[%s1176_s0 + $0x80] sm:$0xff]  }
  0x15   :  { %797 = vst [vmem:[%s1179_s3 + $0x28] sm:$0xff] %v630_v19   ;;  %v163_v28 = vmul.f32 %v852_v1, %v509_v21  ;;  %v230_v29 = vadd.f32 %v857_v4, %v162_v22  ;;  %v516_v30 = vunpack.c.l.bf16 %v771_v18  ;;  %v517_v31 = vunpack.c.h.bf16 %v771_v18 }
  0x16   :  { %798 = vst [vmem:[%s1179_s3 + $0x30] sm:$0xff] %v635_v24   ;;  %v640_v32 = vpack.c.bf16 %v293_v25, %v292_v20  ;;  %v164_v33 = vmul.f32 %v852_v1, %v512_v26  ;;  %v165_v34 = vmul.f32 %v852_v1, %v513_v27  ;;  %v520_v35 = vunpack.c.l.bf16 %v772_v23  ;;  %v778_v27 = vld [vmem:[%s1176_s0 + $0x88] sm:$0xff]  }
  0x17   :  { %v231_v37 = vadd.f32 %v857_v4, %v163_v28  ;;  %v294_v38 = vmax.f32 %v230_v29, 0.0  ;;  %v166_v39 = vmul.f32 %v852_v1, %v516_v30  ;;  %v167_v40 = vmul.f32 %v852_v1, %v517_v31 }
  0x18   :  { %799 = vst [vmem:[%s1179_s3 + $0x38] sm:$0xff] %v640_v32   ;;  %v232_v41 = vadd.f32 %v857_v4, %v164_v33  ;;  %v233_v42 = vadd.f32 %v857_v4, %v165_v34  ;;  %v521_v43 = vunpack.c.h.bf16 %v772_v23  ;;  %v168_v44 = vmul.f32 %v852_v1, %v520_v35 }
  0x19   :  { %v295_v45 = vmax.f32 %v231_v37, 0.0  ;;  %v234_v46 = vadd.f32 %v857_v4, %v166_v39  ;;  %v235_v47 = vadd.f32 %v857_v4, %v167_v40  ;;  %v524_v48 = vunpack.c.l.bf16 %v773_v36 }
  0x1a   :  { %v296_v49 = vmax.f32 %v232_v41, 0.0  ;;  %v297_v50 = vmax.f32 %v233_v42, 0.0  ;;  %v169_v51 = vmul.f32 %v852_v1, %v521_v43  ;;  %v236_v52 = vadd.f32 %v857_v4, %v168_v44  ;;  %v780_v41 = vld [vmem:[%s1176_s0 + $0x98] sm:$0xff]  }
  0x1b   :  { %v645_v54 = vpack.c.bf16 %v295_v45, %v294_v38  ;;  %v298_v55 = vmax.f32 %v234_v46, 0.0  ;;  %v299_v56 = vmax.f32 %v235_v47, 0.0  ;;  %v525_v57 = vunpack.c.h.bf16 %v773_v36  ;;  %v779_v36 = vld [vmem:[%s1176_s0 + $0x90] sm:$0xff]  }
  0x1c   :  { %v650_v59 = vpack.c.bf16 %v297_v50, %v296_v49  ;;  %v237_v60 = vadd.f32 %v857_v4, %v169_v51  ;;  %v300_v61 = vmax.f32 %v236_v52, 0.0  ;;  %v170_v62 = vmul.f32 %v852_v1, %v524_v48 }
  0x1d   :  { %800 = vst [vmem:[%s1179_s3 + $0x40] sm:$0xff] %v645_v54   ;;  %v655_v0 = vpack.c.bf16 %v299_v56, %v298_v55  ;;  %v171_v2 = vmul.f32 %v852_v1, %v525_v57  ;;  %v528_v3 = vunpack.c.l.bf16 %v774_v53  ;;  %v529_v5 = vunpack.c.h.bf16 %v774_v53  ;;  %v781_v54 = vld [vmem:[%s1176_s0 + $0xa0] sm:$0xff]  }
  0x1e   :  { %801 = vst [vmem:[%s1179_s3 + $0x48] sm:$0xff] %v650_v59   ;;  %v301_v6 = vmax.f32 %v237_v60, 0.0  ;;  %v238_v7 = vadd.f32 %v857_v4, %v170_v62  ;;  %v532_v8 = vunpack.c.l.bf16 %v775_v58  ;;  %v533_v9 = vunpack.c.h.bf16 %v775_v58 }
  0x1f   :  { %802 = vst [vmem:[%s1179_s3 + $0x50] sm:$0xff] %v655_v0   ;;  %v239_v10 = vadd.f32 %v857_v4, %v171_v2  ;;  %v172_v11 = vmul.f32 %v852_v1, %v528_v3  ;;  %v173_v12 = vmul.f32 %v852_v1, %v529_v5  ;;  %v536_v13 = vunpack.c.l.bf16 %v776_v63  ;;  %v782_v5 = vld [vmem:[%s1176_s0 + $0xa8] sm:$0xff]  }
  0x20   :  { %v660_v15 = vpack.c.bf16 %v301_v6, %v300_v61  ;;  %v302_v16 = vmax.f32 %v238_v7, 0.0  ;;  %v174_v17 = vmul.f32 %v852_v1, %v532_v8  ;;  %v175_v18 = vmul.f32 %v852_v1, %v533_v9 }
  0x21   :  { %v303_v19 = vmax.f32 %v239_v10, 0.0  ;;  %v240_v20 = vadd.f32 %v857_v4, %v172_v11  ;;  %v241_v21 = vadd.f32 %v857_v4, %v173_v12  ;;  %v537_v22 = vunpack.c.h.bf16 %v776_v63 }
  0x22   :  { %803 = vst [vmem:[%s1179_s3 + $0x58] sm:$0xff] %v660_v15   ;;  %v242_v23 = vadd.f32 %v857_v4, %v174_v17  ;;  %v243_v24 = vadd.f32 %v857_v4, %v175_v18  ;;  %v176_v25 = vmul.f32 %v852_v1, %v536_v13  ;;  %v540_v26 = vunpack.c.l.bf16 %v777_v14 }
  0x23   :  { %v665_v28 = vpack.c.bf16 %v303_v19, %v302_v16  ;;  %v304_v29 = vmax.f32 %v240_v20, 0.0  ;;  %v305_v30 = vmax.f32 %v241_v21, 0.0  ;;  %v177_v31 = vmul.f32 %v852_v1, %v537_v22 }
  0x24   :  { %v306_v32 = vmax.f32 %v242_v23, 0.0  ;;  %v307_v33 = vmax.f32 %v243_v24, 0.0  ;;  %v244_v34 = vadd.f32 %v857_v4, %v176_v25  ;;  %v541_v35 = vunpack.c.h.bf16 %v777_v14  ;;  %v783_v14 = vld [vmem:[%s1176_s0 + $0xb0] sm:$0xff]   ;;  %v784_v23 = vld [vmem:[%s1176_s0 + $0xb8] sm:$0xff]  }
  0x25   :  { %804 = vst [vmem:[%s1179_s3 + $0x60] sm:$0xff] %v665_v28   ;;  %v670_v37 = vpack.c.bf16 %v305_v30, %v304_v29  ;;  %v245_v38 = vadd.f32 %v857_v4, %v177_v31  ;;  %v178_v39 = vmul.f32 %v852_v1, %v540_v26  ;;  %v544_v40 = vunpack.c.l.bf16 %v778_v27 }
  0x26   :  { %v675_v42 = vpack.c.bf16 %v307_v33, %v306_v32  ;;  %v308_v43 = vmax.f32 %v244_v34, 0.0  ;;  %v179_v44 = vmul.f32 %v852_v1, %v541_v35  ;;  %v545_v45 = vunpack.c.h.bf16 %v778_v27  ;;  %v785_v32 = vld [vmem:[%s1176_s0 + $0xc0] sm:$0xff]  }
  0x27   :  { %805 = vst [vmem:[%s1179_s3 + $0x68] sm:$0xff] %v670_v37   ;;  %v309_v46 = vmax.f32 %v245_v38, 0.0  ;;  %v246_v47 = vadd.f32 %v857_v4, %v178_v39  ;;  %v180_v48 = vmul.f32 %v852_v1, %v544_v40  ;;  %v548_v49 = vunpack.c.l.bf16 %v779_v36 }
  0x28   :  { %806 = vst [vmem:[%s1179_s3 + $0x70] sm:$0xff] %v675_v42   ;;  %v247_v50 = vadd.f32 %v857_v4, %v179_v44  ;;  %v181_v51 = vmul.f32 %v852_v1, %v545_v45  ;;  %v549_v52 = vunpack.c.h.bf16 %v779_v36  ;;  %v552_v53 = vunpack.c.l.bf16 %v780_v41  ;;  %v786_v45 = vld [vmem:[%s1176_s0 + $0xc8] sm:$0xff]  }
  0x29   :  { %v680_v55 = vpack.c.bf16 %v309_v46, %v308_v43  ;;  %v310_v56 = vmax.f32 %v246_v47, 0.0  ;;  %v248_v57 = vadd.f32 %v857_v4, %v180_v48  ;;  %v182_v58 = vmul.f32 %v852_v1, %v548_v49 }
  0x2a   :  { %v311_v59 = vmax.f32 %v247_v50, 0.0  ;;  %v249_v60 = vadd.f32 %v857_v4, %v181_v51  ;;  %v183_v61 = vmul.f32 %v852_v1, %v549_v52  ;;  %v553_v62 = vunpack.c.h.bf16 %v780_v41 }
  0x2b   :  { %807 = vst [vmem:[%s1179_s3 + $0x78] sm:$0xff] %v680_v55   ;;  %v312_v63 = vmax.f32 %v248_v57, 0.0  ;;  %v250_v0 = vadd.f32 %v857_v4, %v182_v58  ;;  %v184_v2 = vmul.f32 %v852_v1, %v552_v53  ;;  %v556_v3 = vunpack.c.l.bf16 %v781_v54 }
  0x2c   :  { %v685_v6 = vpack.c.bf16 %v311_v59, %v310_v56  ;;  %v313_v7 = vmax.f32 %v249_v60, 0.0  ;;  %v251_v8 = vadd.f32 %v857_v4, %v183_v61  ;;  %v185_v9 = vmul.f32 %v852_v1, %v553_v62 }
  0x2d   :  { %v314_v10 = vmax.f32 %v250_v0, 0.0  ;;  %v252_v11 = vadd.f32 %v857_v4, %v184_v2  ;;  %v557_v12 = vunpack.c.h.bf16 %v781_v54  ;;  %v186_v13 = vmul.f32 %v852_v1, %v556_v3  ;;  %v787_v54 = vld [vmem:[%s1176_s0 + $0xd0] sm:$0xff]  }
  0x2e   :  { %808 = vst [vmem:[%s1179_s3 + $0x80] sm:$0xff] %v685_v6   ;;  %v690_v15 = vpack.c.bf16 %v313_v7, %v312_v63  ;;  %v315_v16 = vmax.f32 %v251_v8, 0.0  ;;  %v253_v17 = vadd.f32 %v857_v4, %v185_v9  ;;  %v560_v18 = vunpack.c.l.bf16 %v782_v5  ;;  %v788_v63 = vld [vmem:[%s1176_s0 + $0xd8] sm:$0xff]  }
  0x2f   :  { %v316_v19 = vmax.f32 %v252_v11, 0.0  ;;  %v187_v20 = vmul.f32 %v852_v1, %v557_v12  ;;  %v254_v21 = vadd.f32 %v857_v4, %v186_v13  ;;  %v561_v22 = vunpack.c.h.bf16 %v782_v5 }
  0x30   :  { %809 = vst [vmem:[%s1179_s3 + $0x88] sm:$0xff] %v690_v15   ;;  %v695_v24 = vpack.c.bf16 %v315_v16, %v314_v10  ;;  %v317_v25 = vmax.f32 %v253_v17, 0.0  ;;  %v188_v26 = vmul.f32 %v852_v1, %v560_v18  ;;  %v564_v27 = vunpack.c.l.bf16 %v783_v14  ;;  %v789_v10 = vld [vmem:[%s1176_s0 + $0xe0] sm:$0xff]  }
  0x31   :  { %v255_v28 = vadd.f32 %v857_v4, %v187_v20  ;;  %v318_v29 = vmax.f32 %v254_v21, 0.0  ;;  %v189_v30 = vmul.f32 %v852_v1, %v561_v22  ;;  %v565_v31 = vunpack.c.h.bf16 %v783_v14 }
  0x32   :  { %810 = vst [vmem:[%s1179_s3 + $0x90] sm:$0xff] %v695_v24   ;;  %v700_v33 = vpack.c.bf16 %v317_v25, %v316_v19  ;;  %v256_v34 = vadd.f32 %v857_v4, %v188_v26  ;;  %v190_v35 = vmul.f32 %v852_v1, %v564_v27  ;;  %v568_v36 = vunpack.c.l.bf16 %v784_v23 }
  0x33   :  { %v319_v37 = vmax.f32 %v255_v28, 0.0  ;;  %v257_v38 = vadd.f32 %v857_v4, %v189_v30  ;;  %v191_v39 = vmul.f32 %v852_v1, %v565_v31  ;;  %v569_v40 = vunpack.c.h.bf16 %v784_v23  ;;  %v790_v23 = vld [vmem:[%s1176_s0 + $0xe8] sm:$0xff]  }
  0x34   :  { %811 = vst [vmem:[%s1179_s3 + $0x98] sm:$0xff] %v700_v33   ;;  %v320_v41 = vmax.f32 %v256_v34, 0.0  ;;  %v258_v42 = vadd.f32 %v857_v4, %v190_v35  ;;  %v192_v43 = vmul.f32 %v852_v1, %v568_v36  ;;  %v572_v44 = vunpack.c.l.bf16 %v785_v32 }
  0x35   :  { %v705_v46 = vpack.c.bf16 %v319_v37, %v318_v29  ;;  %v321_v47 = vmax.f32 %v257_v38, 0.0  ;;  %v259_v48 = vadd.f32 %v857_v4, %v191_v39  ;;  %v193_v49 = vmul.f32 %v852_v1, %v569_v40 }
  0x36   :  { %v322_v50 = vmax.f32 %v258_v42, 0.0  ;;  %v260_v51 = vadd.f32 %v857_v4, %v192_v43  ;;  %v573_v52 = vunpack.c.h.bf16 %v785_v32  ;;  %v194_v53 = vmul.f32 %v852_v1, %v572_v44  ;;  %v791_v32 = vld [vmem:[%s1176_s0 + $0xf0] sm:$0xff]  }
  0x37   :  { %812 = vst [vmem:[%s1179_s3 + $0xa0] sm:$0xff] %v705_v46   ;;  %v710_v55 = vpack.c.bf16 %v321_v47, %v320_v41  ;;  %v323_v56 = vmax.f32 %v259_v48, 0.0  ;;  %v261_v57 = vadd.f32 %v857_v4, %v193_v49  ;;  %v576_v58 = vunpack.c.l.bf16 %v786_v45  ;;  %v792_v41 = vld [vmem:[%s1176_s0 + $0xf8] sm:$0xff]  }
  0x38   :  { %v324_v59 = vmax.f32 %v260_v51, 0.0  ;;  %v195_v60 = vmul.f32 %v852_v1, %v573_v52  ;;  %v262_v61 = vadd.f32 %v857_v4, %v194_v53  ;;  %v577_v62 = vunpack.c.h.bf16 %v786_v45 }
  0x39   :  { %813 = vst [vmem:[%s1179_s3 + $0xa8] sm:$0xff] %v710_v55   ;;  %v715_v0 = vpack.c.bf16 %v323_v56, %v322_v50  ;;  %v325_v2 = vmax.f32 %v261_v57, 0.0  ;;  %v196_v3 = vmul.f32 %v852_v1, %v576_v58  ;;  %v580_v5 = vunpack.c.l.bf16 %v787_v54 }
  0x3a   :  { %v263_v6 = vadd.f32 %v857_v4, %v195_v60  ;;  %v326_v7 = vmax.f32 %v262_v61, 0.0  ;;  %v197_v8 = vmul.f32 %v852_v1, %v577_v62  ;;  %v581_v9 = vunpack.c.h.bf16 %v787_v54 }
  0x3b   :  { %814 = vst [vmem:[%s1179_s3 + $0xb0] sm:$0xff] %v715_v0   ;;  %v720_v11 = vpack.c.bf16 %v325_v2, %v324_v59  ;;  %v264_v12 = vadd.f32 %v857_v4, %v196_v3  ;;  %v198_v13 = vmul.f32 %v852_v1, %v580_v5  ;;  %v584_v14 = vunpack.c.l.bf16 %v788_v63 }
  0x3c   :  { %v327_v15 = vmax.f32 %v263_v6, 0.0  ;;  %v265_v16 = vadd.f32 %v857_v4, %v197_v8  ;;  %v199_v17 = vmul.f32 %v852_v1, %v581_v9  ;;  %v585_v18 = vunpack.c.h.bf16 %v788_v63 }
  0x3d   :  { %815 = vst [vmem:[%s1179_s3 + $0xb8] sm:$0xff] %v720_v11   ;;  %v328_v19 = vmax.f32 %v264_v12, 0.0  ;;  %v266_v20 = vadd.f32 %v857_v4, %v198_v13  ;;  %v200_v21 = vmul.f32 %v852_v1, %v584_v14  ;;  %v588_v22 = vunpack.c.l.bf16 %v789_v10 }
  0x3e   :  { %v725_v24 = vpack.c.bf16 %v327_v15, %v326_v7  ;;  %v329_v25 = vmax.f32 %v265_v16, 0.0  ;;  %v267_v26 = vadd.f32 %v857_v4, %v199_v17  ;;  %v201_v27 = vmul.f32 %v852_v1, %v585_v18 }
  0x3f   :  { %v330_v28 = vmax.f32 %v266_v20, 0.0  ;;  %v268_v29 = vadd.f32 %v857_v4, %v200_v21  ;;  %v589_v30 = vunpack.c.h.bf16 %v789_v10  ;;  %v202_v31 = vmul.f32 %v852_v1, %v588_v22 }
  0x40   :  { %816 = vst [vmem:[%s1179_s3 + $0xc0] sm:$0xff] %v725_v24   ;;  %v730_v33 = vpack.c.bf16 %v329_v25, %v328_v19  ;;  %v331_v34 = vmax.f32 %v267_v26, 0.0  ;;  %v269_v35 = vadd.f32 %v857_v4, %v201_v27  ;;  %v592_v36 = vunpack.c.l.bf16 %v790_v23 }
  0x41   :  { %v332_v37 = vmax.f32 %v268_v29, 0.0  ;;  %v203_v38 = vmul.f32 %v852_v1, %v589_v30  ;;  %v270_v39 = vadd.f32 %v857_v4, %v202_v31  ;;  %v593_v40 = vunpack.c.h.bf16 %v790_v23 }
  0x42   :  { %817 = vst [vmem:[%s1179_s3 + $0xc8] sm:$0xff] %v730_v33   ;;  %v735_v42 = vpack.c.bf16 %v331_v34, %v330_v28  ;;  %v333_v43 = vmax.f32 %v269_v35, 0.0  ;;  %v204_v44 = vmul.f32 %v852_v1, %v592_v36  ;;  %v596_v45 = vunpack.c.l.bf16 %v791_v32 }
  0x43   :  { %v271_v46 = vadd.f32 %v857_v4, %v203_v38  ;;  %v334_v47 = vmax.f32 %v270_v39, 0.0  ;;  %v205_v48 = vmul.f32 %v852_v1, %v593_v40  ;;  %v597_v49 = vunpack.c.h.bf16 %v791_v32 }
  0x44   :  { %818 = vst [vmem:[%s1179_s3 + $0xd0] sm:$0xff] %v735_v42   ;;  %v740_v50 = vpack.c.bf16 %v333_v43, %v332_v37  ;;  %v272_v51 = vadd.f32 %v857_v4, %v204_v44  ;;  %v206_v52 = vmul.f32 %v852_v1, %v596_v45  ;;  %v600_v53 = vunpack.c.l.bf16 %v792_v41 }
  0x45   :  { %v335_v54 = vmax.f32 %v271_v46, 0.0  ;;  %v273_v55 = vadd.f32 %v857_v4, %v205_v48  ;;  %v207_v56 = vmul.f32 %v852_v1, %v597_v49  ;;  %v601_v57 = vunpack.c.h.bf16 %v792_v41 }
  0x46   :  { %819 = vst [vmem:[%s1179_s3 + $0xd8] sm:$0xff] %v740_v50   ;;  %v336_v58 = vmax.f32 %v272_v51, 0.0  ;;  %v274_v59 = vadd.f32 %v857_v4, %v206_v52  ;;  %v208_v60 = vmul.f32 %v852_v1, %v600_v53 }
  0x47   :  { %v745_v61 = vpack.c.bf16 %v335_v54, %v334_v47  ;;  %v337_v62 = vmax.f32 %v273_v55, 0.0  ;;  %v275_v63 = vadd.f32 %v857_v4, %v207_v56  ;;  %v209_v0 = vmul.f32 %v852_v1, %v601_v57 }
  0x48   :  { %v338_v2 = vmax.f32 %v274_v59, 0.0  ;;  %v276_v3 = vadd.f32 %v857_v4, %v208_v60 }
  0x49   :  { %820 = vst [vmem:[%s1179_s3 + $0xe0] sm:$0xff] %v745_v61   ;;  %v750_v5 = vpack.c.bf16 %v337_v62, %v336_v58  ;;  %v339_v6 = vmax.f32 %v275_v63, 0.0  ;;  %v277_v7 = vadd.f32 %v857_v4, %v209_v0 }
  0x4a   :  { %v340_v8 = vmax.f32 %v276_v3, 0.0 }
  0x4b   :  { %821 = vst [vmem:[%s1179_s3 + $0xe8] sm:$0xff] %v750_v5   ;;  %v755_v9 = vpack.c.bf16 %v339_v6, %v338_v2  ;;  %v341_v10 = vmax.f32 %v277_v7, 0.0 }
  0x4d   :  { %822 = vst [vmem:[%s1179_s3 + $0xf0] sm:$0xff] %v755_v9   ;;  %v760_v1 = vpack.c.bf16 %v341_v10, %v340_v8 }
  0x4f   :  { %823 = vst [vmem:[%s1179_s3 + $0xf8] sm:$0xff] %v760_v1  }

// kernel: _lambda_.11
= control target key start
LH: loop header
LB: loop body
LE: loop exit
PB: predicated region body
PF: predicated region fallthrough
CT: control target
= control target key end

     0   :  { %s1744_s15 = smov 0   ;;  %s1746_s16 = smov 0   ;;  %s1911_s0 = inlined_call_operand.vmem [shape: bf16[4,128,512], index: 0, kind: input, shape index: {}]   ;;  %s1912_s1 = inlined_call_operand.vmem [shape: bf16[4,512,128], index: 1, kind: input, shape index: {}]   ;;  %s1913_s2 = inlined_call_operand.vmem [shape: bf16[4,128,128], index: 2, kind: output, shape index: {0}]   ;;  %s1914_s3 = inlined_call_operand.vmem [shape: f32[4,8,128], index: 3, kind: output, shape index: {1}]   ;;  %s1915_s4 = inlined_call_operand.vmem [shape: f32[4,8,128], index: 4, kind: output, shape index: {2}]  }
   0x1   :  { %s1748_s17 = smov 0  }
   0x2 LB: > { %s34_s18 = sadd.s32 1, %s1713_s16  ;;  %p1290_p0 = scmp.ge.s32.totalorder %s1717_s17, 1  ;;  %s1717_s17 = sphi %s1748_s17, %s15_s17   ;;  %s1713_s16 = sphi %s1746_s16, %s1917_s16   ;;  %s1709_s15 = sphi %s1744_s15, %s1916_s15  }
   0x3   : > { %p36_p1 = scmp.ge.s32.totalorder %s34_s18, 4  ;;  %p221_p2 = scmp.lt.s32.totalorder %s1717_s17, 5 }
   0x5   : > { %s1919_s18 = smov (%p36_p1, %s34_s18), 0  ;;  %p222_p3 = pnand %p1290_p0, %p221_p2 }
   0x6   : > { %p288_p4 = scmp.lt.s32.totalorder (!%p222_p3), %s1709_s15, 3 }
   0x7   : > { %225 = sbr.rel (%p222_p3) target bundleno = 316 (0x13c), region = 28 }
   0xc   : > { %s1921_s15 = smov (!%p288_p4, %s1709_s15), 3 }
   0xd   : > { %s1557_s19 = sshll.u32 %s1921_s15, 8  ;;  %s1559_s26 = sshll.u32 %s1921_s15, 6 }
   0xe   : > { %s1770_s22 = scalar_lea.vmem %s1912_s1, %s1557_s19  ;;  %s1803_s25 = scalar_lea.vmem %s1911_s0, %s1557_s19 }
   0xf   : > { %v1599_v0 = vld [vmem:[%s1770_s22 + $0x38] sm:$0xff]  ;;  %v1598_v4 = vld [vmem:[%s1770_s22 + $0x30] sm:$0xff]  ;;  %v1597_v8 = vld [vmem:[%s1770_s22 + $0x28] sm:$0xff]  ;;  %s1879_s29 = scalar_lea.vmem %s1913_s2, %s1559_s26  ;;  %s1297_s30 = sshll.u32 %s1921_s15, 3 }
  0x10   : > { %v1607_v1 = vld [vmem:[%s1770_s22 + $0x78] sm:$0xff]  ;;  %787 = vmatpush.bf16.msra.mxu0 %v1599_v0  ;;  %v1606_v5 = vld [vmem:[%s1770_s22 + $0x70] sm:$0xff]  ;;  %v1605_v9 = vld [vmem:[%s1770_s22 + $0x68] sm:$0xff]  ;;  %s328_s7 = scalar_lea.vmem %s1914_s3, %s1297_s30  ;;  %s338_s10 = scalar_lea.vmem %s1915_s4, %s1297_s30 }
  0x11   : > { %v1615_v2 = vld [vmem:[%s1770_s22 + $0xb8] sm:$0xff]  ;;  %836 = vmatpush.bf16.msra.mxu1 %v1607_v1  ;;  %v1614_v6 = vld [vmem:[%s1770_s22 + $0xb0] sm:$0xff]  ;;  %v1613_v10 = vld [vmem:[%s1770_s22 + $0xa8] sm:$0xff] }
  0x12   : > { %v1623_v3 = vld [vmem:[%s1770_s22 + $0xf8] sm:$0xff]  ;;  %885 = vmatpush.bf16.msra.mxu2 %v1615_v2  ;;  %v1622_v7 = vld [vmem:[%s1770_s22 + $0xf0] sm:$0xff]  ;;  %v1621_v11 = vld [vmem:[%s1770_s22 + $0xe8] sm:$0xff] }
  0x13   : > { %934 = vmatpush.bf16.msra.mxu3 %v1623_v3  ;;  %v1596_v12 = vld [vmem:[%s1770_s22 + $0x20] sm:$0xff]  ;;  %v1595_v16 = vld [vmem:[%s1770_s22 + $0x18] sm:$0xff]  ;;  %v1594_v20 = vld [vmem:[%s1770_s22 + $0x10] sm:$0xff] }
  0x14   : > { %788 = vmatpush.bf16.msra.mxu0 %v1598_v4  ;;  %v1604_v13 = vld [vmem:[%s1770_s22 + $0x60] sm:$0xff]  ;;  %v1603_v17 = vld [vmem:[%s1770_s22 + $0x58] sm:$0xff]  ;;  %v1602_v21 = vld [vmem:[%s1770_s22 + $0x50] sm:$0xff] }
  0x15   : > { %837 = vmatpush.bf16.msra.mxu1 %v1606_v5  ;;  %v1612_v14 = vld [vmem:[%s1770_s22 + $0xa0] sm:$0xff]  ;;  %v1611_v18 = vld [vmem:[%s1770_s22 + $0x98] sm:$0xff]  ;;  %v1610_v22 = vld [vmem:[%s1770_s22 + $0x90] sm:$0xff] }
  0x16   : > { %886 = vmatpush.bf16.msra.mxu2 %v1614_v6  ;;  %v1620_v15 = vld [vmem:[%s1770_s22 + $0xe0] sm:$0xff]  ;;  %v1619_v19 = vld [vmem:[%s1770_s22 + $0xd8] sm:$0xff]  ;;  %v1618_v23 = vld [vmem:[%s1770_s22 + $0xd0] sm:$0xff] }
  0x17   : > { %935 = vmatpush.bf16.msra.mxu3 %v1622_v7  ;;  %v1593_v24 = vld [vmem:[%s1770_s22 + $0x8] sm:$0xff]  ;;  %v1592_v28 = vld [vmem:[%s1770_s22] sm:$0xff]  ;;  %v1562_v33 = vld [vmem:[%s1803_s25 + $0xc] sm:$0xf0] }
  0x18   : > { %789 = vmatpush.bf16.msra.mxu0 %v1597_v8  ;;  %v1601_v25 = vld [vmem:[%s1770_s22 + $0x48] sm:$0xff]  ;;  %v1600_v29 = vld [vmem:[%s1770_s22 + $0x40] sm:$0xff]  ;;  %v1303_v35 = vld [vmem:[%s1803_s25 + $0x10] sm:$0xf0] }
  0x19   : > { %838 = vmatpush.bf16.msra.mxu1 %v1605_v9  ;;  %v1609_v26 = vld [vmem:[%s1770_s22 + $0x88] sm:$0xff]  ;;  %v1608_v30 = vld [vmem:[%s1770_s22 + $0x80] sm:$0xff]  ;;  %v1563_v37 = vld [vmem:[%s1803_s25 + $0x14] sm:$0xf0] }
  0x1a   : > { %887 = vmatpush.bf16.msra.mxu2 %v1613_v10  ;;  %v1617_v27 = vld [vmem:[%s1770_s22 + $0xc8] sm:$0xff]  ;;  %v1616_v31 = vld [vmem:[%s1770_s22 + $0xc0] sm:$0xff]  ;;  %v1311_v39 = vld [vmem:[%s1803_s25 + $0x18] sm:$0xf0] }
  0x1b   : > { %936 = vmatpush.bf16.msra.mxu3 %v1621_v11  ;;  %v1301_v32 = vld [vmem:[%s1803_s25] sm:$0xf]  ;;  %v1560_v34 = vld [vmem:[%s1803_s25 + $0x4] sm:$0xf]  ;;  %v1309_v36 = vld [vmem:[%s1803_s25 + $0x8] sm:$0xf] }
  0x1c   : > { %790 = vmatpush.bf16.msra.mxu0 %v1596_v12  ;;  %v1561_v38 = vld [vmem:[%s1803_s25 + $0xc] sm:$0xf]  ;;  %v1302_v40 = vor.u32 %v1562_v33, %v1301_v32  ;;  %v1306_v41 = vor.u32 %v1560_v34, %v1303_v35  ;;  %v1310_v42 = vor.u32 %v1563_v37, %v1309_v36  ;;  %v1317_v44 = vld [vmem:[%s1803_s25 + $0x20] sm:$0xf]  ;;  %v1566_v45 = vld [vmem:[%s1803_s25 + $0x2c] sm:$0xf0] }
  0x1d   : > { %839 = vmatpush.bf16.msra.mxu1 %v1604_v13  ;;  %v1314_v43 = vor.u32 %v1561_v38, %v1311_v39  ;;  %v1564_v46 = vld [vmem:[%s1803_s25 + $0x24] sm:$0xf]  ;;  %v1319_v47 = vld [vmem:[%s1803_s25 + $0x30] sm:$0xf0]  ;;  %v1325_v48 = vld [vmem:[%s1803_s25 + $0x28] sm:$0xf]  ;;  %v1318_v52 = vor.u32 %v1566_v45, %v1317_v44 }
  0x1e   : > { %888 = vmatpush.bf16.msra.mxu2 %v1612_v14  ;;  %v1567_v49 = vld [vmem:[%s1803_s25 + $0x34] sm:$0xf0]  ;;  %v1565_v50 = vld [vmem:[%s1803_s25 + $0x2c] sm:$0xf]  ;;  %v1327_v51 = vld [vmem:[%s1803_s25 + $0x38] sm:$0xf0]  ;;  %v1322_v53 = vor.u32 %v1564_v46, %v1319_v47 }
  0x1f   : > { %937 = vmatpush.bf16.msra.mxu3 %v1620_v15  ;;  %v1326_v54 = vor.u32 %v1567_v49, %v1325_v48  ;;  %v1330_v55 = vor.u32 %v1565_v50, %v1327_v51  ;;  %v1333_v56 = vld [vmem:[%s1803_s25 + $0x40] sm:$0xf]  ;;  %v1570_v57 = vld [vmem:[%s1803_s25 + $0x4c] sm:$0xf0]  ;;  %v1568_v58 = vld [vmem:[%s1803_s25 + $0x44] sm:$0xf] }
  0x20   : > { %791 = vmatpush.bf16.msra.mxu0 %v1595_v16  ;;  %v1335_v59 = vld [vmem:[%s1803_s25 + $0x50] sm:$0xf0]  ;;  %v1341_v60 = vld [vmem:[%s1803_s25 + $0x48] sm:$0xf]  ;;  %v1571_v61 = vld [vmem:[%s1803_s25 + $0x54] sm:$0xf0]  ;;  %v1334_v0 = vor.u32 %v1570_v57, %v1333_v56 }
  0x21   : > { %840 = vmatpush.bf16.msra.mxu1 %v1603_v17  ;;  %v1569_v62 = vld [vmem:[%s1803_s25 + $0x4c] sm:$0xf]  ;;  %v1343_v63 = vld [vmem:[%s1803_s25 + $0x58] sm:$0xf0]  ;;  %v1338_v1 = vor.u32 %v1568_v58, %v1335_v59  ;;  %v1342_v2 = vor.u32 %v1571_v61, %v1341_v60  ;;  %v1349_v4 = vld [vmem:[%s1803_s25 + $0x60] sm:$0xf] }
  0x22   : > { %889 = vmatpush.bf16.msra.mxu2 %v1611_v18  ;;  %v1346_v3 = vor.u32 %v1569_v62, %v1343_v63  ;;  %v1574_v5 = vld [vmem:[%s1803_s25 + $0x6c] sm:$0xf0]  ;;  %v1572_v6 = vld [vmem:[%s1803_s25 + $0x64] sm:$0xf]  ;;  %v1351_v7 = vld [vmem:[%s1803_s25 + $0x70] sm:$0xf0] }
  0x23   : > { %938 = vmatpush.bf16.msra.mxu3 %v1619_v19  ;;  %v1357_v8 = vld [vmem:[%s1803_s25 + $0x68] sm:$0xf]  ;;  %v1575_v9 = vld [vmem:[%s1803_s25 + $0x74] sm:$0xf0]  ;;  %v1573_v10 = vld [vmem:[%s1803_s25 + $0x6c] sm:$0xf]  ;;  %v1350_v12 = vor.u32 %v1574_v5, %v1349_v4  ;;  %v1354_v13 = vor.u32 %v1572_v6, %v1351_v7 }
  0x24   : > { %792 = vmatpush.bf16.msra.mxu0 %v1594_v20  ;;  %v1359_v11 = vld [vmem:[%s1803_s25 + $0x78] sm:$0xf0]  ;;  %v1358_v14 = vor.u32 %v1575_v9, %v1357_v8  ;;  %v1365_v16 = vld [vmem:[%s1803_s25 + $0x80] sm:$0xf]  ;;  %v1578_v17 = vld [vmem:[%s1803_s25 + $0x8c] sm:$0xf0] }
  0x25   : > { %841 = vmatpush.bf16.msra.mxu1 %v1602_v21  ;;  %v1362_v15 = vor.u32 %v1573_v10, %v1359_v11  ;;  %v1576_v18 = vld [vmem:[%s1803_s25 + $0x84] sm:$0xf]  ;;  %v1367_v19 = vld [vmem:[%s1803_s25 + $0x90] sm:$0xf0]  ;;  %v1373_v20 = vld [vmem:[%s1803_s25 + $0x88] sm:$0xf] }
  0x26   : > { %890 = vmatpush.bf16.msra.mxu2 %v1610_v22  ;;  %v1579_v21 = vld [vmem:[%s1803_s25 + $0x94] sm:$0xf0]  ;;  %v1577_v22 = vld [vmem:[%s1803_s25 + $0x8c] sm:$0xf]  ;;  %v1389_v32 = vld [vmem:[%s1803_s25 + $0xa8] sm:$0xf] }
  0x27   : > { %939 = vmatpush.bf16.msra.mxu3 %v1618_v23  ;;  %v1375_v23 = vld [vmem:[%s1803_s25 + $0x98] sm:$0xf0]  ;;  %v1583_v33 = vld [vmem:[%s1803_s25 + $0xb4] sm:$0xf0]  ;;  %v1581_v34 = vld [vmem:[%s1803_s25 + $0xac] sm:$0xf] }
  0x28   : > { %793 = vmatpush.bf16.msra.mxu0 %v1593_v24  ;;  %v1366_v24 = vor.u32 %v1578_v17, %v1365_v16  ;;  %v1391_v35 = vld [vmem:[%s1803_s25 + $0xb8] sm:$0xf0]  ;;  %v1390_v38 = vor.u32 %v1583_v33, %v1389_v32  ;;  %v1405_v44 = vld [vmem:[%s1803_s25 + $0xc8] sm:$0xf]  ;;  %v1587_v45 = vld [vmem:[%s1803_s25 + $0xd4] sm:$0xf0] }
  0x29   : > { %842 = vmatpush.bf16.msra.mxu1 %v1601_v25  ;;  %v1370_v25 = vor.u32 %v1576_v18, %v1367_v19  ;;  %v1394_v39 = vor.u32 %v1581_v34, %v1391_v35  ;;  %v1585_v46 = vld [vmem:[%s1803_s25 + $0xcc] sm:$0xf]  ;;  %v1407_v47 = vld [vmem:[%s1803_s25 + $0xd8] sm:$0xf0]  ;;  %v1406_v50 = vor.u32 %v1587_v45, %v1405_v44  ;;  %v1421_v56 = vld [vmem:[%s1803_s25 + $0xe8] sm:$0xf] }
  0x2a   : > { %891 = vmatpush.bf16.msra.mxu2 %v1609_v26  ;;  %v1374_v26 = vor.u32 %v1579_v21, %v1373_v20  ;;  %v1410_v51 = vor.u32 %v1585_v46, %v1407_v47  ;;  %v1591_v57 = vld [vmem:[%s1803_s25 + $0xf4] sm:$0xf0]  ;;  %v1589_v58 = vld [vmem:[%s1803_s25 + $0xec] sm:$0xf]  ;;  %v1423_v59 = vld [vmem:[%s1803_s25 + $0xf8] sm:$0xf0] }
  0x2b   : > { %940 = vmatpush.bf16.msra.mxu3 %v1617_v27  ;;  %v1378_v27 = vor.u32 %v1577_v22, %v1375_v23  ;;  %v1422_v62 = vor.u32 %v1591_v57, %v1421_v56  ;;  %v1426_v63 = vor.u32 %v1589_v58, %v1423_v59 }
  0x2c   : > { %794 = vmatpush.bf16.msra.mxu0 %v1592_v28  ;;  %v1381_v28 = vld [vmem:[%s1803_s25 + $0xa0] sm:$0xf] }
  0x2d   : > { %843 = vmatpush.bf16.msra.mxu1 %v1600_v29  ;;  %v1582_v29 = vld [vmem:[%s1803_s25 + $0xac] sm:$0xf0] }
  0x2e   : > { %892 = vmatpush.bf16.msra.mxu2 %v1608_v30  ;;  %v1580_v30 = vld [vmem:[%s1803_s25 + $0xa4] sm:$0xf]  ;;  %v1382_v36 = vor.u32 %v1582_v29, %v1381_v28 }
  0x2f   : > { %941 = vmatpush.bf16.msra.mxu3 %v1616_v31  ;;  %795 = vmatmul.bf16.vlgmr.msra.gmra.mxu0 %v1302_v40  ;;  %v1383_v31 = vld [vmem:[%s1803_s25 + $0xb0] sm:$0xf0]  ;;  %v1397_v40 = vld [vmem:[%s1803_s25 + $0xc0] sm:$0xf] }
  0x30   : > { %844 = vmatmul.bf16.vlgmr.msra.gmra.mxu1 %v1306_v41  ;;  %v1386_v37 = vor.u32 %v1580_v30, %v1383_v31  ;;  %v1586_v41 = vld [vmem:[%s1803_s25 + $0xcc] sm:$0xf0] }
  0x31   : > { %893 = vmatmul.bf16.vlgmr.msra.gmra.mxu2 %v1310_v42  ;;  %v1584_v42 = vld [vmem:[%s1803_s25 + $0xc4] sm:$0xf]  ;;  %v1398_v48 = vor.u32 %v1586_v41, %v1397_v40 }
  0x32   : > { %942 = vmatmul.bf16.vlgmr.msra.gmra.mxu3 %v1314_v43  ;;  %v1399_v43 = vld [vmem:[%s1803_s25 + $0xd0] sm:$0xf0] }
  0x33   : > { %v1402_v49 = vor.u32 %v1584_v42, %v1399_v43 }
  0x3f   : > { %800 = vmatmul.bf16.gmra.mxu0 %v1318_v52  ;;  %v1413_v52 = vld [vmem:[%s1803_s25 + $0xe0] sm:$0xf] }
  0x40   : > { %849 = vmatmul.bf16.gmra.mxu1 %v1322_v53  ;;  %v1590_v53 = vld [vmem:[%s1803_s25 + $0xec] sm:$0xf0] }
  0x41   : > { %898 = vmatmul.bf16.gmra.mxu2 %v1326_v54  ;;  %v1588_v54 = vld [vmem:[%s1803_s25 + $0xe4] sm:$0xf]  ;;  %v1414_v60 = vor.u32 %v1590_v53, %v1413_v52 }
  0x42   : > { %947 = vmatmul.bf16.gmra.mxu3 %v1330_v55  ;;  %v1415_v55 = vld [vmem:[%s1803_s25 + $0xf0] sm:$0xf0] }
  0x43   : > { %v1418_v61 = vor.u32 %v1588_v54, %v1415_v55 }
  0x4f   : > { %805 = vmatmul.bf16.gmra.mxu0 %v1334_v0 }
  0x50   : > { %854 = vmatmul.bf16.gmra.mxu1 %v1338_v1 }
  0x51   : > { %903 = vmatmul.bf16.gmra.mxu2 %v1342_v2 }
  0x52   : > { %952 = vmatmul.bf16.gmra.mxu3 %v1346_v3 }
  0x5f   : > { %810 = vmatmul.bf16.gmra.mxu0 %v1350_v12 }
  0x60   : > { %859 = vmatmul.bf16.gmra.mxu1 %v1354_v13 }
  0x61   : > { %908 = vmatmul.bf16.gmra.mxu2 %v1358_v14 }
  0x62   : > { %957 = vmatmul.bf16.gmra.mxu3 %v1362_v15 }
  0x6f   : > { %815 = vmatmul.bf16.gmra.mxu0 %v1366_v24 }
  0x70   : > { %864 = vmatmul.bf16.gmra.mxu1 %v1370_v25 }
  0x71   : > { %913 = vmatmul.bf16.gmra.mxu2 %v1374_v26 }
  0x72   : > { %962 = vmatmul.bf16.gmra.mxu3 %v1378_v27 }
  0x7f   : > { %820 = vmatmul.bf16.gmra.mxu0 %v1382_v36 }
  0x80   : > { %869 = vmatmul.bf16.gmra.mxu1 %v1386_v37 }
  0x81   : > { %918 = vmatmul.bf16.gmra.mxu2 %v1390_v38 }
  0x82   : > { %967 = vmatmul.bf16.gmra.mxu3 %v1394_v39 }
  0x8f   : > { %825 = vmatmul.bf16.gmra.mxu0 %v1398_v48 }
  0x90   : > { %874 = vmatmul.bf16.gmra.mxu1 %v1402_v49 }
  0x91   : > { %923 = vmatmul.bf16.gmra.mxu2 %v1406_v50 }
  0x92   : > { %972 = vmatmul.bf16.gmra.mxu3 %v1410_v51 }
  0x9f   : > { %830 = vmatmul.bf16.gmra.mxu0 %v1414_v60 }
  0xa0   : > { %879 = vmatmul.bf16.gmra.mxu1 %v1418_v61 }
  0xa1   : > { %928 = vmatmul.bf16.gmra.mxu2 %v1422_v62 }
  0xa2   : > { %977 = vmatmul.bf16.gmra.mxu3 %v1426_v63 }
  0xac   : > { %v796_v0 = vpop.f32.mrf.mxu0 }
  0xad   : > { %v845_v1 = vpop.f32.mrf.mxu1 }
  0xae   : > { %v846_v4 = vadd.f32 %v845_v1, %v796_v0 }
  0xb4   : > { %v894_v2 = vpop.f32.mrf.mxu2  ;;  %v798_v5 = vpop.f32.mrf.mxu0 }
  0xb5   : > { %v943_v3 = vpop.f32.mrf.mxu3  ;;  %v847_v6 = vpop.f32.mrf.mxu1  ;;  %v895_v7 = vadd.f32 %v894_v2, %v846_v4 }
  0xb6   : > { %v848_v8 = vadd.f32 %v847_v6, %v798_v5 }
  0xb7   : > { %v944_v11 = vadd.f32 %v943_v3, %v895_v7 }
  0xb9   : > { %v1031_v16 = vmul.f32 %v944_v11, %v944_v11 }
  0xbc   : > { %v896_v9 = vpop.f32.mrf.mxu2  ;;  %v801_v13 = vpop.f32.mrf.mxu0 }
  0xbd   : > { %v945_v10 = vpop.f32.mrf.mxu3  ;;  %v897_v12 = vadd.f32 %v896_v9, %v848_v8  ;;  %v850_v14 = vpop.f32.mrf.mxu1 }
  0xbe   : > { %v851_v23 = vadd.f32 %v850_v14, %v801_v13 }
  0xbf   : > { %v946_v15 = vadd.f32 %v945_v10, %v897_v12 }
  0xc1   : > { %v1627_v17 = vpack.c.bf16 %v946_v15, %v944_v11  ;;  %v1015_v18 = vadd.f32 %v946_v15, %v944_v11  ;;  %v1032_v19 = vmul.f32 %v946_v15, %v946_v15 }
  0xc3   : > { %1628 = vst [vmem:[%s1879_s29] sm:$0xff] %v1627_v17   ;;  %v1047_v20 = vadd.f32 %v1032_v19, %v1031_v16 }
  0xc4   : > { %v899_v21 = vpop.f32.mrf.mxu2  ;;  %v803_v24 = vpop.f32.mrf.mxu0 }
  0xc5   : > { %v948_v22 = vpop.f32.mrf.mxu3  ;;  %v852_v25 = vpop.f32.mrf.mxu1  ;;  %v900_v26 = vadd.f32 %v899_v21, %v851_v23 }
  0xc6   : > { %v853_v27 = vadd.f32 %v852_v25, %v803_v24 }
  0xc7   : > { %v949_v30 = vadd.f32 %v948_v22, %v900_v26 }
  0xc9   : > { %v1033_v35 = vmul.f32 %v949_v30, %v949_v30 }
  0xcc   : > { %v901_v28 = vpop.f32.mrf.mxu2  ;;  %v806_v32 = vpop.f32.mrf.mxu0 }
  0xcd   : > { %v950_v29 = vpop.f32.mrf.mxu3  ;;  %v902_v31 = vadd.f32 %v901_v28, %v853_v27  ;;  %v855_v33 = vpop.f32.mrf.mxu1 }
  0xce   : > { %v856_v44 = vadd.f32 %v855_v33, %v806_v32 }
  0xcf   : > { %v951_v34 = vadd.f32 %v950_v29, %v902_v31 }
  0xd1   : > { %v1632_v36 = vpack.c.bf16 %v951_v34, %v949_v30  ;;  %v1016_v37 = vadd.f32 %v951_v34, %v949_v30  ;;  %v1034_v38 = vmul.f32 %v951_v34, %v951_v34 }
  0xd3   : > { %1664 = vst [vmem:[%s1879_s29 + $0x8] sm:$0xff] %v1632_v36   ;;  %v1023_v39 = vadd.f32 %v1016_v37, %v1015_v18  ;;  %v1048_v40 = vadd.f32 %v1034_v38, %v1033_v35 }
  0xd4   : > { %v904_v41 = vpop.f32.mrf.mxu2  ;;  %v808_v45 = vpop.f32.mrf.mxu0 }
  0xd5   : > { %v953_v42 = vpop.f32.mrf.mxu3  ;;  %v1055_v43 = vadd.f32 %v1048_v40, %v1047_v20  ;;  %v857_v46 = vpop.f32.mrf.mxu1  ;;  %v905_v47 = vadd.f32 %v904_v41, %v856_v44 }
  0xd6   : > { %v858_v48 = vadd.f32 %v857_v46, %v808_v45 }
  0xd7   : > { %v954_v51 = vadd.f32 %v953_v42, %v905_v47 }
  0xd9   : > { %v1035_v56 = vmul.f32 %v954_v51, %v954_v51 }
  0xdc   : > { %v906_v49 = vpop.f32.mrf.mxu2  ;;  %v811_v53 = vpop.f32.mrf.mxu0 }
  0xdd   : > { %v955_v50 = vpop.f32.mrf.mxu3  ;;  %v907_v52 = vadd.f32 %v906_v49, %v858_v48  ;;  %v860_v54 = vpop.f32.mrf.mxu1 }
  0xde   : > { %v861_v63 = vadd.f32 %v860_v54, %v811_v53 }
  0xdf   : > { %v956_v55 = vadd.f32 %v955_v50, %v907_v52 }
  0xe1   : > { %v1637_v57 = vpack.c.bf16 %v956_v55, %v954_v51  ;;  %v1017_v58 = vadd.f32 %v956_v55, %v954_v51  ;;  %v1036_v59 = vmul.f32 %v956_v55, %v956_v55 }
  0xe3   : > { %1665 = vst [vmem:[%s1879_s29 + $0x10] sm:$0xff] %v1637_v57   ;;  %v1049_v60 = vadd.f32 %v1036_v59, %v1035_v56 }
  0xe4   : > { %v909_v61 = vpop.f32.mrf.mxu2  ;;  %v813_v0 = vpop.f32.mrf.mxu0 }
  0xe5   : > { %v958_v62 = vpop.f32.mrf.mxu3  ;;  %v862_v1 = vpop.f32.mrf.mxu1  ;;  %v910_v2 = vadd.f32 %v909_v61, %v861_v63 }
  0xe6   : > { %v863_v3 = vadd.f32 %v862_v1, %v813_v0 }
  0xe7   : > { %v959_v6 = vadd.f32 %v958_v62, %v910_v2 }
  0xe9   : > { %v1037_v11 = vmul.f32 %v959_v6, %v959_v6 }
  0xec   : > { %v911_v4 = vpop.f32.mrf.mxu2  ;;  %v816_v8 = vpop.f32.mrf.mxu0 }
  0xed   : > { %v960_v5 = vpop.f32.mrf.mxu3  ;;  %v912_v7 = vadd.f32 %v911_v4, %v863_v3  ;;  %v865_v9 = vpop.f32.mrf.mxu1 }
  0xee   : > { %v866_v24 = vadd.f32 %v865_v9, %v816_v8 }
  0xef   : > { %v961_v10 = vadd.f32 %v960_v5, %v912_v7 }
  0xf1   : > { %v1642_v12 = vpack.c.bf16 %v961_v10, %v959_v6  ;;  %v1018_v13 = vadd.f32 %v961_v10, %v959_v6  ;;  %v1038_v14 = vmul.f32 %v961_v10, %v961_v10 }
  0xf3   : > { %1666 = vst [vmem:[%s1879_s29 + $0x18] sm:$0xff] %v1642_v12   ;;  %v1024_v15 = vadd.f32 %v1018_v13, %v1017_v58  ;;  %v1050_v16 = vadd.f32 %v1038_v14, %v1037_v11 }
  0xf4   : > { %v914_v17 = vpop.f32.mrf.mxu2  ;;  %v818_v21 = vpop.f32.mrf.mxu0 }
  0xf5   : > { %v963_v18 = vpop.f32.mrf.mxu3  ;;  %v1885_v19 = vadd.f32 %v1024_v15, %v1023_v39  ;;  %v1056_v20 = vadd.f32 %v1050_v16, %v1049_v60  ;;  %v867_v22 = vpop.f32.mrf.mxu1  ;;  %v915_v25 = vadd.f32 %v914_v17, %v866_v24 }
  0xf6   : > { %v868_v26 = vadd.f32 %v867_v22, %v818_v21 }
  0xf7   : > { %v1887_v23 = vadd.f32 %v1056_v20, %v1055_v43  ;;  %v964_v32 = vadd.f32 %v963_v18, %v915_v25 }
  0xf9   : > { %v1039_v15 = vmul.f32 %v964_v32, %v964_v32 }
  0xfc   : > { %v916_v27 = vpop.f32.mrf.mxu2  ;;  %v821_v30 = vpop.f32.mrf.mxu0 }
  0xfd   : > { %v965_v28 = vpop.f32.mrf.mxu3  ;;  %v917_v29 = vadd.f32 %v916_v27, %v868_v26  ;;  %v870_v31 = vpop.f32.mrf.mxu1 }
  0xfe   : > { %v871_v39 = vadd.f32 %v870_v31, %v821_v30 }
  0xff   : > { %v966_v33 = vadd.f32 %v965_v28, %v917_v29 }
 0x101   : > { %v1647_v34 = vpack.c.bf16 %v966_v33, %v964_v32  ;;  %v1040_v12 = vmul.f32 %v966_v33, %v966_v33  ;;  %v1019_v20 = vadd.f32 %v966_v33, %v964_v32 }
 0x103   : > { %1667 = vst [vmem:[%s1879_s29 + $0x20] sm:$0xff] %v1647_v34   ;;  %v1051_v29 = vadd.f32 %v1040_v12, %v1039_v15 }
 0x104   : > { %v919_v35 = vpop.f32.mrf.mxu2  ;;  %v823_v37 = vpop.f32.mrf.mxu0 }
 0x105   : > { %v968_v36 = vpop.f32.mrf.mxu3  ;;  %v872_v38 = vpop.f32.mrf.mxu1  ;;  %v920_v40 = vadd.f32 %v919_v35, %v871_v39 }
 0x106   : > { %v873_v41 = vadd.f32 %v872_v38, %v823_v37 }
 0x107   : > { %v969_v47 = vadd.f32 %v968_v36, %v920_v40 }
 0x109   : > { %v1041_v13 = vmul.f32 %v969_v47, %v969_v47 }
 0x10c   : > { %v921_v42 = vpop.f32.mrf.mxu2  ;;  %v826_v45 = vpop.f32.mrf.mxu0 }
 0x10d   : > { %v970_v43 = vpop.f32.mrf.mxu3  ;;  %v922_v44 = vadd.f32 %v921_v42, %v873_v41  ;;  %v875_v46 = vpop.f32.mrf.mxu1 }
 0x10e   : > { %v876_v54 = vadd.f32 %v875_v46, %v826_v45 }
 0x10f   : > { %v971_v48 = vadd.f32 %v970_v43, %v922_v44 }
 0x111   : > { %v1652_v49 = vpack.c.bf16 %v971_v48, %v969_v47  ;;  %v1042_v8 = vmul.f32 %v971_v48, %v971_v48  ;;  %v1020_v16 = vadd.f32 %v971_v48, %v969_v47 }
 0x113   : > { %1668 = vst [vmem:[%s1879_s29 + $0x28] sm:$0xff] %v1652_v49   ;;  %v1052_v21 = vadd.f32 %v1042_v8, %v1041_v13  ;;  %v1025_v30 = vadd.f32 %v1020_v16, %v1019_v20 }
 0x114   : > { %v924_v50 = vpop.f32.mrf.mxu2  ;;  %v828_v52 = vpop.f32.mrf.mxu0 }
 0x115   : > { %v973_v51 = vpop.f32.mrf.mxu3  ;;  %v877_v53 = vpop.f32.mrf.mxu1  ;;  %v925_v55 = vadd.f32 %v924_v50, %v876_v54  ;;  %v1057_v36 = vadd.f32 %v1052_v21, %v1051_v29 }
 0x116   : > { %v878_v56 = vadd.f32 %v877_v53, %v828_v52 }
 0x117   : > { %v974_v62 = vadd.f32 %v973_v51, %v925_v55 }
 0x119   : > { %v1043_v22 = vmul.f32 %v974_v62, %v974_v62 }
 0x11c   : > { %v926_v57 = vpop.f32.mrf.mxu2  ;;  %v831_v60 = vpop.f32.mrf.mxu0 }
 0x11d   : > { %v975_v58 = vpop.f32.mrf.mxu3  ;;  %v927_v59 = vadd.f32 %v926_v57, %v878_v56  ;;  %v880_v61 = vpop.f32.mrf.mxu1 }
 0x11e   : > { %v881_v3 = vadd.f32 %v880_v61, %v831_v60 }
 0x11f   : > { %v976_v63 = vadd.f32 %v975_v58, %v927_v59 }
 0x121   : > { %v1657_v0 = vpack.c.bf16 %v976_v63, %v974_v62  ;;  %v1044_v17 = vmul.f32 %v976_v63, %v976_v63  ;;  %v1021_v24 = vadd.f32 %v976_v63, %v974_v62 }
 0x123   : > { %1669 = vst [vmem:[%s1879_s29 + $0x30] sm:$0xff] %v1657_v0   ;;  %v1053_v31 = vadd.f32 %v1044_v17, %v1043_v22 }
 0x124   : > { %v929_v1 = vpop.f32.mrf.mxu2  ;;  %v833_v4 = vpop.f32.mrf.mxu0 }
 0x125   : > { %v978_v2 = vpop.f32.mrf.mxu3  ;;  %v882_v5 = vpop.f32.mrf.mxu1  ;;  %v930_v6 = vadd.f32 %v929_v1, %v881_v3 }
 0x126   : > { %v883_v7 = vadd.f32 %v882_v5, %v833_v4 }
 0x127   : > { %v979_v10 = vadd.f32 %v978_v2, %v930_v6 }
 0x129   : > { %v1045_v25 = vmul.f32 %v979_v10, %v979_v10 }
 0x12c   : > { %v931_v9 = vpop.f32.mrf.mxu2 }
 0x12d   : > { %v932_v11 = vadd.f32 %v931_v9, %v883_v7  ;;  %v980_v14 = vpop.f32.mrf.mxu3 }
 0x12f   : > { %v981_v18 = vadd.f32 %v980_v14, %v932_v11 }
 0x131   : > { %v1662_v26 = vpack.c.bf16 %v981_v18, %v979_v10  ;;  %v1022_v27 = vadd.f32 %v981_v18, %v979_v10  ;;  %v1046_v28 = vmul.f32 %v981_v18, %v981_v18 }
 0x133   : > { %1670 = vst [vmem:[%s1879_s29 + $0x38] sm:$0xff] %v1662_v26   ;;  %v1026_v34 = vadd.f32 %v1022_v27, %v1021_v24  ;;  %v1054_v35 = vadd.f32 %v1046_v28, %v1045_v25 }
 0x135   : > { %v1028_v37 = vadd.f32 %v1026_v34, %v1025_v30  ;;  %v1058_v38 = vadd.f32 %v1054_v35, %v1053_v31 }
 0x137   : > { %v1029_v32 = vadd.f32 %v1028_v37, %v1885_v19  ;;  %v1060_v33 = vadd.f32 %v1058_v38, %v1057_v36 }
 0x139   : > { %1030 = vst [vmem:[%s328_s7] sm:$0xff] %v1029_v32  ;;  %v1061_v39 = vadd.f32 %v1060_v33, %v1887_v23 }
 0x13b   : > { %1062 = vst [vmem:[%s338_s10] sm:$0xff] %v1061_v39 }
 0x13c PF: > { %s15_s17 = sadd.s32 1, %s1717_s17   ;;  %s1916_s15 = smov %s1713_s16 }
 0x13d   : > { %p12_p5 = scmp.ge.s32.totalorder %s15_s17, 6   ;;  %s1917_s16 = smov %s1919_s18 }
 0x13f   :  { %14 = sbr.rel (!%p12_p5) target bundleno = 2 (0x2), region = 85 }

// kernel: _lambda_.13
= control target key start
LH: loop header
LB: loop body
LE: loop exit
PB: predicated region body
PF: predicated region fallthrough
CT: control target
= control target key end

     0   :  { %s2022_s9 = smov 0   ;;  %s2024_s10 = smov 0   ;;  %s2588_s0 = inlined_call_operand.vmem [shape: bf16[4,512,256], index: 0, kind: input, shape index: {}]   ;;  %s2589_s1 = inlined_call_operand.vmem [shape: bf16[4,256,128], index: 1, kind: input, shape index: {}]   ;;  %s2590_s2 = inlined_call_operand.vmem [shape: f32[4,512,128], index: 2, kind: output, shape index: {}]  }
   0x1   :  { %s2026_s11 = smov 0   ;;  %s2028_s12 = smov 0  }
   0x2   :  { %s2030_s13 = smov 0  }
   0x3 LB: > { %s27_s14 = sadd.s32 1, %s1997_s11  ;;  %s31_s15 = sadd.s32 1, %s2001_s12  ;;  %s2005_s13 = sphi %s2030_s13, %s12_s13   ;;  %s2001_s12 = sphi %s2028_s12, %s2634_s12   ;;  %s1997_s11 = sphi %s2026_s11, %s2633_s11   ;;  %s1993_s10 = sphi %s2024_s10, %s2632_s10   ;;  %s1989_s9 = sphi %s2022_s9, %s2631_s9  }
   0x4   : > { %p29_p0 = scmp.ge.s32.totalorder %s27_s14, 2  ;;  %p1498_p1 = scmp.ge.s32.totalorder %s2005_s13, 1 }
   0x5   : > { %p158_p2 = scmp.lt.s32.totalorder %s2005_s13, 9 }
   0x6   : > { %s2636_s14 = smov (%p29_p0, %s27_s14), 0  ;;  %s2638_s15 = smov (!%p29_p0, %s31_s15), %s2001_s12 }
   0x7   : > { %p159_p3 = pnand %p1498_p1, %p158_p2  ;;  %p33_p4 = scmp.ge.s32.totalorder %s2638_s15, 4 }
   0x8   : > { %s1499_s16 = sshll.u32 (!%p159_p3), %s1989_s9, 5  ;;  %p201_p5 = scmp.lt.s32.totalorder (!%p159_p3), %s1993_s10, 3 }
   0x9   : > { %s2640_s15 = smov (%p33_p4, %s2638_s15), 0  ;;  %162 = sbr.rel (%p159_p3) target bundleno = 341 (0x155), region = 28 }
   0xa   : > { %p203_p6 = scmp.lt.s32.totalorder (!%p159_p3), %s1499_s16, 63 }
   0xe   : > { %s2642_s10 = smov (!%p201_p5, %s1993_s10), 3  ;;  %s2644_s16 = smov (!%p203_p6, %s1499_s16), 63 }
   0xf   : > { %s1501_s17 = sshll.u32 %s2642_s10, 7  ;;  %s1506_s18 = sshll.u32 %s2642_s10, 6 }
  0x10   : > { %s2063_s21 = scalar_lea.vmem %s2589_s1, %s1501_s17  ;;  %s2066_s22 = sadd.s32 %s1506_s18, %s2644_s16 }
  0x11   : > { %v1774_v0 = vld [vmem:[%s2063_s21 + $0x38] sm:$0xff]  ;;  %v1773_v2 = vld [vmem:[%s2063_s21 + $0x30] sm:$0xff]  ;;  %v1772_v4 = vld [vmem:[%s2063_s21 + $0x28] sm:$0xff]  ;;  %s1500_s23 = sshll.u32 %s2644_s16, 1  ;;  %s1507_s29 = sshll.u32 %s2066_s22, 3 }
  0x12   : > { %v1782_v1 = vld [vmem:[%s2063_s21 + $0x78] sm:$0xff]  ;;  %552 = vmatpush.bf16.msra.mxu0 %v1774_v0  ;;  %1783 = vmatpush.bf16.msra.mxu2 %v1774_v0  ;;  %v1781_v3 = vld [vmem:[%s2063_s21 + $0x70] sm:$0xff]  ;;  %v1780_v5 = vld [vmem:[%s2063_s21 + $0x68] sm:$0xff]  ;;  %s207_s24 = sadd.s32 %s1501_s17, %s1500_s23  ;;  %s2169_s4 = scalar_lea.vmem %s2590_s2, %s1507_s29 }
  0x13   : > { %641 = vmatpush.bf16.msra.mxu1 %v1782_v1  ;;  %1791 = vmatpush.bf16.msra.mxu3 %v1782_v1  ;;  %v1771_v6 = vld [vmem:[%s2063_s21 + $0x20] sm:$0xff]  ;;  %v1770_v8 = vld [vmem:[%s2063_s21 + $0x18] sm:$0xff]  ;;  %v1769_v10 = vld [vmem:[%s2063_s21 + $0x10] sm:$0xff]  ;;  %s1502_s25 = sshll.u32 %s207_s24, 2 }
  0x14   : > { %v1779_v7 = vld [vmem:[%s2063_s21 + $0x60] sm:$0xff]  ;;  %v1778_v9 = vld [vmem:[%s2063_s21 + $0x58] sm:$0xff]  ;;  %v1777_v11 = vld [vmem:[%s2063_s21 + $0x50] sm:$0xff]  ;;  %s2086_s28 = scalar_lea.vmem %s2588_s0, %s1502_s25 }
  0x15   : > { %v1768_v12 = vld [vmem:[%s2063_s21 + $0x8] sm:$0xff]  ;;  %v1767_v14 = vld [vmem:[%s2063_s21] sm:$0xff]  ;;  %v1518_v28 = vld [vmem:[%s2086_s28 + $0x10] sm:$0xf] }
  0x16   : > { %553 = vmatpush.bf16.msra.mxu0 %v1773_v2  ;;  %1784 = vmatpush.bf16.msra.mxu2 %v1773_v2  ;;  %v1776_v13 = vld [vmem:[%s2063_s21 + $0x48] sm:$0xff]  ;;  %v1775_v15 = vld [vmem:[%s2063_s21 + $0x40] sm:$0xff]  ;;  %v1738_v29 = vld [vmem:[%s2086_s28 + $0x14] sm:$0xf0] }
  0x17   : > { %642 = vmatpush.bf16.msra.mxu1 %v1781_v3  ;;  %1792 = vmatpush.bf16.msra.mxu3 %v1781_v3  ;;  %v1510_v16 = vld [vmem:[%s2086_s28] sm:$0xf]  ;;  %v1736_v17 = vld [vmem:[%s2086_s28 + $0x4] sm:$0xf0]  ;;  %v1735_v20 = vld [vmem:[%s2086_s28 + $0x4] sm:$0xf]  ;;  %v1519_v36 = vor.u32 %v1738_v29, %v1518_v28 }
  0x18   : > { %v1574_v18 = vld [vmem:[%s2086_s28 + $0x80] sm:$0xf]  ;;  %v1752_v19 = vld [vmem:[%s2086_s28 + $0x84] sm:$0xf0]  ;;  %v1512_v21 = vld [vmem:[%s2086_s28 + $0x8] sm:$0xf0]  ;;  %v1511_v24 = vor.u32 %v1736_v17, %v1510_v16 }
  0x19   : > { %v1751_v22 = vld [vmem:[%s2086_s28 + $0x84] sm:$0xf]  ;;  %v1576_v23 = vld [vmem:[%s2086_s28 + $0x88] sm:$0xf0]  ;;  %v1575_v25 = vor.u32 %v1752_v19, %v1574_v18  ;;  %v1515_v26 = vor.u32 %v1735_v20, %v1512_v21  ;;  %v1582_v30 = vld [vmem:[%s2086_s28 + $0x90] sm:$0xf] }
  0x1a   : > { %554 = vmatpush.bf16.msra.mxu0 %v1772_v4  ;;  %1785 = vmatpush.bf16.msra.mxu2 %v1772_v4  ;;  %v1579_v27 = vor.u32 %v1751_v22, %v1576_v23  ;;  %v1754_v31 = vld [vmem:[%s2086_s28 + $0x94] sm:$0xf0]  ;;  %v1737_v32 = vld [vmem:[%s2086_s28 + $0x14] sm:$0xf]  ;;  %v1520_v33 = vld [vmem:[%s2086_s28 + $0x18] sm:$0xf0] }
  0x1b   : > { %643 = vmatpush.bf16.msra.mxu1 %v1780_v5  ;;  %1793 = vmatpush.bf16.msra.mxu3 %v1780_v5  ;;  %v1753_v34 = vld [vmem:[%s2086_s28 + $0x94] sm:$0xf]  ;;  %v1584_v35 = vld [vmem:[%s2086_s28 + $0x98] sm:$0xf0]  ;;  %v1583_v37 = vor.u32 %v1754_v31, %v1582_v30  ;;  %v1523_v38 = vor.u32 %v1737_v32, %v1520_v33  ;;  %v1526_v40 = vld [vmem:[%s2086_s28 + $0x20] sm:$0xf] }
  0x1c   : > { %v1587_v39 = vor.u32 %v1753_v34, %v1584_v35  ;;  %v1740_v41 = vld [vmem:[%s2086_s28 + $0x24] sm:$0xf0]  ;;  %v1590_v42 = vld [vmem:[%s2086_s28 + $0xa0] sm:$0xf]  ;;  %v1739_v44 = vld [vmem:[%s2086_s28 + $0x24] sm:$0xf] }
  0x1d   : > { %v1756_v43 = vld [vmem:[%s2086_s28 + $0xa4] sm:$0xf0]  ;;  %v1528_v45 = vld [vmem:[%s2086_s28 + $0x28] sm:$0xf0]  ;;  %v1755_v46 = vld [vmem:[%s2086_s28 + $0xa4] sm:$0xf]  ;;  %v1527_v48 = vor.u32 %v1740_v41, %v1526_v40 }
  0x1e   : > { %555 = vmatpush.bf16.msra.mxu0 %v1771_v6  ;;  %1786 = vmatpush.bf16.msra.mxu2 %v1771_v6  ;;  %v1592_v47 = vld [vmem:[%s2086_s28 + $0xa8] sm:$0xf0]  ;;  %v1591_v49 = vor.u32 %v1756_v43, %v1590_v42  ;;  %v1531_v50 = vor.u32 %v1739_v44, %v1528_v45  ;;  %v1534_v52 = vld [vmem:[%s2086_s28 + $0x30] sm:$0xf]  ;;  %v1742_v53 = vld [vmem:[%s2086_s28 + $0x34] sm:$0xf0] }
  0x1f   : > { %644 = vmatpush.bf16.msra.mxu1 %v1779_v7  ;;  %1794 = vmatpush.bf16.msra.mxu3 %v1779_v7  ;;  %v1595_v51 = vor.u32 %v1755_v46, %v1592_v47  ;;  %v1598_v54 = vld [vmem:[%s2086_s28 + $0xb0] sm:$0xf]  ;;  %v1758_v55 = vld [vmem:[%s2086_s28 + $0xb4] sm:$0xf0]  ;;  %v1741_v56 = vld [vmem:[%s2086_s28 + $0x34] sm:$0xf]  ;;  %v1535_v60 = vor.u32 %v1742_v53, %v1534_v52 }
  0x20   : > { %v1536_v57 = vld [vmem:[%s2086_s28 + $0x38] sm:$0xf0]  ;;  %v1757_v58 = vld [vmem:[%s2086_s28 + $0xb4] sm:$0xf]  ;;  %v1599_v61 = vor.u32 %v1758_v55, %v1598_v54  ;;  %v1542_v0 = vld [vmem:[%s2086_s28 + $0x40] sm:$0xf] }
  0x21   : > { %v1600_v59 = vld [vmem:[%s2086_s28 + $0xb8] sm:$0xf0]  ;;  %v1539_v62 = vor.u32 %v1741_v56, %v1536_v57  ;;  %v1744_v1 = vld [vmem:[%s2086_s28 + $0x44] sm:$0xf0]  ;;  %v1606_v2 = vld [vmem:[%s2086_s28 + $0xc0] sm:$0xf] }
  0x22   : > { %556 = vmatpush.bf16.msra.mxu0 %v1770_v8  ;;  %1787 = vmatpush.bf16.msra.mxu2 %v1770_v8  ;;  %v1603_v63 = vor.u32 %v1757_v58, %v1600_v59  ;;  %v1760_v3 = vld [vmem:[%s2086_s28 + $0xc4] sm:$0xf0]  ;;  %v1743_v4 = vld [vmem:[%s2086_s28 + $0x44] sm:$0xf]  ;;  %v1544_v5 = vld [vmem:[%s2086_s28 + $0x48] sm:$0xf0]  ;;  %v1543_v8 = vor.u32 %v1744_v1, %v1542_v0 }
  0x23   : > { %645 = vmatpush.bf16.msra.mxu1 %v1778_v9  ;;  %1795 = vmatpush.bf16.msra.mxu3 %v1778_v9  ;;  %v1759_v6 = vld [vmem:[%s2086_s28 + $0xc4] sm:$0xf]  ;;  %v1608_v7 = vld [vmem:[%s2086_s28 + $0xc8] sm:$0xf0]  ;;  %v1607_v9 = vor.u32 %v1760_v3, %v1606_v2  ;;  %v1745_v16 = vld [vmem:[%s2086_s28 + $0x54] sm:$0xf] }
  0x24   : > { %v1552_v17 = vld [vmem:[%s2086_s28 + $0x58] sm:$0xf0]  ;;  %v1761_v18 = vld [vmem:[%s2086_s28 + $0xd4] sm:$0xf]  ;;  %v1747_v28 = vld [vmem:[%s2086_s28 + $0x64] sm:$0xf] }
  0x25   : > { %v1616_v19 = vld [vmem:[%s2086_s28 + $0xd8] sm:$0xf0]  ;;  %v1555_v22 = vor.u32 %v1745_v16, %v1552_v17  ;;  %v1560_v29 = vld [vmem:[%s2086_s28 + $0x68] sm:$0xf0]  ;;  %v1763_v30 = vld [vmem:[%s2086_s28 + $0xe4] sm:$0xf] }
  0x26   : > { %557 = vmatpush.bf16.msra.mxu0 %v1769_v10  ;;  %1788 = vmatpush.bf16.msra.mxu2 %v1769_v10  ;;  %v1547_v10 = vor.u32 %v1743_v4, %v1544_v5  ;;  %v1619_v23 = vor.u32 %v1761_v18, %v1616_v19  ;;  %v1624_v31 = vld [vmem:[%s2086_s28 + $0xe8] sm:$0xf0]  ;;  %v1563_v34 = vor.u32 %v1747_v28, %v1560_v29  ;;  %v1749_v40 = vld [vmem:[%s2086_s28 + $0x74] sm:$0xf]  ;;  %v1568_v41 = vld [vmem:[%s2086_s28 + $0x78] sm:$0xf0] }
  0x27   : > { %646 = vmatpush.bf16.msra.mxu1 %v1777_v11  ;;  %1796 = vmatpush.bf16.msra.mxu3 %v1777_v11  ;;  %v1611_v11 = vor.u32 %v1759_v6, %v1608_v7  ;;  %v1627_v35 = vor.u32 %v1763_v30, %v1624_v31  ;;  %v1765_v42 = vld [vmem:[%s2086_s28 + $0xf4] sm:$0xf]  ;;  %v1632_v43 = vld [vmem:[%s2086_s28 + $0xf8] sm:$0xf0]  ;;  %v1571_v46 = vor.u32 %v1749_v40, %v1568_v41 }
  0x28   : > { %v1635_v47 = vor.u32 %v1765_v42, %v1632_v43 }
  0x2a   : > { %558 = vmatpush.bf16.msra.mxu0 %v1768_v12  ;;  %1789 = vmatpush.bf16.msra.mxu2 %v1768_v12  ;;  %v1550_v12 = vld [vmem:[%s2086_s28 + $0x50] sm:$0xf] }
  0x2b   : > { %647 = vmatpush.bf16.msra.mxu1 %v1776_v13  ;;  %1797 = vmatpush.bf16.msra.mxu3 %v1776_v13  ;;  %v1746_v13 = vld [vmem:[%s2086_s28 + $0x54] sm:$0xf0] }
  0x2c   : > { %v1551_v20 = vor.u32 %v1746_v13, %v1550_v12 }
  0x2e   : > { %559 = vmatpush.bf16.msra.mxu0 %v1767_v14  ;;  %1790 = vmatpush.bf16.msra.mxu2 %v1767_v14  ;;  %v1614_v14 = vld [vmem:[%s2086_s28 + $0xd0] sm:$0xf] }
  0x2f   : > { %648 = vmatpush.bf16.msra.mxu1 %v1775_v15  ;;  %1798 = vmatpush.bf16.msra.mxu3 %v1775_v15  ;;  %v1762_v15 = vld [vmem:[%s2086_s28 + $0xd4] sm:$0xf0] }
  0x30   : > { %v1615_v21 = vor.u32 %v1762_v15, %v1614_v14 }
  0x31   : > { %560 = vmatmul.bf16.vlgmr.msra.gmra.mxu0 %v1511_v24  ;;  %600 = vmatmul.bf16.vlgmr.msra.gmra.mxu2 %v1575_v25  ;;  %v1558_v24 = vld [vmem:[%s2086_s28 + $0x60] sm:$0xf]  ;;  %v1748_v25 = vld [vmem:[%s2086_s28 + $0x64] sm:$0xf0] }
  0x32   : > { %649 = vmatmul.bf16.vlgmr.msra.gmra.mxu1 %v1515_v26  ;;  %689 = vmatmul.bf16.vlgmr.msra.gmra.mxu3 %v1579_v27  ;;  %v1622_v26 = vld [vmem:[%s2086_s28 + $0xe0] sm:$0xf]  ;;  %v1764_v27 = vld [vmem:[%s2086_s28 + $0xe4] sm:$0xf0]  ;;  %v1559_v32 = vor.u32 %v1748_v25, %v1558_v24 }
  0x33   : > { %v1623_v33 = vor.u32 %v1764_v27, %v1622_v26 }
  0x41   : > { %565 = vmatmul.bf16.gmra.mxu0 %v1519_v36  ;;  %605 = vmatmul.bf16.gmra.mxu2 %v1583_v37  ;;  %v1566_v36 = vld [vmem:[%s2086_s28 + $0x70] sm:$0xf]  ;;  %v1750_v37 = vld [vmem:[%s2086_s28 + $0x74] sm:$0xf0] }
  0x42   : > { %654 = vmatmul.bf16.gmra.mxu1 %v1523_v38  ;;  %694 = vmatmul.bf16.gmra.mxu3 %v1587_v39  ;;  %v1630_v38 = vld [vmem:[%s2086_s28 + $0xf0] sm:$0xf]  ;;  %v1766_v39 = vld [vmem:[%s2086_s28 + $0xf4] sm:$0xf0]  ;;  %v1567_v44 = vor.u32 %v1750_v37, %v1566_v36 }
  0x43   : > { %v1631_v45 = vor.u32 %v1766_v39, %v1630_v38 }
  0x51   : > { %570 = vmatmul.bf16.gmra.mxu0 %v1527_v48  ;;  %610 = vmatmul.bf16.gmra.mxu2 %v1591_v49 }
  0x52   : > { %659 = vmatmul.bf16.gmra.mxu1 %v1531_v50  ;;  %699 = vmatmul.bf16.gmra.mxu3 %v1595_v51 }
  0x61   : > { %575 = vmatmul.bf16.gmra.mxu0 %v1535_v60  ;;  %615 = vmatmul.bf16.gmra.mxu2 %v1599_v61 }
  0x62   : > { %664 = vmatmul.bf16.gmra.mxu1 %v1539_v62  ;;  %704 = vmatmul.bf16.gmra.mxu3 %v1603_v63 }
  0x71   : > { %580 = vmatmul.bf16.gmra.mxu0 %v1543_v8  ;;  %620 = vmatmul.bf16.gmra.mxu2 %v1607_v9 }
  0x72   : > { %669 = vmatmul.bf16.gmra.mxu1 %v1547_v10  ;;  %709 = vmatmul.bf16.gmra.mxu3 %v1611_v11 }
  0x81   : > { %585 = vmatmul.bf16.gmra.mxu0 %v1551_v20  ;;  %625 = vmatmul.bf16.gmra.mxu2 %v1615_v21 }
  0x82   : > { %674 = vmatmul.bf16.gmra.mxu1 %v1555_v22  ;;  %714 = vmatmul.bf16.gmra.mxu3 %v1619_v23 }
  0x91   : > { %590 = vmatmul.bf16.gmra.mxu0 %v1559_v32  ;;  %630 = vmatmul.bf16.gmra.mxu2 %v1623_v33 }
  0x92   : > { %679 = vmatmul.bf16.gmra.mxu1 %v1563_v34  ;;  %719 = vmatmul.bf16.gmra.mxu3 %v1627_v35 }
  0xa1   : > { %595 = vmatmul.bf16.gmra.mxu0 %v1567_v44  ;;  %635 = vmatmul.bf16.gmra.mxu2 %v1631_v45 }
  0xa2   : > { %684 = vmatmul.bf16.gmra.mxu1 %v1571_v46  ;;  %724 = vmatmul.bf16.gmra.mxu3 %v1635_v47 }
  0xae   : > { %v561_v48 = vpop.f32.mrf.mxu0 }
  0xaf   : > { %v650_v49 = vpop.f32.mrf.mxu1 }
  0xb0   : > { %v651_v50 = vadd.f32 %v650_v49, %v561_v48 }
  0xb2   : > { %v1700_v51 = vmul.f32 -1.442695, %v651_v50 }
  0xb4   : > { %1839 = vpow2.f32 %v1700_v51  ;;  %v601_v52 = vpop.f32.mrf.mxu2 }
  0xb5   : > { %v690_v53 = vpop.f32.mrf.mxu3 }
  0xb6   : > { %v691_v54 = vadd.f32 %v690_v53, %v601_v52  ;;  %v563_v55 = vpop.f32.mrf.mxu0 }
  0xb7   : > { %v652_v56 = vpop.f32.mrf.mxu1 }
  0xb8   : > { %v1716_v57 = vmul.f32 -1.442695, %v691_v54  ;;  %v653_v58 = vadd.f32 %v652_v56, %v563_v55 }
  0xba   : > { %v1840_v59 = vpop.eup %1839  ;;  %1841 = vpow2.f32 %v1716_v57  ;;  %v1701_v60 = vmul.f32 -1.442695, %v653_v58 }
  0xbb   : > { %v826_v61 = vadd.f32 1.0, %v1840_v59 }
  0xbc   : > { %1843 = vpow2.f32 %v1701_v60  ;;  %v603_v62 = vpop.f32.mrf.mxu2 }
  0xbd   : > { %1845 = vrcp.f32 %v826_v61  ;;  %v692_v63 = vpop.f32.mrf.mxu3  ;;  %v867_v15 = vand.u32 2147483647, %v826_v61  ;;  %v869_v17 = vand.u32 2147483648, %v826_v61  ;;  %vm863_vm0 = vweird.f32 %v826_v61 }
  0xbe   : > { %v693_v0 = vadd.f32 %v692_v63, %v603_v62  ;;  %v566_v1 = vpop.f32.mrf.mxu0 }
  0xbf   : > { %v655_v2 = vpop.f32.mrf.mxu1  ;;  %vm868_vm2 = vcmp.eq.f32.partialorder %v867_v15, 8.507059e+37  ;;  %v870_v29 = vor.u32 1.1754944e-38, %v869_v17 }
  0xc0   : > { %v1842_v3 = vpop.eup %1841  ;;  %v1717_v4 = vmul.f32 -1.442695, %v693_v0  ;;  %v656_v5 = vadd.f32 %v655_v2, %v566_v1 }
  0xc1   : > { %v2156_v6 = vadd.f32 1.0, %v1842_v3 }
  0xc2   : > { %v1844_v7 = vpop.eup %1843  ;;  %1847 = vpow2.f32 %v1717_v4  ;;  %v1702_v8 = vmul.f32 -1.442695, %v656_v5 }
  0xc3   : > { %v1846_v9 = vpop.eup %1845  ;;  %1849 = vrcp.f32 %v2156_v6  ;;  %v2159_v11 = vadd.f32 1.0, %v1844_v7  ;;  %v1107_v30 = vand.u32 2147483647, %v2156_v6  ;;  %v1109_v38 = vand.u32 2147483648, %v2156_v6 }
  0xc4   : > { %v859_v10 = vmul.f32 %v1846_v9, %v826_v61  ;;  %1851 = vpow2.f32 %v1702_v8  ;;  %v606_v12 = vpop.f32.mrf.mxu2  ;;  %vm864_vm1 = vweird.f32 %v1846_v9  ;;  %vm1103_vm4 = vweird.f32 %v2156_v6 }
  0xc5   : > { %v695_v13 = vpop.f32.mrf.mxu3  ;;  %1853 = vrcp.f32 %v2159_v11  ;;  %vm865_vm3 = vmor %vm863_vm0, %vm864_vm1  ;;  %vm2180_vm6 = vcmp.eq.f32.partialorder %v1107_v30, 8.507059e+37  ;;  %v882_v45 = vand.u32 2147483647, %v2159_v11  ;;  %v884_v48 = vand.u32 2147483648, %v2159_v11 }
  0xc6   : > { %v860_v14 = vsub.f32 1.0, %v859_v10  ;;  %v568_v16 = vpop.f32.mrf.mxu0  ;;  %v696_v18 = vadd.f32 %v695_v13, %v606_v12  ;;  %v1110_v52 = vor.u32 1.1754944e-38, %v1109_v38  ;;  %vm878_vm8 = vweird.f32 %v2159_v11 }
  0xc7   : > { %v657_v19 = vpop.f32.mrf.mxu1  ;;  %vm883_vm11 = vcmp.eq.f32.partialorder %v882_v45, 8.507059e+37  ;;  %v885_v0 = vor.u32 1.1754944e-38, %v884_v48 }
  0xc8   : > { %v1848_v20 = vpop.eup %1847  ;;  %v861_v21 = vmul.f32 %v1846_v9, %v860_v14  ;;  %v658_v22 = vadd.f32 %v657_v19, %v568_v16  ;;  %v1718_v25 = vmul.f32 -1.442695, %v696_v18 }
  0xc9   : > { %v1850_v23 = vpop.eup %1849  ;;  %v2163_v24 = vadd.f32 1.0, %v1848_v20 }
  0xca   : > { %v1852_v26 = vpop.eup %1851  ;;  %v862_v27 = vadd.f32 %v1846_v9, %v861_v21  ;;  %v1099_v28 = vmul.f32 %v1850_v23, %v2156_v6  ;;  %v1703_v31 = vmul.f32 -1.442695, %v658_v22  ;;  %vm1104_vm5 = vweird.f32 %v1850_v23 }
  0xcb   : > { %1855 = vrcp.f32 %v2163_v24  ;;  %v1854_v32 = vpop.eup %1853  ;;  %v2173_v35 = vadd.f32 1.0, %v1852_v26  ;;  %vm1105_vm7 = vmor %vm1103_vm4, %vm1104_vm5  ;;  %v1124_v57 = vand.u32 2147483648, %v2163_v24  ;;  %vm1118_vm12 = vweird.f32 %v2163_v24 }
  0xcc   : > { %v866_v33 = vsel %vm865_vm3, %v1846_v9, %v862_v27  ;;  %v1100_v34 = vsub.f32 1.0, %v1099_v28  ;;  %1857 = vpow2.f32 %v1718_v25  ;;  %v608_v36 = vpop.f32.mrf.mxu2  ;;  %v874_v39 = vmul.f32 %v1854_v32, %v2159_v11 }
  0xcd   : > { %v871_v37 = vsel %vm868_vm2, %v870_v29, %v866_v33  ;;  %v697_v40 = vpop.f32.mrf.mxu3  ;;  %1859 = vrcp.f32 %v2173_v35  ;;  %vm879_vm9 = vweird.f32 %v1854_v32  ;;  %v1122_v9 = vand.u32 2147483647, %v2163_v24 }
  0xce   : > { %1338 = vst [vmem:[%s2169_s4] sm:$0xff] %v871_v37  ;;  %v1101_v41 = vmul.f32 %v1850_v23, %v1100_v34  ;;  %v571_v42 = vpop.f32.mrf.mxu0  ;;  %v875_v44 = vsub.f32 1.0, %v874_v39  ;;  %1861 = vpow2.f32 %v1703_v31  ;;  %v698_v49 = vadd.f32 %v697_v40, %v608_v36  ;;  %vm880_vm10 = vmor %vm878_vm8, %vm879_vm9 }
  0xcf   : > { %v660_v46 = vpop.f32.mrf.mxu1  ;;  %v1125_v11 = vor.u32 1.1754944e-38, %v1124_v57  ;;  %v897_v16 = vand.u32 2147483647, %v2173_v35  ;;  %v899_v17 = vand.u32 2147483648, %v2173_v35  ;;  %vm893_vm15 = vweird.f32 %v2173_v35 }
  0xd0   : > { %v1102_v47 = vadd.f32 %v1850_v23, %v1101_v41  ;;  %v661_v50 = vadd.f32 %v660_v46, %v571_v42  ;;  %v876_v53 = vmul.f32 %v1854_v32, %v875_v44  ;;  %v1719_v58 = vmul.f32 -1.442695, %v698_v49 }
  0xd1   : > { %v1856_v51 = vpop.eup %1855  ;;  %vm1123_vm1 = vcmp.eq.f32.partialorder %v1122_v9, 8.507059e+37  ;;  %vm898_vm3 = vcmp.eq.f32.partialorder %v897_v16, 8.507059e+37 }
  0xd2   : > { %v1858_v54 = vpop.eup %1857  ;;  %v1106_v55 = vsel %vm1105_vm7, %v1850_v23, %v1102_v47  ;;  %v1114_v56 = vmul.f32 %v1856_v51, %v2163_v24  ;;  %v877_v60 = vadd.f32 %v1854_v32, %v876_v53  ;;  %v1704_v62 = vmul.f32 -1.442695, %v661_v50 }
  0xd3   : > { %v1111_v59 = vsel %vm2180_vm6, %v1110_v52, %v1106_v55  ;;  %v2191_v61 = vadd.f32 1.0, %v1858_v54  ;;  %v1860_v63 = vpop.eup %1859  ;;  %1863 = vpow2.f32 %v1719_v58  ;;  %vm1119_vm13 = vweird.f32 %v1856_v51 }
  0xd4   : > { %1354 = vst [vmem:[%s2169_s4 + $0x80] sm:$0xff] %v1111_v59  ;;  %v1115_v1 = vsub.f32 1.0, %v1114_v56  ;;  %v611_v2 = vpop.f32.mrf.mxu2  ;;  %v1862_v3 = vpop.eup %1861  ;;  %v881_v4 = vsel %vm880_vm10, %v1854_v32, %v877_v60  ;;  %v889_v5 = vmul.f32 %v1860_v63, %v2173_v35  ;;  %vm1120_vm14 = vmor %vm1118_vm12, %vm1119_vm13  ;;  %vm894_vm0 = vweird.f32 %v1860_v63 }
  0xd5   : > { %1865 = vrcp.f32 %v2191_v61  ;;  %v700_v6 = vpop.f32.mrf.mxu3  ;;  %v886_v7 = vsel %vm883_vm11, %v885_v0, %v881_v4  ;;  %v2199_v13 = vadd.f32 1.0, %v1862_v3  ;;  %vm895_vm2 = vmor %vm893_vm15, %vm894_vm0  ;;  %v900_v24 = vor.u32 1.1754944e-38, %v899_v17 }
  0xd6   : > { %v1116_v8 = vmul.f32 %v1856_v51, %v1115_v1  ;;  %v573_v10 = vpop.f32.mrf.mxu0  ;;  %1339 = vst [vmem:[%s2169_s4 + $0x8] sm:$0xff] %v886_v7  ;;  %v890_v12 = vsub.f32 1.0, %v889_v5  ;;  %1867 = vpow2.f32 %v1704_v62  ;;  %v701_v18 = vadd.f32 %v700_v6, %v611_v2 }
  0xd7   : > { %v662_v14 = vpop.f32.mrf.mxu1  ;;  %1869 = vrcp.f32 %v2199_v13  ;;  %v1137_v33 = vand.u32 2147483647, %v2191_v61  ;;  %v1139_v34 = vand.u32 2147483648, %v2191_v61  ;;  %vm1133_vm4 = vweird.f32 %v2191_v61 }
  0xd8   : > { %v1117_v15 = vadd.f32 %v1856_v51, %v1116_v8  ;;  %v891_v19 = vmul.f32 %v1860_v63, %v890_v12  ;;  %v663_v22 = vadd.f32 %v662_v14, %v573_v10  ;;  %v1720_v28 = vmul.f32 -1.442695, %v701_v18 }
  0xd9   : > { %v1864_v20 = vpop.eup %1863  ;;  %vm2219_vm6 = vcmp.eq.f32.partialorder %v1137_v33, 8.507059e+37  ;;  %v1140_v47 = vor.u32 1.1754944e-38, %v1139_v34  ;;  %v912_v48 = vand.u32 2147483647, %v2199_v13  ;;  %vm908_vm8 = vweird.f32 %v2199_v13 }
  0xda   : > { %v1121_v21 = vsel %vm1120_vm14, %v1856_v51, %v1117_v15  ;;  %v892_v26 = vadd.f32 %v1860_v63, %v891_v19  ;;  %v2207_v27 = vadd.f32 1.0, %v1864_v20  ;;  %v1705_v39 = vmul.f32 -1.442695, %v663_v22 }
  0xdb   : > { %v1866_v23 = vpop.eup %1865  ;;  %v1126_v25 = vsel %vm1123_vm1, %v1125_v11, %v1121_v21  ;;  %v914_v53 = vand.u32 2147483648, %v2199_v13  ;;  %vm2233_vm10 = vcmp.eq.f32.partialorder %v912_v48, 8.507059e+37 }
  0xdc   : > { %1355 = vst [vmem:[%s2169_s4 + $0x88] sm:$0xff] %v1126_v25  ;;  %v1129_v29 = vmul.f32 %v1866_v23, %v2191_v61  ;;  %v613_v30 = vpop.f32.mrf.mxu2  ;;  %v1868_v31 = vpop.eup %1867  ;;  %v896_v32 = vsel %vm895_vm2, %v1860_v63, %v892_v26  ;;  %1871 = vrcp.f32 %v2207_v27  ;;  %vm1134_vm5 = vweird.f32 %v1866_v23 }
  0xdd   : > { %v702_v35 = vpop.f32.mrf.mxu3  ;;  %v901_v36 = vsel %vm898_vm3, %v900_v24, %v896_v32  ;;  %v2214_v38 = vadd.f32 1.0, %v1868_v31  ;;  %v1870_v41 = vpop.eup %1869  ;;  %1873 = vpow2.f32 %v1720_v28  ;;  %vm1135_vm7 = vmor %vm1133_vm4, %vm1134_vm5  ;;  %v1152_v54 = vand.u32 2147483647, %v2207_v27 }
  0xde   : > { %v1130_v37 = vsub.f32 1.0, %v1129_v29  ;;  %v576_v40 = vpop.f32.mrf.mxu0  ;;  %1340 = vst [vmem:[%s2169_s4 + $0x10] sm:$0xff] %v901_v36  ;;  %v703_v42 = vadd.f32 %v702_v35, %v613_v30  ;;  %v904_v45 = vmul.f32 %v1870_v41, %v2199_v13  ;;  %vm909_vm9 = vweird.f32 %v1870_v41 }
  0xdf   : > { %v665_v43 = vpop.f32.mrf.mxu1  ;;  %1875 = vrcp.f32 %v2214_v38  ;;  %v1154_v62 = vand.u32 2147483648, %v2207_v27  ;;  %vm910_vm11 = vmor %vm908_vm8, %vm909_vm9  ;;  %v915_v7 = vor.u32 1.1754944e-38, %v914_v53  ;;  %vm1148_vm12 = vweird.f32 %v2207_v27 }
  0xe0   : > { %v1131_v44 = vmul.f32 %v1866_v23, %v1130_v37  ;;  %v905_v50 = vsub.f32 1.0, %v904_v45  ;;  %1877 = vpow2.f32 %v1705_v39  ;;  %v1721_v51 = vmul.f32 -1.442695, %v703_v42 }
  0xe1   : > { %v666_v55 = vadd.f32 %v665_v43, %v576_v40  ;;  %vm2246_vm14 = vcmp.eq.f32.partialorder %v1152_v54, 8.507059e+37  ;;  %v1155_v13 = vor.u32 1.1754944e-38, %v1154_v62  ;;  %vm923_vm15 = vweird.f32 %v2214_v38 }
  0xe2   : > { %v1132_v49 = vadd.f32 %v1866_v23, %v1131_v44  ;;  %v1872_v52 = vpop.eup %1871  ;;  %v906_v57 = vmul.f32 %v1870_v41, %v905_v50  ;;  %1879 = vpow2.f32 %v1721_v51  ;;  %v927_v21 = vand.u32 2147483647, %v2214_v38 }
  0xe3   : > { %v1144_v58 = vmul.f32 %v1872_v52, %v2207_v27  ;;  %v1874_v60 = vpop.eup %1873  ;;  %v1706_v63 = vmul.f32 -1.442695, %v666_v55  ;;  %vm1149_vm13 = vweird.f32 %v1872_v52  ;;  %v929_v22 = vand.u32 2147483648, %v2214_v38 }
  0xe4   : > { %v1136_v56 = vsel %vm1135_vm7, %v1866_v23, %v1132_v49  ;;  %v616_v59 = vpop.f32.mrf.mxu2  ;;  %v907_v1 = vadd.f32 %v1870_v41, %v906_v57  ;;  %v2237_v4 = vadd.f32 1.0, %v1874_v60  ;;  %vm1150_vm0 = vmor %vm1148_vm12, %vm1149_vm13  ;;  %vm928_vm3 = vcmp.eq.f32.partialorder %v927_v21, 8.507059e+37 }
  0xe5   : > { %v1141_v61 = vsel %vm2219_vm6, %v1140_v47, %v1136_v56  ;;  %v705_v0 = vpop.f32.mrf.mxu3  ;;  %v1145_v3 = vsub.f32 1.0, %v1144_v58  ;;  %v1876_v6 = vpop.eup %1875  ;;  %1881 = vpow2.f32 %v1706_v63  ;;  %v930_v39 = vor.u32 1.1754944e-38, %v929_v22 }
  0xe6   : > { %1356 = vst [vmem:[%s2169_s4 + $0x90] sm:$0xff] %v1141_v61  ;;  %v578_v5 = vpop.f32.mrf.mxu0  ;;  %v706_v8 = vadd.f32 %v705_v0, %v616_v59  ;;  %v1878_v10 = vpop.eup %1877  ;;  %v911_v11 = vsel %vm910_vm11, %v1870_v41, %v907_v1  ;;  %v919_v14 = vmul.f32 %v1876_v6, %v2214_v38  ;;  %1883 = vrcp.f32 %v2237_v4 }
  0xe7   : > { %v667_v9 = vpop.f32.mrf.mxu1  ;;  %v1146_v12 = vmul.f32 %v1872_v52, %v1145_v3  ;;  %v916_v15 = vsel %vm2233_vm10, %v915_v7, %v911_v11  ;;  %v2253_v19 = vadd.f32 1.0, %v1878_v10  ;;  %vm924_vm1 = vweird.f32 %v1876_v6 }
  0xe8   : > { %1341 = vst [vmem:[%s2169_s4 + $0x18] sm:$0xff] %v916_v15  ;;  %v920_v18 = vsub.f32 1.0, %v919_v14  ;;  %v1880_v20 = vpop.eup %1879  ;;  %v1722_v23 = vmul.f32 -1.442695, %v706_v8  ;;  %v668_v28 = vadd.f32 %v667_v9, %v578_v5  ;;  %v1167_v27 = vand.u32 2147483647, %v2237_v4  ;;  %vm925_vm2 = vmor %vm923_vm15, %vm924_vm1 }
  0xe9   : > { %v1147_v17 = vadd.f32 %v1872_v52, %v1146_v12  ;;  %1885 = vrcp.f32 %v2253_v19  ;;  %v1169_v31 = vand.u32 2147483648, %v2237_v4  ;;  %v2265_v34 = vadd.f32 1.0, %v1880_v20 }
  0xea   : > { %v921_v26 = vmul.f32 %v1876_v6, %v920_v18  ;;  %1887 = vpow2.f32 %v1722_v23  ;;  %v942_v40 = vand.u32 2147483647, %v2253_v19  ;;  %v944_v41 = vand.u32 2147483648, %v2253_v19 }
  0xeb   : > { %v1151_v25 = vsel %vm1150_vm0, %v1872_v52, %v1147_v17  ;;  %v1882_v29 = vpop.eup %1881  ;;  %1889 = vrcp.f32 %v2265_v34  ;;  %v1707_v45 = vmul.f32 -1.442695, %v668_v28  ;;  %vm1163_vm4 = vweird.f32 %v2237_v4 }
  0xec   : > { %v618_v24 = vpop.f32.mrf.mxu2  ;;  %v1156_v30 = vsel %vm2246_vm14, %v1155_v13, %v1151_v25  ;;  %v922_v33 = vadd.f32 %v1876_v6, %v921_v26  ;;  %v2267_v35 = vadd.f32 1.0, %v1882_v29  ;;  %v1884_v37 = vpop.eup %1883  ;;  %vm2277_vm5 = vcmp.eq.f32.partialorder %v1167_v27, 8.507059e+37 }
  0xed   : > { %v707_v32 = vpop.f32.mrf.mxu3  ;;  %1357 = vst [vmem:[%s2169_s4 + $0x98] sm:$0xff] %v1156_v30  ;;  %v1159_v44 = vmul.f32 %v1884_v37, %v2237_v4  ;;  %v1170_v49 = vor.u32 1.1754944e-38, %v1169_v31  ;;  %vm938_vm6 = vweird.f32 %v2253_v19  ;;  %vm2285_vm7 = vcmp.eq.f32.partialorder %v942_v40, 8.507059e+37 }
  0xee   : > { %v581_v36 = vpop.f32.mrf.mxu0  ;;  %v926_v43 = vsel %vm925_vm2, %v1876_v6, %v922_v33  ;;  %1891 = vrcp.f32 %v2267_v35  ;;  %v708_v50 = vadd.f32 %v707_v32, %v618_v24  ;;  %v945_v53 = vor.u32 1.1754944e-38, %v944_v41 }
  0xef   : > { %v670_v42 = vpop.f32.mrf.mxu1  ;;  %v931_v46 = vsel %vm928_vm3, %v930_v39, %v926_v43  ;;  %v1886_v38 = vpop.eup %1885  ;;  %v1160_v48 = vsub.f32 1.0, %v1159_v44  ;;  %vm1164_vm8 = vweird.f32 %v1884_v37  ;;  %v1182_v56 = vand.u32 2147483647, %v2265_v34 }
  0xf0   : > { %1342 = vst [vmem:[%s2169_s4 + $0x20] sm:$0xff] %v931_v46  ;;  %v934_v51 = vmul.f32 %v1886_v38, %v2253_v19  ;;  %v1888_v54 = vpop.eup %1887  ;;  %1893 = vpow2.f32 %v1707_v45  ;;  %vm1178_vm9 = vweird.f32 %v2265_v34  ;;  %v1184_v59 = vand.u32 2147483648, %v2265_v34  ;;  %vm1165_vm11 = vmor %vm1163_vm4, %vm1164_vm8 }
  0xf1   : > { %v1161_v55 = vmul.f32 %v1884_v37, %v1160_v48  ;;  %v2292_v60 = vadd.f32 1.0, %v1888_v54  ;;  %v1890_v62 = vpop.eup %1889  ;;  %vm953_vm10 = vweird.f32 %v2267_v35  ;;  %v957_v0 = vand.u32 2147483647, %v2267_v35 }
  0xf2   : > { %v935_v58 = vsub.f32 1.0, %v934_v51  ;;  %v1723_v1 = vmul.f32 -1.442695, %v708_v50  ;;  %vm939_vm12 = vweird.f32 %v1886_v38  ;;  %v1174_v5 = vmul.f32 %v1890_v62, %v2265_v34 }
  0xf3   : > { %v1162_v63 = vadd.f32 %v1884_v37, %v1161_v55  ;;  %1895 = vrcp.f32 %v2292_v60  ;;  %vm2301_vm13 = vcmp.eq.f32.partialorder %v1182_v56, 8.507059e+37  ;;  %v671_v10 = vadd.f32 %v670_v42, %v581_v36  ;;  %vm940_vm14 = vmor %vm938_vm6, %vm939_vm12 }
  0xf4   : > { %v621_v57 = vpop.f32.mrf.mxu2  ;;  %v936_v3 = vmul.f32 %v1886_v38, %v935_v58  ;;  %v1892_v7 = vpop.eup %1891  ;;  %v1175_v14 = vsub.f32 1.0, %v1174_v5  ;;  %vm1179_vm15 = vweird.f32 %v1890_v62  ;;  %v1185_v13 = vor.u32 1.1754944e-38, %v1184_v59 }
  0xf5   : > { %v710_v61 = vpop.f32.mrf.mxu3  ;;  %v1166_v8 = vsel %vm1165_vm11, %v1884_v37, %v1162_v63  ;;  %v949_v15 = vmul.f32 %v1892_v7, %v2267_v35  ;;  %v959_v17 = vand.u32 2147483648, %v2267_v35  ;;  %1897 = vpow2.f32 %v1723_v1  ;;  %vm1180_vm1 = vmor %vm1178_vm9, %vm1179_vm15 }
  0xf6   : > { %v583_v2 = vpop.f32.mrf.mxu0  ;;  %v711_v11 = vadd.f32 %v710_v61, %v621_v57  ;;  %v1171_v4 = vsel %vm2277_vm5, %v1170_v49, %v1166_v8  ;;  %v937_v12 = vadd.f32 %v1886_v38, %v936_v3  ;;  %v1894_v16 = vpop.eup %1893  ;;  %v1176_v20 = vmul.f32 %v1890_v62, %v1175_v14 }
  0xf7   : > { %v672_v6 = vpop.f32.mrf.mxu1  ;;  %1358 = vst [vmem:[%s2169_s4 + $0xa0] sm:$0xff] %v1171_v4  ;;  %v950_v21 = vsub.f32 1.0, %v949_v15  ;;  %v2313_v22 = vadd.f32 1.0, %v1894_v16  ;;  %vm954_vm0 = vweird.f32 %v1892_v7  ;;  %v1708_v25 = vmul.f32 -1.442695, %v671_v10 }
  0xf8   : > { %v941_v18 = vsel %vm940_vm14, %v1886_v38, %v937_v12  ;;  %v673_v26 = vadd.f32 %v672_v6, %v583_v2  ;;  %v1177_v24 = vadd.f32 %v1890_v62, %v1176_v20  ;;  %v1724_v30 = vmul.f32 -1.442695, %v711_v11  ;;  %vm955_vm3 = vmor %vm953_vm10, %vm954_vm0 }
  0xf9   : > { %v946_v23 = vsel %vm2285_vm7, %v945_v53, %v941_v18  ;;  %v1896_v19 = vpop.eup %1895  ;;  %v951_v29 = vmul.f32 %v1892_v7, %v950_v21  ;;  %1899 = vrcp.f32 %v2313_v22  ;;  %vm2322_vm2 = vcmp.eq.f32.partialorder %v957_v0, 8.507059e+37 }
  0xfa   : > { %1343 = vst [vmem:[%s2169_s4 + $0x28] sm:$0xff] %v946_v23  ;;  %v960_v32 = vor.u32 1.1754944e-38, %v959_v17  ;;  %v1189_v33 = vmul.f32 %v1896_v19, %v2292_v60  ;;  %v1197_v36 = vand.u32 2147483647, %v2292_v60  ;;  %v1181_v39 = vsel %vm1180_vm1, %v1890_v62, %v1177_v24 }
  0xfb   : > { %v952_v40 = vadd.f32 %v1892_v7, %v951_v29  ;;  %1901 = vpow2.f32 %v1708_v25  ;;  %v1709_v41 = vmul.f32 -1.442695, %v673_v26  ;;  %v1898_v43 = vpop.eup %1897  ;;  %v1186_v34 = vsel %vm2301_vm13, %v1185_v13, %v1181_v39 }
  0xfc   : > { %v623_v28 = vpop.f32.mrf.mxu2  ;;  %v1190_v44 = vsub.f32 1.0, %v1189_v33  ;;  %vm1194_vm4 = vweird.f32 %v1896_v19  ;;  %v1199_v45 = vand.u32 2147483648, %v2292_v60  ;;  %1359 = vst [vmem:[%s2169_s4 + $0xa8] sm:$0xff] %v1186_v34  ;;  %v2335_v47 = vadd.f32 1.0, %v1898_v43 }
  0xfd   : > { %v712_v27 = vpop.f32.mrf.mxu3  ;;  %v956_v46 = vsel %vm955_vm3, %v1892_v7, %v952_v40  ;;  %1903 = vpow2.f32 %v1724_v30  ;;  %vm1193_vm5 = vweird.f32 %v2292_v60  ;;  %vm2341_vm6 = vcmp.eq.f32.partialorder %v1197_v36, 8.507059e+37 }
  0xfe   : > { %v586_v37 = vpop.f32.mrf.mxu0  ;;  %v713_v38 = vadd.f32 %v712_v27, %v623_v28  ;;  %v961_v48 = vsel %vm2322_vm2, %v960_v32, %v956_v46  ;;  %v1191_v49 = vmul.f32 %v1896_v19, %v1190_v44  ;;  %1905 = vpow2.f32 %v1709_v41  ;;  %vm1195_vm7 = vmor %vm1193_vm5, %vm1194_vm4 }
  0xff   : > { %v675_v42 = vpop.f32.mrf.mxu1  ;;  %v1900_v51 = vpop.eup %1899  ;;  %1344 = vst [vmem:[%s2169_s4 + $0x30] sm:$0xff] %v961_v48  ;;  %1907 = vrcp.f32 %v2335_v47  ;;  %v972_v54 = vand.u32 2147483647, %v2313_v22  ;;  %v1200_v58 = vor.u32 1.1754944e-38, %v1199_v45  ;;  %v974_v59 = vand.u32 2147483648, %v2313_v22 }
 0x100   : > { %v676_v50 = vadd.f32 %v675_v42, %v586_v37  ;;  %v1192_v52 = vadd.f32 %v1896_v19, %v1191_v49  ;;  %v964_v53 = vmul.f32 %v1900_v51, %v2313_v22  ;;  %v1725_v55 = vmul.f32 -1.442695, %v713_v38 }
 0x101   : > { %v1902_v57 = vpop.eup %1901  ;;  %v1212_v60 = vand.u32 2147483647, %v2335_v47  ;;  %vm968_vm8 = vweird.f32 %v2313_v22  ;;  %v1214_v6 = vand.u32 2147483648, %v2335_v47  ;;  %vm969_vm9 = vweird.f32 %v1900_v51 }
 0x102   : > { %v1710_v61 = vmul.f32 -1.442695, %v676_v50  ;;  %v1196_v63 = vsel %vm1195_vm7, %v1896_v19, %v1192_v52  ;;  %v965_v0 = vsub.f32 1.0, %v964_v53  ;;  %v2351_v1 = vadd.f32 1.0, %v1902_v57  ;;  %vm970_vm13 = vmor %vm968_vm8, %vm969_vm9 }
 0x103   : > { %1909 = vpow2.f32 %v1725_v55  ;;  %v1904_v3 = vpop.eup %1903  ;;  %v1201_v5 = vsel %vm2341_vm6, %v1200_v58, %v1196_v63  ;;  %vm2362_vm10 = vcmp.eq.f32.partialorder %v972_v54, 8.507059e+37  ;;  %v975_v4 = vor.u32 1.1754944e-38, %v974_v59 }
 0x104   : > { %v626_v56 = vpop.f32.mrf.mxu2  ;;  %1911 = vpow2.f32 %v1710_v61  ;;  %v1906_v8 = vpop.eup %1905  ;;  %1360 = vst [vmem:[%s2169_s4 + $0xb0] sm:$0xff] %v1201_v5  ;;  %v966_v9 = vmul.f32 %v1900_v51, %v965_v0  ;;  %v2367_v12 = vadd.f32 1.0, %v1904_v3  ;;  %vm1208_vm11 = vweird.f32 %v2335_v47 }
 0x105   : > { %v715_v62 = vpop.f32.mrf.mxu3  ;;  %1913 = vrcp.f32 %v2351_v1  ;;  %v1908_v11 = vpop.eup %1907  ;;  %v2369_v14 = vadd.f32 1.0, %v1906_v8  ;;  %vm2373_vm12 = vcmp.eq.f32.partialorder %v1212_v60, 8.507059e+37  ;;  %v1215_v18 = vor.u32 1.1754944e-38, %v1214_v6 }
 0x106   : > { %v2353_v2 = vpop.f32.mrf.mxu0  ;;  %v716_v15 = vadd.f32 %v715_v62, %v626_v56  ;;  %v967_v16 = vadd.f32 %v1900_v51, %v966_v9  ;;  %v1204_v13 = vmul.f32 %v1908_v11, %v2335_v47  ;;  %vm983_vm14 = vweird.f32 %v2351_v1 }
 0x107   : > { %v2359_v7 = vpop.f32.mrf.mxu1  ;;  %v987_v20 = vand.u32 2147483647, %v2351_v1  ;;  %1915 = vrcp.f32 %v2367_v12  ;;  %v989_v26 = vand.u32 2147483648, %v2351_v1  ;;  %vm1209_vm15 = vweird.f32 %v1908_v11 }
 0x108   : > { %v971_v23 = vsel %vm970_vm13, %v1900_v51, %v967_v16  ;;  %v1205_v25 = vsub.f32 1.0, %v1204_v13  ;;  %1917 = vrcp.f32 %v2369_v14  ;;  %v1229_v24 = vand.u32 2147483648, %v2367_v12  ;;  %vm1210_vm2 = vmor %vm1208_vm11, %vm1209_vm15 }
 0x109   : > { %v1910_v21 = vpop.eup %1909  ;;  %v976_v22 = vsel %vm2362_vm10, %v975_v4, %v971_v23  ;;  %v1726_v29 = vmul.f32 -1.442695, %v716_v15  ;;  %v1227_v32 = vand.u32 2147483647, %v2367_v12  ;;  %v1004_v33 = vand.u32 2147483648, %v2369_v14 }
 0x10a   : > { %v1912_v19 = vpop.eup %1911  ;;  %1345 = vst [vmem:[%s2169_s4 + $0x38] sm:$0xff] %v976_v22  ;;  %v1206_v31 = vmul.f32 %v1908_v11, %v1205_v25  ;;  %v2390_v36 = vadd.f32 1.0, %v1910_v21  ;;  %vm2393_vm0 = vcmp.eq.f32.partialorder %v987_v20, 8.507059e+37  ;;  %v1002_v40 = vand.u32 2147483647, %v2369_v14 }
 0x10b   : > { %v1914_v27 = vpop.eup %1913  ;;  %v2398_v41 = vadd.f32 1.0, %v1912_v19  ;;  %v990_v44 = vor.u32 1.1754944e-38, %v989_v26  ;;  %vm1223_vm1 = vweird.f32 %v2367_v12  ;;  %v1230_v38 = vor.u32 1.1754944e-38, %v1229_v24 }
 0x10c   : > { %v628_v28 = vpop.f32.mrf.mxu2  ;;  %v979_v37 = vmul.f32 %v1914_v27, %v2351_v1  ;;  %v1207_v34 = vadd.f32 %v1908_v11, %v1206_v31  ;;  %1919 = vrcp.f32 %v2390_v36  ;;  %vm998_vm3 = vweird.f32 %v2369_v14 }
 0x10d   : > { %v717_v30 = vpop.f32.mrf.mxu3  ;;  %v1916_v45 = vpop.eup %1915  ;;  %1921 = vrcp.f32 %v2398_v41  ;;  %vm984_vm4 = vweird.f32 %v1914_v27  ;;  %vm2408_vm5 = vcmp.eq.f32.partialorder %v1227_v32, 8.507059e+37  ;;  %v1005_v35 = vor.u32 1.1754944e-38, %v1004_v33 }
 0x10e   : > { %v591_v42 = vpop.f32.mrf.mxu0  ;;  %v980_v46 = vsub.f32 1.0, %v979_v37  ;;  %v1918_v48 = vpop.eup %1917  ;;  %v1211_v49 = vsel %vm1210_vm2, %v1908_v11, %v1207_v34  ;;  %v1219_v50 = vmul.f32 %v1916_v45, %v2367_v12  ;;  %vm2415_vm6 = vcmp.eq.f32.partialorder %v1002_v40, 8.507059e+37  ;;  %vm985_vm11 = vmor %vm983_vm14, %vm984_vm4 }
 0x10f   : > { %v680_v43 = vpop.f32.mrf.mxu1  ;;  %v1216_v47 = vsel %vm2373_vm12, %v1215_v18, %v1211_v49  ;;  %v994_v53 = vmul.f32 %v1918_v48, %v2369_v14  ;;  %v1242_v55 = vand.u32 2147483647, %v2390_v36  ;;  %vm1224_vm7 = vweird.f32 %v1916_v45 }
 0x110   : > { %v981_v52 = vmul.f32 %v1914_v27, %v980_v46  ;;  %1361 = vst [vmem:[%s2169_s4 + $0xb8] sm:$0xff] %v1216_v47  ;;  %v1220_v56 = vsub.f32 1.0, %v1219_v50  ;;  %v1244_v57 = vand.u32 2147483648, %v2390_v36  ;;  %vm1013_vm8 = vweird.f32 %v2398_v41  ;;  %vm1225_vm13 = vmor %vm1223_vm1, %vm1224_vm7 }
 0x111   : > { %v995_v60 = vsub.f32 1.0, %v994_v53  ;;  %vm999_vm9 = vweird.f32 %v1918_v48  ;;  %vm1238_vm10 = vweird.f32 %v2390_v36  ;;  %1923 = vpow2.f32 %v1726_v29 }
 0x112   : > { %v982_v59 = vadd.f32 %v1914_v27, %v981_v52  ;;  %v1920_v62 = vpop.eup %1919  ;;  %v1221_v63 = vmul.f32 %v1916_v45, %v1220_v56  ;;  %v1017_v0 = vand.u32 2147483647, %v2398_v41  ;;  %v678_v3 = vadd.f32 %v2359_v7, %v2353_v2  ;;  %vm1000_vm15 = vmor %vm998_vm3, %vm999_vm9 }
 0x113   : > { %v718_v5 = vadd.f32 %v717_v30, %v628_v28  ;;  %v1922_v6 = vpop.eup %1921  ;;  %v996_v9 = vmul.f32 %v1918_v48, %v995_v60  ;;  %v1234_v10 = vmul.f32 %v1920_v62, %v2390_v36  ;;  %v1019_v11 = vand.u32 2147483648, %v2398_v41 }
 0x114   : > { %v631_v58 = vpop.f32.mrf.mxu2  ;;  %v986_v8 = vsel %vm985_vm11, %v1914_v27, %v982_v59  ;;  %v1222_v15 = vadd.f32 %v1916_v45, %v1221_v63  ;;  %vm1239_vm12 = vweird.f32 %v1920_v62  ;;  %v1009_v1 = vmul.f32 %v1922_v6, %v2398_v41 }
 0x115   : > { %v720_v61 = vpop.f32.mrf.mxu3  ;;  %v991_v4 = vsel %vm2393_vm0, %v990_v44, %v986_v8  ;;  %v997_v2 = vadd.f32 %v1918_v48, %v996_v9  ;;  %v1235_v7 = vsub.f32 1.0, %v1234_v10  ;;  %vm1014_vm14 = vweird.f32 %v1922_v6  ;;  %vm1240_vm0 = vmor %vm1238_vm10, %vm1239_vm12 }
 0x116   : > { %1346 = vst [vmem:[%s2169_s4 + $0x40] sm:$0xff] %v991_v4  ;;  %v1711_v16 = vmul.f32 -1.442695, %v678_v3  ;;  %v593_v13 = vpop.f32.mrf.mxu0  ;;  %v1226_v18 = vsel %vm1225_vm13, %v1916_v45, %v1222_v15  ;;  %v1010_v20 = vsub.f32 1.0, %v1009_v1  ;;  %v1727_v21 = vmul.f32 -1.442695, %v718_v5  ;;  %vm1015_vm2 = vmor %vm1013_vm8, %vm1014_vm14 }
 0x117   : > { %v682_v17 = vpop.f32.mrf.mxu1  ;;  %v681_v23 = vadd.f32 %v680_v43, %v591_v42  ;;  %v1924_v25 = vpop.eup %1923  ;;  %v1231_v12 = vsel %vm2408_vm5, %v1230_v38, %v1226_v18  ;;  %v1001_v26 = vsel %vm1000_vm15, %v1918_v48, %v997_v2  ;;  %v1236_v28 = vmul.f32 %v1920_v62, %v1235_v7 }
 0x118   : > { %1925 = vpow2.f32 %v1711_v16  ;;  %1362 = vst [vmem:[%s2169_s4 + $0xc0] sm:$0xff] %v1231_v12  ;;  %v1006_v19 = vsel %vm2415_vm6, %v1005_v35, %v1001_v26  ;;  %v1011_v22 = vmul.f32 %v1922_v6, %v1010_v20  ;;  %v2447_v24 = vadd.f32 1.0, %v1924_v25 }
 0x119   : > { %1927 = vpow2.f32 %v1727_v21  ;;  %1347 = vst [vmem:[%s2169_s4 + $0x48] sm:$0xff] %v1006_v19  ;;  %v1237_v14 = vadd.f32 %v1920_v62, %v1236_v28  ;;  %v1712_v29 = vmul.f32 -1.442695, %v681_v23  ;;  %v721_v30 = vadd.f32 %v720_v61, %v631_v58 }
 0x11a   : > { %v683_v27 = vadd.f32 %v682_v17, %v593_v13  ;;  %vm1243_vm1 = vcmp.eq.f32.partialorder %v1242_v55, 8.507059e+37  ;;  %v1245_v31 = vor.u32 1.1754944e-38, %v1244_v57  ;;  %v1012_v32 = vadd.f32 %v1922_v6, %v1011_v22 }
 0x11b   : > { %1929 = vrcp.f32 %v2447_v24  ;;  %v1241_v39 = vsel %vm1240_vm0, %v1920_v62, %v1237_v14  ;;  %v1020_v40 = vor.u32 1.1754944e-38, %v1019_v11  ;;  %v1728_v42 = vmul.f32 -1.442695, %v721_v30 }
 0x11c   : > { %v633_v33 = vpop.f32.mrf.mxu2  ;;  %1931 = vpow2.f32 %v1712_v29  ;;  %v1246_v43 = vsel %vm1243_vm1, %v1245_v31, %v1241_v39  ;;  %v1016_v36 = vsel %vm1015_vm2, %v1922_v6, %v1012_v32  ;;  %vm1018_vm3 = vcmp.eq.f32.partialorder %v1017_v0, 8.507059e+37 }
 0x11d   : > { %v722_v37 = vpop.f32.mrf.mxu3  ;;  %v1713_v34 = vmul.f32 -1.442695, %v683_v27  ;;  %1363 = vst [vmem:[%s2169_s4 + $0xc8] sm:$0xff] %v1246_v43  ;;  %v1021_v45 = vsel %vm1018_vm3, %v1020_v40, %v1016_v36  ;;  %1933 = vpow2.f32 %v1728_v42  ;;  %v1257_v53 = vand.u32 2147483647, %v2447_v24 }
 0x11e   : > { %v1926_v44 = vpop.eup %1925  ;;  %v723_v46 = vadd.f32 %v722_v37, %v633_v33  ;;  %1348 = vst [vmem:[%s2169_s4 + $0x50] sm:$0xff] %v1021_v45  ;;  %v596_v50 = vpop.f32.mrf.mxu0  ;;  %v1259_v54 = vand.u32 2147483648, %v2447_v24  ;;  %vm1253_vm4 = vweird.f32 %v2447_v24 }
 0x11f   : > { %v1928_v38 = vpop.eup %1927  ;;  %v2459_v48 = vadd.f32 1.0, %v1926_v44  ;;  %1935 = vpow2.f32 %v1713_v34  ;;  %v685_v51 = vpop.f32.mrf.mxu1  ;;  %vm2478_vm6 = vcmp.eq.f32.partialorder %v1257_v53, 8.507059e+37 }
 0x120   : > { %v2461_v49 = vadd.f32 1.0, %v1928_v38  ;;  %v1729_v41 = vmul.f32 -1.442695, %v723_v46  ;;  %v686_v55 = vadd.f32 %v685_v51, %v596_v50  ;;  %v1260_v8 = vor.u32 1.1754944e-38, %v1259_v54 }
 0x121   : > { %v1930_v35 = vpop.eup %1929  ;;  %1937 = vrcp.f32 %v2459_v48  ;;  %v1032_v59 = vand.u32 2147483647, %v2459_v48  ;;  %v1034_v60 = vand.u32 2147483648, %v2459_v48  ;;  %vm1028_vm7 = vweird.f32 %v2459_v48 }
 0x122   : > { %v1932_v47 = vpop.eup %1931  ;;  %v1249_v52 = vmul.f32 %v1930_v35, %v2447_v24  ;;  %1939 = vrcp.f32 %v2461_v49  ;;  %v1272_v61 = vand.u32 2147483647, %v2461_v49  ;;  %vm1254_vm5 = vweird.f32 %v1930_v35 }
 0x123   : > { %v1934_v56 = vpop.eup %1933  ;;  %v2469_v58 = vadd.f32 1.0, %v1932_v47  ;;  %1941 = vpow2.f32 %v1729_v41  ;;  %v1274_v3 = vand.u32 2147483648, %v2461_v49  ;;  %v1714_v9 = vmul.f32 -1.442695, %v686_v55  ;;  %vm1255_vm9 = vmor %vm1253_vm4, %vm1254_vm5 }
 0x124   : > { %v1250_v57 = vsub.f32 1.0, %v1249_v52  ;;  %v2474_v62 = vadd.f32 1.0, %v1934_v56  ;;  %vm1268_vm8 = vweird.f32 %v2461_v49  ;;  %vm2488_vm10 = vcmp.eq.f32.partialorder %v1032_v59, 8.507059e+37  ;;  %v636_v16 = vpop.f32.mrf.mxu2 }
 0x125   : > { %v1936_v63 = vpop.eup %1935  ;;  %1943 = vrcp.f32 %v2469_v58  ;;  %v1035_v1 = vor.u32 1.1754944e-38, %v1034_v60  ;;  %vm2493_vm11 = vcmp.eq.f32.partialorder %v1272_v61, 8.507059e+37  ;;  %v725_v13 = vpop.f32.mrf.mxu3  ;;  %v1275_v21 = vor.u32 1.1754944e-38, %v1274_v3 }
 0x126   : > { %v1251_v0 = vmul.f32 %v1930_v35, %v1250_v57  ;;  %1945 = vrcp.f32 %v2474_v62  ;;  %v2497_v23 = vadd.f32 1.0, %v1936_v63  ;;  %v726_v22 = vadd.f32 %v725_v13, %v636_v16  ;;  %v598_v55 = vpop.f32.mrf.mxu0 }
 0x127   : > { %v1938_v5 = vpop.eup %1937  ;;  %1947 = vpow2.f32 %v1714_v9  ;;  %vm1043_vm14 = vweird.f32 %v2469_v58  ;;  %v1047_v27 = vand.u32 2147483647, %v2469_v58  ;;  %v1049_v31 = vand.u32 2147483648, %v2469_v58  ;;  %v687_v56 = vpop.f32.mrf.mxu1 }
 0x128   : > { %v1940_v10 = vpop.eup %1939  ;;  %v1252_v11 = vadd.f32 %v1930_v35, %v1251_v0  ;;  %v1024_v4 = vmul.f32 %v1938_v5, %v2459_v48  ;;  %vm1029_vm12 = vweird.f32 %v1938_v5  ;;  %1949 = vrcp.f32 %v2497_v23 }
 0x129   : > { %v1264_v2 = vmul.f32 %v1940_v10, %v2461_v49  ;;  %v1942_v17 = vpop.eup %1941  ;;  %vm1269_vm13 = vweird.f32 %v1940_v10  ;;  %vm1030_vm15 = vmor %vm1028_vm7, %vm1029_vm12  ;;  %vm1283_vm0 = vweird.f32 %v2474_v62  ;;  %v1287_v42 = vand.u32 2147483647, %v2474_v62 }
 0x12a   : > { %v1256_v18 = vsel %vm1255_vm9, %v1930_v35, %v1252_v11  ;;  %v1025_v20 = vsub.f32 1.0, %v1024_v4  ;;  %v2501_v26 = vadd.f32 1.0, %v1942_v17  ;;  %vm1270_vm1 = vmor %vm1268_vm8, %vm1269_vm13  ;;  %v1289_v43 = vand.u32 2147483648, %v2474_v62 }
 0x12b   : > { %v1261_v25 = vsel %vm2478_vm6, %v1260_v8, %v1256_v18  ;;  %v1265_v12 = vsub.f32 1.0, %v1264_v2  ;;  %v1944_v28 = vpop.eup %1943  ;;  %vm2526_vm4 = vcmp.eq.f32.partialorder %v1047_v27, 8.507059e+37  ;;  %v1064_v35 = vand.u32 2147483648, %v2497_v23 }
 0x12c   : > { %1364 = vst [vmem:[%s2169_s4 + $0xd0] sm:$0xff] %v1261_v25  ;;  %v1026_v19 = vmul.f32 %v1938_v5, %v1025_v20  ;;  %v1946_v24 = vpop.eup %1945  ;;  %v1039_v29 = vmul.f32 %v1944_v28, %v2469_v58  ;;  %1951 = vrcp.f32 %v2501_v26  ;;  %vm1044_vm2 = vweird.f32 %v1944_v28  ;;  %v638_v61 = vpop.f32.mrf.mxu2 }
 0x12d   : > { %v1266_v14 = vmul.f32 %v1940_v10, %v1265_v12  ;;  %v1279_v32 = vmul.f32 %v1946_v24, %v2474_v62  ;;  %v1948_v36 = vpop.eup %1947  ;;  %vm1284_vm3 = vweird.f32 %v1946_v24  ;;  %vm2534_vm5 = vmor %vm1043_vm14, %vm1044_vm2  ;;  %v1050_v52 = vor.u32 1.1754944e-38, %v1049_v31  ;;  %v727_v63 = vpop.f32.mrf.mxu3 }
 0x12e   : > { %v1027_v30 = vadd.f32 %v1938_v5, %v1026_v19  ;;  %v1040_v37 = vsub.f32 1.0, %v1039_v29  ;;  %v1950_v46 = vpop.eup %1949  ;;  %v2523_v49 = vadd.f32 1.0, %v1948_v36  ;;  %vm2538_vm6 = vcmp.eq.f32.partialorder %v1287_v42, 8.507059e+37  ;;  %vm1285_vm7 = vmor %vm1283_vm0, %vm1284_vm3 }
 0x12f   : > { %v1267_v33 = vadd.f32 %v1940_v10, %v1266_v14  ;;  %v1280_v40 = vsub.f32 1.0, %v1279_v32  ;;  %v1054_v51 = vmul.f32 %v1950_v46, %v2497_v23  ;;  %v1290_v58 = vor.u32 1.1754944e-38, %v1289_v43 }
 0x130   : > { %v1031_v39 = vsel %vm1030_vm15, %v1938_v5, %v1027_v30  ;;  %v1041_v45 = vmul.f32 %v1944_v28, %v1040_v37  ;;  %1953 = vrcp.f32 %v2523_v49  ;;  %vm1058_vm8 = vweird.f32 %v2497_v23 }
 0x131   : > { %v1036_v34 = vsel %vm2488_vm10, %v1035_v1, %v1031_v39  ;;  %v1271_v44 = vsel %vm1270_vm1, %v1940_v10, %v1267_v33  ;;  %v1281_v48 = vmul.f32 %v1946_v24, %v1280_v40  ;;  %v1055_v60 = vsub.f32 1.0, %v1054_v51 }
 0x132   : > { %1349 = vst [vmem:[%s2169_s4 + $0x58] sm:$0xff] %v1036_v34  ;;  %v1276_v38 = vsel %vm2493_vm11, %v1275_v21, %v1271_v44  ;;  %v1042_v41 = vadd.f32 %v1944_v28, %v1041_v45  ;;  %v1952_v57 = vpop.eup %1951  ;;  %v1062_v5 = vand.u32 2147483647, %v2497_v23  ;;  %vm1059_vm9 = vweird.f32 %v1950_v46 }
 0x133   : > { %1365 = vst [vmem:[%s2169_s4 + $0xd8] sm:$0xff] %v1276_v38  ;;  %v1282_v53 = vadd.f32 %v1946_v24, %v1281_v48  ;;  %v1294_v6 = vmul.f32 %v1952_v57, %v2501_v26  ;;  %v1056_v8 = vmul.f32 %v1950_v46, %v1055_v60  ;;  %v1065_v9 = vor.u32 1.1754944e-38, %v1064_v35  ;;  %vm1060_vm11 = vmor %vm1058_vm8, %vm1059_vm9 }
 0x134   : > { %v1046_v59 = vsel %vm2534_vm5, %v1944_v28, %v1042_v41  ;;  %v1730_v11 = vmul.f32 -1.442695, %v726_v22  ;;  %v688_v4 = vadd.f32 %v687_v56, %v598_v55  ;;  %v728_v15 = vadd.f32 %v727_v63, %v638_v61 }
 0x135   : > { %v1051_v0 = vsel %vm2526_vm4, %v1050_v52, %v1046_v59  ;;  %v1286_v3 = vsel %vm1285_vm7, %v1946_v24, %v1282_v53  ;;  %v1295_v10 = vsub.f32 1.0, %v1294_v6  ;;  %v1057_v1 = vadd.f32 %v1950_v46, %v1056_v8 }
 0x136   : > { %1350 = vst [vmem:[%s2169_s4 + $0x60] sm:$0xff] %v1051_v0  ;;  %v1291_v62 = vsel %vm2538_vm6, %v1290_v58, %v1286_v3  ;;  %vm1299_vm10 = vweird.f32 %v1952_v57  ;;  %v1302_v2 = vand.u32 2147483647, %v2501_v26  ;;  %v1304_v7 = vand.u32 2147483648, %v2501_v26  ;;  %v1954_v16 = vpop.eup %1953 }
 0x137   : > { %1366 = vst [vmem:[%s2169_s4 + $0xe0] sm:$0xff] %v1291_v62  ;;  %v1296_v13 = vmul.f32 %v1952_v57, %v1295_v10  ;;  %1955 = vpow2.f32 %v1730_v11  ;;  %v1715_v17 = vmul.f32 -1.442695, %v688_v4  ;;  %v1731_v18 = vmul.f32 -1.442695, %v728_v15 }
 0x138   : > { %v1061_v20 = vsel %vm1060_vm11, %v1950_v46, %v1057_v1  ;;  %vm1063_vm12 = vcmp.eq.f32.partialorder %v1062_v5, 8.507059e+37  ;;  %v1069_v21 = vmul.f32 %v1954_v16, %v2523_v49  ;;  %vm1298_vm13 = vweird.f32 %v2501_v26 }
 0x139   : > { %v1066_v25 = vsel %vm1063_vm12, %v1065_v9, %v1061_v20  ;;  %v1297_v12 = vadd.f32 %v1952_v57, %v1296_v13  ;;  %1957 = vpow2.f32 %v1715_v17  ;;  %vm1300_vm14 = vmor %vm1298_vm13, %vm1299_vm10  ;;  %v1305_v28 = vor.u32 1.1754944e-38, %v1304_v7 }
 0x13a   : > { %1351 = vst [vmem:[%s2169_s4 + $0x68] sm:$0xff] %v1066_v25  ;;  %v1070_v23 = vsub.f32 1.0, %v1069_v21  ;;  %1959 = vpow2.f32 %v1731_v18  ;;  %vm1303_vm15 = vcmp.eq.f32.partialorder %v1302_v2, 8.507059e+37  ;;  %vm1073_vm0 = vweird.f32 %v2523_v49 }
 0x13b   : > { %v1301_v19 = vsel %vm1300_vm14, %v1952_v57, %v1297_v12  ;;  %v1079_v22 = vand.u32 2147483648, %v2523_v49  ;;  %vm1074_vm1 = vweird.f32 %v1954_v16  ;;  %v1077_v26 = vand.u32 2147483647, %v2523_v49 }
 0x13c   : > { %v1306_v24 = vsel %vm1303_vm15, %v1305_v28, %v1301_v19  ;;  %v1071_v14 = vmul.f32 %v1954_v16, %v1070_v23  ;;  %vm1075_vm2 = vmor %vm1073_vm0, %vm1074_vm1 }
 0x13d   : > { %v1956_v29 = vpop.eup %1955  ;;  %1367 = vst [vmem:[%s2169_s4 + $0xe8] sm:$0xff] %v1306_v24  ;;  %v1080_v32 = vor.u32 1.1754944e-38, %v1079_v22  ;;  %vm1078_vm3 = vcmp.eq.f32.partialorder %v1077_v26, 8.507059e+37 }
 0x13e   : > { %v1072_v30 = vadd.f32 %v1954_v16, %v1071_v14  ;;  %v856_v27 = vadd.f32 1.0, %v1956_v29 }
 0x13f   : > { %v1958_v31 = vpop.eup %1957 }
 0x140   : > { %v1960_v33 = vpop.eup %1959  ;;  %v1076_v37 = vsel %vm1075_vm2, %v1954_v16, %v1072_v30  ;;  %1961 = vrcp.f32 %v856_v27  ;;  %v841_v40 = vadd.f32 1.0, %v1958_v31  ;;  %v1317_v34 = vand.u32 2147483647, %v856_v27 }
 0x141   : > { %v1081_v39 = vsel %vm1078_vm3, %v1080_v32, %v1076_v37  ;;  %v857_v42 = vadd.f32 1.0, %v1960_v33  ;;  %v1319_v46 = vand.u32 2147483648, %v856_v27  ;;  %vm1313_vm5 = vweird.f32 %v856_v27 }
 0x142   : > { %1352 = vst [vmem:[%s2169_s4 + $0x70] sm:$0xff] %v1081_v39  ;;  %1963 = vrcp.f32 %v841_v40  ;;  %vm1318_vm6 = vcmp.eq.f32.partialorder %v1317_v34, 8.507059e+37  ;;  %v1094_v47 = vand.u32 2147483648, %v841_v40  ;;  %v1092_v54 = vand.u32 2147483647, %v841_v40 }
 0x143   : > { %1965 = vrcp.f32 %v857_v42  ;;  %v1320_v35 = vor.u32 1.1754944e-38, %v1319_v46  ;;  %v1334_v55 = vand.u32 2147483648, %v857_v42  ;;  %v1332_v59 = vand.u32 2147483647, %v857_v42 }
 0x144   : > { %vm1088_vm10 = vweird.f32 %v841_v40  ;;  %v1095_v61 = vor.u32 1.1754944e-38, %v1094_v47  ;;  %vm1328_vm12 = vweird.f32 %v857_v42  ;;  %vm1093_vm13 = vcmp.eq.f32.partialorder %v1092_v54, 8.507059e+37 }
 0x145   : > { %v1335_v3 = vor.u32 1.1754944e-38, %v1334_v55  ;;  %vm1333_vm15 = vcmp.eq.f32.partialorder %v1332_v59, 8.507059e+37 }
 0x146   : > { %v1962_v43 = vpop.eup %1961 }
 0x147   : > { %v1309_v36 = vmul.f32 %v1962_v43, %v856_v27  ;;  %vm1314_vm4 = vweird.f32 %v1962_v43 }
 0x148   : > { %v1964_v44 = vpop.eup %1963  ;;  %vm1315_vm7 = vmor %vm1313_vm5, %vm1314_vm4 }
 0x149   : > { %v1310_v45 = vsub.f32 1.0, %v1309_v36  ;;  %v1966_v38 = vpop.eup %1965  ;;  %v1084_v48 = vmul.f32 %v1964_v44, %v841_v40  ;;  %vm1089_vm8 = vweird.f32 %v1964_v44 }
 0x14a   : > { %v1324_v41 = vmul.f32 %v1966_v38, %v857_v42  ;;  %vm1329_vm9 = vweird.f32 %v1966_v38  ;;  %vm1090_vm11 = vmor %vm1088_vm10, %vm1089_vm8 }
 0x14b   : > { %v1311_v49 = vmul.f32 %v1962_v43, %v1310_v45  ;;  %v1085_v50 = vsub.f32 1.0, %v1084_v48  ;;  %vm1330_vm14 = vmor %vm1328_vm12, %vm1329_vm9 }
 0x14c   : > { %v1325_v52 = vsub.f32 1.0, %v1324_v41 }
 0x14d   : > { %v1312_v51 = vadd.f32 %v1962_v43, %v1311_v49  ;;  %v1086_v53 = vmul.f32 %v1964_v44, %v1085_v50 }
 0x14e   : > { %v1326_v57 = vmul.f32 %v1966_v38, %v1325_v52 }
 0x14f   : > { %v1316_v56 = vsel %vm1315_vm7, %v1962_v43, %v1312_v51  ;;  %v1087_v60 = vadd.f32 %v1964_v44, %v1086_v53 }
 0x150   : > { %v1321_v58 = vsel %vm1318_vm6, %v1320_v35, %v1316_v56  ;;  %v1327_v63 = vadd.f32 %v1966_v38, %v1326_v57 }
 0x151   : > { %1368 = vst [vmem:[%s2169_s4 + $0xf0] sm:$0xff] %v1321_v58  ;;  %v1091_v0 = vsel %vm1090_vm11, %v1964_v44, %v1087_v60 }
 0x152   : > { %v1096_v5 = vsel %vm1093_vm13, %v1095_v61, %v1091_v0  ;;  %v1331_v6 = vsel %vm1330_vm14, %v1966_v38, %v1327_v63 }
 0x153   : > { %1353 = vst [vmem:[%s2169_s4 + $0x78] sm:$0xff] %v1096_v5  ;;  %v1336_v62 = vsel %vm1333_vm15, %v1335_v3, %v1331_v6 }
 0x154   : > { %1369 = vst [vmem:[%s2169_s4 + $0xf8] sm:$0xff] %v1336_v62 }
 0x155 PF: > { %s12_s13 = sadd.s32 1, %s2005_s13   ;;  %s2631_s9 = smov %s1997_s11 }
 0x156   : > { %p9_p7 = scmp.ge.s32.totalorder %s12_s13, 10   ;;  %s2632_s10 = smov %s2001_s12 }
 0x157   : > { %s2633_s11 = smov %s2636_s14  ;;  %s2634_s12 = smov %s2640_s15 }
 0x158   :  { %11 = sbr.rel (!%p9_p7) target bundleno = 3 (0x3), region = 61 }

</bundles_post_ra>
